<compile_context>
chip_gen: v7x
topology: tpu7x:2x2x1
jax: 0.10.0
libtpu: 0.0.40
codegen_flags: <defaults>
</compile_context>

<pallas_src>
import jax
import jax.numpy as jnp
import numpy as np
from jax import lax
from jax.experimental import pallas as pl
from jax.experimental.pallas import tpu as pltpu


def _round_up(x, m):
    return ((x + m - 1) // m) * m


def _sigmoid(x):
    # sigmoid(x) = 0.5 * (1 + tanh(x/2)) : one EUP transcendental instead of exp+divide.
    return 0.5 * jnp.tanh(0.5 * x) + 0.5


# ----------------------------------------------------------------------------
# Fused kernel: all LSTM layers + masked time-sum + FC.
# Layer-outer / time-inner with precomputed per-block input projection.
# ----------------------------------------------------------------------------
def _make_fused_lstm_kernel(num_layers, time_block, hidden_pad):
    L, TB, H = num_layers, time_block, hidden_pad
    G = 4 * H

    def kernel(x_ref, len_ref, *args):
        # args = [wx0, wh0, b0, ..., wx_{L-1}, wh_{L-1}, b_{L-1}, wfc, bfc,
        #         out_ref, h_scr, c_scr, acc_scr, gate_scr, seq_scr]
        w_refs = args[: 3 * L]
        wfc_ref = args[3 * L]
        bfc_ref = args[3 * L + 1]
        out_ref = args[3 * L + 2]
        h_scr, c_scr, acc_scr, gate_scr, seq_scr = args[3 * L + 3:]

        t_blk = pl.program_id(1)              # time-block index ("arbitrary", sequential)
        b_rows = x_ref.shape[1]               # batch rows in this tile

        @pl.when(t_blk == 0)
        def _init():                          # new batch tile -> reset recurrent state
            h_scr[...] = jnp.zeros_like(h_scr)
            c_scr[...] = jnp.zeros_like(c_scr)
            acc_scr[...] = jnp.zeros_like(acc_scr)

        lens = len_ref[...]                   # (B_blk, 1) int32 valid lengths
        t_base = t_blk * TB

        def cell(tb, h, c, wh_ref):
            # Recurrent half of the gates only; input half + bias are precomputed
            # in gate_scr (one big matmul per layer per time block).
            g = gate_scr[tb] + jnp.dot(h, wh_ref[...],
                                       preferred_element_type=jnp.float32)
            i_g = _sigmoid(g[:, 0 * H:1 * H])     # PyTorch gate order i, f, g, o
            f_g = _sigmoid(g[:, 1 * H:2 * H])
            g_g = jnp.tanh(g[:, 2 * H:3 * H])
            o_g = _sigmoid(g[:, 3 * H:4 * H])
            c_new = f_g * c + i_g * g_g
            h_new = o_g * jnp.tanh(c_new)
            return h_new, c_new

        for l in range(L):
            wx_ref = w_refs[3 * l]
            wh_ref = w_refs[3 * l + 1]
            b_ref = w_refs[3 * l + 2]
            last = (l == L - 1)

            # ---- one MXU-friendly matmul: input projection for the whole block ----
            if l == 0:
                inp2d = x_ref[...].reshape(TB * b_rows, x_ref.shape[2])   # (TB*B, Din)
            else:
                inp2d = seq_scr[...].reshape(TB * b_rows, H)              # (TB*B, H)
            gate_scr[...] = (
                jnp.dot(inp2d, wx_ref[...], preferred_element_type=jnp.float32)
                + b_ref[...]                                              # bias hoisted
            ).reshape(TB, b_rows, G)

            # ---- per-timestep recurrence; h/c (and acc) carried in vregs ----
            if last:
                def step(tb, carry, wh_ref=wh_ref):
                    h, c, acc = carry
                    h, c = cell(tb, h, c, wh_ref)
                    valid = ((t_base + tb) < lens).astype(jnp.float32)    # (B_blk, 1)
                    return (h, c, acc + h * valid)

                hN, cN, accN = lax.fori_loop(
                    0, TB, step, (h_scr[l], c_scr[l], acc_scr[...]), unroll=True)
                acc_scr[...] = accN
            else:
                def step(tb, carry, wh_ref=wh_ref):
                    h, c = carry
                    h, c = cell(tb, h, c, wh_ref)
                    seq_scr[tb] = h               # feeds the next layer's projection
                    return (h, c)

                hN, cN = lax.fori_loop(
                    0, TB, step, (h_scr[l], c_scr[l]), unroll=True)

            h_scr[l] = hN                         # one scratch store per layer per block
            c_scr[l] = cN

        # Fused final Linear layer, emitted once at the last time block.
        @pl.when(t_blk == pl.num_programs(1) - 1)
        def _finish():
            out_ref[...] = (
                jnp.dot(acc_scr[...], wfc_ref[...],
                        preferred_element_type=jnp.float32)
                + bfc_ref[...]
            ).astype(out_ref.dtype)

    return kernel


# ----------------------------------------------------------------------------
# Wrapper: padding / weight layout / pallas_call plumbing
# ----------------------------------------------------------------------------
def lstm_model_forward(x, seq_len, params, *, time_block=None, batch_block=None):
    """x: (B, T, input_dim) batch-first (PyTorch layout); seq_len: (B,) int lengths."""
    B, T, Din = x.shape
    lstm_params = params["lstm"]
    L = len(lstm_params)
    H = lstm_params[0][1].shape[1]              # w_hh: (4H, H)
    O = params["fc_w"].shape[0]

    LANE, SUB = 128, 8
    H_pad = _round_up(H, LANE)                  # lane-aligned gate slices & scratch
    f32 = jnp.float32

    # Batch tile: >= 2 tiles when B >= 16 (v7x megacore), grow toward 128 rows.
    if batch_block is None:
        B8 = _round_up(B, SUB)
        batch_block = B8 if B8 < 16 else min(128, _round_up(B8 // 2, SUB))
    batch_block = _round_up(batch_block, SUB)
    B_pad = _round_up(max(B, batch_block), batch_block)

    # Time block: big enough to amortize per-grid-step overhead; whole T when small.
    if time_block is None:
        time_block = min(T, 32)
    T_pad = _round_up(T, time_block)

    def pad_gate_cols(w):                       # (..., 4H) -> (..., 4*H_pad), per-gate pad
        lead = w.shape[:-1]
        w = w.reshape(lead + (4, H))
        w = jnp.pad(w, [(0, 0)] * len(lead) + [(0, 0), (0, H_pad - H)])
        return w.reshape(lead + (4 * H_pad,))

    flat_weights, weight_specs = [], []
    for l, (w_ih, w_hh, b_ih, b_hh) in enumerate(lstm_params):
        wx = pad_gate_cols(jnp.transpose(w_ih).astype(f32))   # (d_in, 4*H_pad)
        if l > 0:                                             # layer>0 input has H_pad lanes
            wx = jnp.pad(wx, ((0, H_pad - H), (0, 0)))
        wh = pad_gate_cols(jnp.transpose(w_hh).astype(f32))   # (H, 4*H_pad)
        wh = jnp.pad(wh, ((0, H_pad - H), (0, 0)))            # (H_pad, 4*H_pad)
        bias = pad_gate_cols((b_ih + b_hh).astype(f32)).reshape(1, 4 * H_pad)
        flat_weights += [wx, wh, bias]
        weight_specs += [
            pl.BlockSpec(wx.shape, lambda b, t: (0, 0)),
            pl.BlockSpec(wh.shape, lambda b, t: (0, 0)),
            pl.BlockSpec(bias.shape, lambda b, t: (0, 0)),
        ]

    wfc = jnp.pad(jnp.transpose(params["fc_w"]).astype(f32),
                  ((0, H_pad - H), (0, 0)))                    # (H_pad, O)
    bfc = params["fc_b"].astype(f32).reshape(1, O)
    flat_weights += [wfc, bfc]
    weight_specs += [
        pl.BlockSpec(wfc.shape, lambda b, t: (0, 0)),
        pl.BlockSpec(bfc.shape, lambda b, t: (0, 0)),
    ]

    # Time-major, padded (T, B) input; Din is NOT padded (keeps HBM traffic minimal).
    x_tm = jnp.transpose(x.astype(f32), (1, 0, 2))             # (T, B, Din)
    x_tm = jnp.pad(x_tm, ((0, T_pad - T), (0, B_pad - B), (0, 0)))
    lens = jnp.pad(seq_len.astype(jnp.int32), (0, B_pad - B)).reshape(B_pad, 1)

    grid = (B_pad // batch_block, T_pad // time_block)         # (parallel, arbitrary)
    kernel = _make_fused_lstm_kernel(L, time_block, H_pad)

    grid_spec = pltpu.PrefetchScalarGridSpec(
        num_scalar_prefetch=0,
        grid=grid,
        in_specs=[
            pl.BlockSpec((time_block, batch_block, Din), lambda b, t: (t, b, 0)),
            pl.BlockSpec((batch_block, 1), lambda b, t: (b, 0)),
            *weight_specs,
        ],
        out_specs=pl.BlockSpec((batch_block, O), lambda b, t: (b, 0)),
        scratch_shapes=[
            pltpu.VMEM((L, batch_block, H_pad), f32),                 # h state (all layers)
            pltpu.VMEM((L, batch_block, H_pad), f32),                 # c state (all layers)
            pltpu.VMEM((batch_block, H_pad), f32),                    # masked-sum accumulator
            pltpu.VMEM((time_block, batch_block, 4 * H_pad), f32),    # per-block gate pre-proj
            pltpu.VMEM((time_block, batch_block, H_pad), f32),        # per-block layer output
        ],
    )

    out = pl.pallas_call(
        kernel,
        out_shape=jax.ShapeDtypeStruct((B_pad, O), f32),
        grid_spec=grid_spec,
        compiler_params=pltpu.CompilerParams(
            dimension_semantics=("parallel", "arbitrary"),
            vmem_limit_bytes=48 * 1024 * 1024,
        ),
    )(x_tm, lens, *flat_weights)
    return out[:B]


# ----------------------------------------------------------------------------
# Parameter init mirroring PyTorch uniform(-1/sqrt(H), 1/sqrt(H))
# ----------------------------------------------------------------------------
def init_params(key, input_dim, hidden_dim, layer_dim, output_dim):
    k = 1.0 / np.sqrt(hidden_dim)
    layers = []
    for l in range(layer_dim):
        din = input_dim if l == 0 else hidden_dim
        key, k1, k2, k3, k4 = jax.random.split(key, 5)
        w_ih = jax.random.uniform(k1, (4 * hidden_dim, din), jnp.float32, -k, k)
        w_hh = jax.random.uniform(k2, (4 * hidden_dim, hidden_dim), jnp.float32, -k, k)
        b_ih = jax.random.uniform(k3, (4 * hidden_dim,), jnp.float32, -k, k)
        b_hh = jax.random.uniform(k4, (4 * hidden_dim,), jnp.float32, -k, k)
        layers.append((w_ih, w_hh, b_ih, b_hh))
    key, k1, k2 = jax.random.split(key, 3)
    fc_w = jax.random.uniform(k1, (output_dim, hidden_dim), jnp.float32, -k, k)
    fc_b = jax.random.uniform(k2, (output_dim,), jnp.float32, -k, k)
    return {"lstm": layers, "fc_w": fc_w, "fc_b": fc_b}


# ----------------------------------------------------------------------------
# Pure-JAX reference (correctness check only)
# ----------------------------------------------------------------------------
def reference_forward(x, seq_len, params):
    h_seq = x
    for (w_ih, w_hh, b_ih, b_hh) in params["lstm"]:
        B = h_seq.shape[0]
        H = w_hh.shape[1]

        def step(carry, x_t, w_ih=w_ih, w_hh=w_hh, b_ih=b_ih, b_hh=b_hh):
            h, c = carry
            gates = x_t @ w_ih.T + b_ih + h @ w_hh.T + b_hh
            i, f, g, o = jnp.split(gates, 4, axis=-1)
            i, f, o = jax.nn.sigmoid(i), jax.nn.sigmoid(f), jax.nn.sigmoid(o)
            g = jnp.tanh(g)
            c = f * c + i * g
            h = o * jnp.tanh(c)
            return (h, c), h

        init = (jnp.zeros((B, H), jnp.float32), jnp.zeros((B, H), jnp.float32))
        _, hs = jax.lax.scan(step, init, jnp.swapaxes(h_seq, 0, 1))
        h_seq = jnp.swapaxes(hs, 0, 1)   # (B, T, H)

    T = h_seq.shape[1]
    mask = (jnp.arange(T)[None, :] < seq_len[:, None]).astype(jnp.float32)
    summed = jnp.sum(h_seq * mask[:, :, None], axis=1)
    return summed @ params["fc_w"].T + params["fc_b"]


if __name__ == "__main__":
    B, T = 2, 8
    INPUT_DIM, HIDDEN_DIM, LAYER_DIM, OUTPUT_DIM = 12, 32, 2, 3

    key = jax.random.PRNGKey(0)
    key, kx, kp = jax.random.split(key, 3)
    x = jax.random.normal(kx, (B, T, INPUT_DIM), jnp.float32)
    seq_len = jnp.array([8, 5], dtype=jnp.int32)      # per-sequence valid lengths
    params = init_params(kp, INPUT_DIM, HIDDEN_DIM, LAYER_DIM, OUTPUT_DIM)

    out = jax.block_until_ready(lstm_model_forward(x, seq_len, params))

    ref = jax.block_until_ready(reference_forward(x, seq_len, params))
    np.testing.assert_allclose(np.asarray(out), np.asarray(ref), rtol=1e-3, atol=1e-3)

    print("KERNEL_OK")
</pallas_src>

<mosaic_0001>
module attributes {stable_mosaic.version = 11 : i64} {
  func.func @kernel(%arg0: i32, %arg1: i32, %arg2: memref<8x8x12xf32, #tpu.memory_space<vmem>>, %arg3: memref<8x1xi32, #tpu.memory_space<vmem>>, %arg4: memref<12x512xf32, #tpu.memory_space<vmem>>, %arg5: memref<128x512xf32, #tpu.memory_space<vmem>>, %arg6: memref<1x512xf32, #tpu.memory_space<vmem>>, %arg7: memref<128x512xf32, #tpu.memory_space<vmem>>, %arg8: memref<128x512xf32, #tpu.memory_space<vmem>>, %arg9: memref<1x512xf32, #tpu.memory_space<vmem>>, %arg10: memref<128x3xf32, #tpu.memory_space<vmem>>, %arg11: memref<1x3xf32, #tpu.memory_space<vmem>>, %arg12: memref<8x3xf32, #tpu.memory_space<vmem>>, %arg13: memref<2x8x128xf32, #tpu.memory_space<vmem>>, %arg14: memref<2x8x128xf32, #tpu.memory_space<vmem>>, %arg15: memref<8x128xf32, #tpu.memory_space<vmem>>, %arg16: memref<8x8x512xf32, #tpu.memory_space<vmem>>, %arg17: memref<8x8x128xf32, #tpu.memory_space<vmem>>) attributes {dimension_semantics = [#tpu.dimension_semantics<parallel>, #tpu.dimension_semantics<arbitrary>], iteration_bounds = array<i64: 1, 1>, scalar_prefetch = 0 : i64, scratch_operands = 5 : i64, tpu.core_type = #tpu.core_type<tc>, window_params = [{transform_indices = @transform_0, window_bounds = array<i64: 8, 8, 12>}, {transform_indices = @transform_1, window_bounds = array<i64: 8, 1>}, {pipeline_mode = #tpu.pipeline_mode<synchronous>, transform_indices = @transform_2, window_bounds = array<i64: 12, 512>}, {pipeline_mode = #tpu.pipeline_mode<synchronous>, transform_indices = @transform_3, window_bounds = array<i64: 128, 512>}, {pipeline_mode = #tpu.pipeline_mode<synchronous>, transform_indices = @transform_4, window_bounds = array<i64: 1, 512>}, {pipeline_mode = #tpu.pipeline_mode<synchronous>, transform_indices = @transform_5, window_bounds = array<i64: 128, 512>}, {pipeline_mode = #tpu.pipeline_mode<synchronous>, transform_indices = @transform_6, window_bounds = array<i64: 128, 512>}, {pipeline_mode = #tpu.pipeline_mode<synchronous>, transform_indices = @transform_7, window_bounds = array<i64: 1, 512>}, {pipeline_mode = #tpu.pipeline_mode<synchronous>, transform_indices = @transform_8, window_bounds = array<i64: 128, 3>}, {pipeline_mode = #tpu.pipeline_mode<synchronous>, transform_indices = @transform_9, window_bounds = array<i64: 1, 3>}, {transform_indices = @transform_10, window_bounds = array<i64: 8, 3>}]} {
    %c0_i32 = arith.constant 0 : i32
    %0 = arith.cmpi eq, %arg1, %c0_i32 : i32
    %1 = arith.extui %0 : i1 to i32
    %c0_i32_0 = arith.constant 0 : i32
    %2 = arith.cmpi ne, %1, %c0_i32_0 : i32
    scf.if %2 {
      %cst_303 = arith.constant 0.000000e+00 : f32
      %736 = vector.broadcast %cst_303 : f32 to vector<2x8x128xf32>
      %c0_304 = arith.constant 0 : index
      %c0_305 = arith.constant 0 : index
      %c0_306 = arith.constant 0 : index
      %737 = vector.load %arg13[%c0_304, %c0_305, %c0_306] : memref<2x8x128xf32, #tpu.memory_space<vmem>>, vector<2x8x128xf32>
      tpu.vector_store %arg13[%c0_304, %c0_305, %c0_306], %736 {strides = array<i32>} : memref<2x8x128xf32, #tpu.memory_space<vmem>>, vector<2x8x128xf32>,
      %cst_307 = arith.constant 0.000000e+00 : f32
      %738 = vector.broadcast %cst_307 : f32 to vector<2x8x128xf32>
      %c0_308 = arith.constant 0 : index
      %c0_309 = arith.constant 0 : index
      %c0_310 = arith.constant 0 : index
      %739 = vector.load %arg14[%c0_308, %c0_309, %c0_310] : memref<2x8x128xf32, #tpu.memory_space<vmem>>, vector<2x8x128xf32>
      tpu.vector_store %arg14[%c0_308, %c0_309, %c0_310], %738 {strides = array<i32>} : memref<2x8x128xf32, #tpu.memory_space<vmem>>, vector<2x8x128xf32>,
      %cst_311 = arith.constant 0.000000e+00 : f32
      %740 = vector.broadcast %cst_311 : f32 to vector<8x128xf32>
      %c0_312 = arith.constant 0 : index
      %c0_313 = arith.constant 0 : index
      %741 = vector.load %arg15[%c0_312, %c0_313] : memref<8x128xf32, #tpu.memory_space<vmem>>, vector<8x128xf32>
      tpu.vector_store %arg15[%c0_312, %c0_313], %740 {strides = array<i32>} : memref<8x128xf32, #tpu.memory_space<vmem>>, vector<8x128xf32>,
    } else {
    }
    %c0 = arith.constant 0 : index
    %c0_1 = arith.constant 0 : index
    %3 = vector.load %arg3[%c0, %c0_1] : memref<8x1xi32, #tpu.memory_space<vmem>>, vector<8x1xi32>
    %c8_i32 = arith.constant 8 : i32
    %4 = arith.muli %arg1, %c8_i32 : i32
    %c0_2 = arith.constant 0 : index
    %c0_3 = arith.constant 0 : index
    %c0_4 = arith.constant 0 : index
    %5 = vector.load %arg2[%c0_2, %c0_3, %c0_4] : memref<8x8x12xf32, #tpu.memory_space<vmem>>, vector<8x8x12xf32>
    %6 = vector.shape_cast %5 : vector<8x8x12xf32> to vector<64x12xf32>
    %c0_5 = arith.constant 0 : index
    %c0_6 = arith.constant 0 : index
    %7 = vector.load %arg4[%c0_5, %c0_6] : memref<12x512xf32, #tpu.memory_space<vmem>>, vector<12x512xf32>
    %cst = arith.constant dense<0.000000e+00> : vector<64x512xf32>
    %8 = tpu.matmul %6, %7, %cst {dimension_numbers = #tpu.dot_dimension_numbers<[1], [0], [0], [1], [0, 0, 1, 1], [], []>} : vector<64x12xf32>, vector<12x512xf32>, vector<64x512xf32> -> vector<64x512xf32>
    %c0_7 = arith.constant 0 : index
    %c0_8 = arith.constant 0 : index
    %9 = vector.load %arg6[%c0_7, %c0_8] : memref<1x512xf32, #tpu.memory_space<vmem>>, vector<1x512xf32>
    %10 = vector.broadcast %9 : vector<1x512xf32> to vector<64x512xf32>
    %11 = arith.addf %8, %10 : vector<64x512xf32>
    %12 = vector.shape_cast %11 : vector<64x512xf32> to vector<8x8x512xf32>
    %c0_9 = arith.constant 0 : index
    %c0_10 = arith.constant 0 : index
    %c0_11 = arith.constant 0 : index
    %13 = vector.load %arg16[%c0_9, %c0_10, %c0_11] : memref<8x8x512xf32, #tpu.memory_space<vmem>>, vector<8x8x512xf32>
    tpu.vector_store %arg16[%c0_9, %c0_10, %c0_11], %12 {strides = array<i32>} : memref<8x8x512xf32, #tpu.memory_space<vmem>>, vector<8x8x512xf32>,
    %c0_12 = arith.constant 0 : index
    %c0_13 = arith.constant 0 : index
    %c0_14 = arith.constant 0 : index
    %14 = vector.load %arg13[%c0_12, %c0_13, %c0_14] : memref<2x8x128xf32, #tpu.memory_space<vmem>>, vector<1x8x128xf32>
    %15 = vector.shape_cast %14 : vector<1x8x128xf32> to vector<8x128xf32>
    %c0_15 = arith.constant 0 : index
    %c0_16 = arith.constant 0 : index
    %c0_17 = arith.constant 0 : index
    %16 = vector.load %arg14[%c0_15, %c0_16, %c0_17] : memref<2x8x128xf32, #tpu.memory_space<vmem>>, vector<1x8x128xf32>
    %17 = vector.shape_cast %16 : vector<1x8x128xf32> to vector<8x128xf32>
    %c0_i32_18 = arith.constant 0 : i32
    %18 = arith.index_cast %c0_i32_18 : i32 to index
    %c0_19 = arith.constant 0 : index
    %c0_20 = arith.constant 0 : index
    %19 = vector.load %arg16[%18, %c0_19, %c0_20] : memref<8x8x512xf32, #tpu.memory_space<vmem>>, vector<1x8x512xf32>
    %20 = vector.shape_cast %19 : vector<1x8x512xf32> to vector<8x512xf32>
    %c0_21 = arith.constant 0 : index
    %c0_22 = arith.constant 0 : index
    %21 = vector.load %arg5[%c0_21, %c0_22] : memref<128x512xf32, #tpu.memory_space<vmem>>, vector<128x512xf32>
    %cst_23 = arith.constant dense<0.000000e+00> : vector<8x512xf32>
    %22 = tpu.matmul %15, %21, %cst_23 {dimension_numbers = #tpu.dot_dimension_numbers<[1], [0], [0], [1], [0, 0, 1, 1], [], []>} : vector<8x128xf32>, vector<128x512xf32>, vector<8x512xf32> -> vector<8x512xf32>
    %23 = arith.addf %20, %22 : vector<8x512xf32>
    %24 = vector.extract_strided_slice %23 {offsets = [0, 0], sizes = [8, 128], strides = [1, 1]} : vector<8x512xf32> to vector<8x128xf32>
    %cst_24 = arith.constant 5.000000e-01 : f32
    %25 = vector.broadcast %cst_24 : f32 to vector<8x128xf32>
    %26 = arith.mulf %25, %24 : vector<8x128xf32>
    %27 = math.tanh %26 : vector<8x128xf32>
    %cst_25 = arith.constant 5.000000e-01 : f32
    %28 = vector.broadcast %cst_25 : f32 to vector<8x128xf32>
    %29 = arith.mulf %28, %27 : vector<8x128xf32>
    %cst_26 = arith.constant 5.000000e-01 : f32
    %30 = vector.broadcast %cst_26 : f32 to vector<8x128xf32>
    %31 = arith.addf %29, %30 : vector<8x128xf32>
    %32 = vector.extract_strided_slice %23 {offsets = [0, 128], sizes = [8, 128], strides = [1, 1]} : vector<8x512xf32> to vector<8x128xf32>
    %cst_27 = arith.constant 5.000000e-01 : f32
    %33 = vector.broadcast %cst_27 : f32 to vector<8x128xf32>
    %34 = arith.mulf %33, %32 : vector<8x128xf32>
    %35 = math.tanh %34 : vector<8x128xf32>
    %cst_28 = arith.constant 5.000000e-01 : f32
    %36 = vector.broadcast %cst_28 : f32 to vector<8x128xf32>
    %37 = arith.mulf %36, %35 : vector<8x128xf32>
    %cst_29 = arith.constant 5.000000e-01 : f32
    %38 = vector.broadcast %cst_29 : f32 to vector<8x128xf32>
    %39 = arith.addf %37, %38 : vector<8x128xf32>
    %40 = vector.extract_strided_slice %23 {offsets = [0, 256], sizes = [8, 128], strides = [1, 1]} : vector<8x512xf32> to vector<8x128xf32>
    %41 = math.tanh %40 : vector<8x128xf32>
    %42 = vector.extract_strided_slice %23 {offsets = [0, 384], sizes = [8, 128], strides = [1, 1]} : vector<8x512xf32> to vector<8x128xf32>
    %cst_30 = arith.constant 5.000000e-01 : f32
    %43 = vector.broadcast %cst_30 : f32 to vector<8x128xf32>
    %44 = arith.mulf %43, %42 : vector<8x128xf32>
    %45 = math.tanh %44 : vector<8x128xf32>
    %cst_31 = arith.constant 5.000000e-01 : f32
    %46 = vector.broadcast %cst_31 : f32 to vector<8x128xf32>
    %47 = arith.mulf %46, %45 : vector<8x128xf32>
    %cst_32 = arith.constant 5.000000e-01 : f32
    %48 = vector.broadcast %cst_32 : f32 to vector<8x128xf32>
    %49 = arith.addf %47, %48 : vector<8x128xf32>
    %50 = arith.mulf %39, %17 : vector<8x128xf32>
    %51 = arith.mulf %31, %41 : vector<8x128xf32>
    %52 = arith.addf %50, %51 : vector<8x128xf32>
    %53 = math.tanh %52 : vector<8x128xf32>
    %54 = arith.mulf %49, %53 : vector<8x128xf32>
    %55 = arith.index_cast %c0_i32_18 : i32 to index
    %c0_33 = arith.constant 0 : index
    %c0_34 = arith.constant 0 : index
    %56 = vector.load %arg17[%55, %c0_33, %c0_34] : memref<8x8x128xf32, #tpu.memory_space<vmem>>, vector<1x8x128xf32>
    %57 = vector.shape_cast %56 : vector<1x8x128xf32> to vector<8x128xf32>
    %58 = vector.shape_cast %54 : vector<8x128xf32> to vector<1x8x128xf32>
    tpu.vector_store %arg17[%55, %c0_33, %c0_34], %58 {strides = array<i32>} : memref<8x8x128xf32, #tpu.memory_space<vmem>>, vector<1x8x128xf32>,
    %c1_i32 = arith.constant 1 : i32
    %59 = arith.index_cast %c1_i32 : i32 to index
    %c0_35 = arith.constant 0 : index
    %c0_36 = arith.constant 0 : index
    %60 = vector.load %arg16[%59, %c0_35, %c0_36] : memref<8x8x512xf32, #tpu.memory_space<vmem>>, vector<1x8x512xf32>
    %61 = vector.shape_cast %60 : vector<1x8x512xf32> to vector<8x512xf32>
    %c0_37 = arith.constant 0 : index
    %c0_38 = arith.constant 0 : index
    %62 = vector.load %arg5[%c0_37, %c0_38] : memref<128x512xf32, #tpu.memory_space<vmem>>, vector<128x512xf32>
    %cst_39 = arith.constant dense<0.000000e+00> : vector<8x512xf32>
    %63 = tpu.matmul %54, %62, %cst_39 {dimension_numbers = #tpu.dot_dimension_numbers<[1], [0], [0], [1], [0, 0, 1, 1], [], []>} : vector<8x128xf32>, vector<128x512xf32>, vector<8x512xf32> -> vector<8x512xf32>
    %64 = arith.addf %61, %63 : vector<8x512xf32>
    %65 = vector.extract_strided_slice %64 {offsets = [0, 0], sizes = [8, 128], strides = [1, 1]} : vector<8x512xf32> to vector<8x128xf32>
    %cst_40 = arith.constant 5.000000e-01 : f32
    %66 = vector.broadcast %cst_40 : f32 to vector<8x128xf32>
    %67 = arith.mulf %66, %65 : vector<8x128xf32>
    %68 = math.tanh %67 : vector<8x128xf32>
    %cst_41 = arith.constant 5.000000e-01 : f32
    %69 = vector.broadcast %cst_41 : f32 to vector<8x128xf32>
    %70 = arith.mulf %69, %68 : vector<8x128xf32>
    %cst_42 = arith.constant 5.000000e-01 : f32
    %71 = vector.broadcast %cst_42 : f32 to vector<8x128xf32>
    %72 = arith.addf %70, %71 : vector<8x128xf32>
    %73 = vector.extract_strided_slice %64 {offsets = [0, 128], sizes = [8, 128], strides = [1, 1]} : vector<8x512xf32> to vector<8x128xf32>
    %cst_43 = arith.constant 5.000000e-01 : f32
    %74 = vector.broadcast %cst_43 : f32 to vector<8x128xf32>
    %75 = arith.mulf %74, %73 : vector<8x128xf32>
    %76 = math.tanh %75 : vector<8x128xf32>
    %cst_44 = arith.constant 5.000000e-01 : f32
    %77 = vector.broadcast %cst_44 : f32 to vector<8x128xf32>
    %78 = arith.mulf %77, %76 : vector<8x128xf32>
    %cst_45 = arith.constant 5.000000e-01 : f32
    %79 = vector.broadcast %cst_45 : f32 to vector<8x128xf32>
    %80 = arith.addf %78, %79 : vector<8x128xf32>
    %81 = vector.extract_strided_slice %64 {offsets = [0, 256], sizes = [8, 128], strides = [1, 1]} : vector<8x512xf32> to vector<8x128xf32>
    %82 = math.tanh %81 : vector<8x128xf32>
    %83 = vector.extract_strided_slice %64 {offsets = [0, 384], sizes = [8, 128], strides = [1, 1]} : vector<8x512xf32> to vector<8x128xf32>
    %cst_46 = arith.constant 5.000000e-01 : f32
    %84 = vector.broadcast %cst_46 : f32 to vector<8x128xf32>
    %85 = arith.mulf %84, %83 : vector<8x128xf32>
    %86 = math.tanh %85 : vector<8x128xf32>
    %cst_47 = arith.constant 5.000000e-01 : f32
    %87 = vector.broadcast %cst_47 : f32 to vector<8x128xf32>
    %88 = arith.mulf %87, %86 : vector<8x128xf32>
    %cst_48 = arith.constant 5.000000e-01 : f32
    %89 = vector.broadcast %cst_48 : f32 to vector<8x128xf32>
    %90 = arith.addf %88, %89 : vector<8x128xf32>
    %91 = arith.mulf %80, %52 : vector<8x128xf32>
    %92 = arith.mulf %72, %82 : vector<8x128xf32>
    %93 = arith.addf %91, %92 : vector<8x128xf32>
    %94 = math.tanh %93 : vector<8x128xf32>
    %95 = arith.mulf %90, %94 : vector<8x128xf32>
    %96 = arith.index_cast %c1_i32 : i32 to index
    %c0_49 = arith.constant 0 : index
    %c0_50 = arith.constant 0 : index
    %97 = vector.load %arg17[%96, %c0_49, %c0_50] : memref<8x8x128xf32, #tpu.memory_space<vmem>>, vector<1x8x128xf32>
    %98 = vector.shape_cast %97 : vector<1x8x128xf32> to vector<8x128xf32>
    %99 = vector.shape_cast %95 : vector<8x128xf32> to vector<1x8x128xf32>
    tpu.vector_store %arg17[%96, %c0_49, %c0_50], %99 {strides = array<i32>} : memref<8x8x128xf32, #tpu.memory_space<vmem>>, vector<1x8x128xf32>,
    %c2_i32 = arith.constant 2 : i32
    %100 = arith.index_cast %c2_i32 : i32 to index
    %c0_51 = arith.constant 0 : index
    %c0_52 = arith.constant 0 : index
    %101 = vector.load %arg16[%100, %c0_51, %c0_52] : memref<8x8x512xf32, #tpu.memory_space<vmem>>, vector<1x8x512xf32>
    %102 = vector.shape_cast %101 : vector<1x8x512xf32> to vector<8x512xf32>
    %c0_53 = arith.constant 0 : index
    %c0_54 = arith.constant 0 : index
    %103 = vector.load %arg5[%c0_53, %c0_54] : memref<128x512xf32, #tpu.memory_space<vmem>>, vector<128x512xf32>
    %cst_55 = arith.constant dense<0.000000e+00> : vector<8x512xf32>
    %104 = tpu.matmul %95, %103, %cst_55 {dimension_numbers = #tpu.dot_dimension_numbers<[1], [0], [0], [1], [0, 0, 1, 1], [], []>} : vector<8x128xf32>, vector<128x512xf32>, vector<8x512xf32> -> vector<8x512xf32>
    %105 = arith.addf %102, %104 : vector<8x512xf32>
    %106 = vector.extract_strided_slice %105 {offsets = [0, 0], sizes = [8, 128], strides = [1, 1]} : vector<8x512xf32> to vector<8x128xf32>
    %cst_56 = arith.constant 5.000000e-01 : f32
    %107 = vector.broadcast %cst_56 : f32 to vector<8x128xf32>
    %108 = arith.mulf %107, %106 : vector<8x128xf32>
    %109 = math.tanh %108 : vector<8x128xf32>
    %cst_57 = arith.constant 5.000000e-01 : f32
    %110 = vector.broadcast %cst_57 : f32 to vector<8x128xf32>
    %111 = arith.mulf %110, %109 : vector<8x128xf32>
    %cst_58 = arith.constant 5.000000e-01 : f32
    %112 = vector.broadcast %cst_58 : f32 to vector<8x128xf32>
    %113 = arith.addf %111, %112 : vector<8x128xf32>
    %114 = vector.extract_strided_slice %105 {offsets = [0, 128], sizes = [8, 128], strides = [1, 1]} : vector<8x512xf32> to vector<8x128xf32>
    %cst_59 = arith.constant 5.000000e-01 : f32
    %115 = vector.broadcast %cst_59 : f32 to vector<8x128xf32>
    %116 = arith.mulf %115, %114 : vector<8x128xf32>
    %117 = math.tanh %116 : vector<8x128xf32>
    %cst_60 = arith.constant 5.000000e-01 : f32
    %118 = vector.broadcast %cst_60 : f32 to vector<8x128xf32>
    %119 = arith.mulf %118, %117 : vector<8x128xf32>
    %cst_61 = arith.constant 5.000000e-01 : f32
    %120 = vector.broadcast %cst_61 : f32 to vector<8x128xf32>
    %121 = arith.addf %119, %120 : vector<8x128xf32>
    %122 = vector.extract_strided_slice %105 {offsets = [0, 256], sizes = [8, 128], strides = [1, 1]} : vector<8x512xf32> to vector<8x128xf32>
    %123 = math.tanh %122 : vector<8x128xf32>
    %124 = vector.extract_strided_slice %105 {offsets = [0, 384], sizes = [8, 128], strides = [1, 1]} : vector<8x512xf32> to vector<8x128xf32>
    %cst_62 = arith.constant 5.000000e-01 : f32
    %125 = vector.broadcast %cst_62 : f32 to vector<8x128xf32>
    %126 = arith.mulf %125, %124 : vector<8x128xf32>
    %127 = math.tanh %126 : vector<8x128xf32>
    %cst_63 = arith.constant 5.000000e-01 : f32
    %128 = vector.broadcast %cst_63 : f32 to vector<8x128xf32>
    %129 = arith.mulf %128, %127 : vector<8x128xf32>
    %cst_64 = arith.constant 5.000000e-01 : f32
    %130 = vector.broadcast %cst_64 : f32 to vector<8x128xf32>
    %131 = arith.addf %129, %130 : vector<8x128xf32>
    %132 = arith.mulf %121, %93 : vector<8x128xf32>
    %133 = arith.mulf %113, %123 : vector<8x128xf32>
    %134 = arith.addf %132, %133 : vector<8x128xf32>
    %135 = math.tanh %134 : vector<8x128xf32>
    %136 = arith.mulf %131, %135 : vector<8x128xf32>
    %137 = arith.index_cast %c2_i32 : i32 to index
    %c0_65 = arith.constant 0 : index
    %c0_66 = arith.constant 0 : index
    %138 = vector.load %arg17[%137, %c0_65, %c0_66] : memref<8x8x128xf32, #tpu.memory_space<vmem>>, vector<1x8x128xf32>
    %139 = vector.shape_cast %138 : vector<1x8x128xf32> to vector<8x128xf32>
    %140 = vector.shape_cast %136 : vector<8x128xf32> to vector<1x8x128xf32>
    tpu.vector_store %arg17[%137, %c0_65, %c0_66], %140 {strides = array<i32>} : memref<8x8x128xf32, #tpu.memory_space<vmem>>, vector<1x8x128xf32>,
    %c3_i32 = arith.constant 3 : i32
    %141 = arith.index_cast %c3_i32 : i32 to index
    %c0_67 = arith.constant 0 : index
    %c0_68 = arith.constant 0 : index
    %142 = vector.load %arg16[%141, %c0_67, %c0_68] : memref<8x8x512xf32, #tpu.memory_space<vmem>>, vector<1x8x512xf32>
    %143 = vector.shape_cast %142 : vector<1x8x512xf32> to vector<8x512xf32>
    %c0_69 = arith.constant 0 : index
    %c0_70 = arith.constant 0 : index
    %144 = vector.load %arg5[%c0_69, %c0_70] : memref<128x512xf32, #tpu.memory_space<vmem>>, vector<128x512xf32>
    %cst_71 = arith.constant dense<0.000000e+00> : vector<8x512xf32>
    %145 = tpu.matmul %136, %144, %cst_71 {dimension_numbers = #tpu.dot_dimension_numbers<[1], [0], [0], [1], [0, 0, 1, 1], [], []>} : vector<8x128xf32>, vector<128x512xf32>, vector<8x512xf32> -> vector<8x512xf32>
    %146 = arith.addf %143, %145 : vector<8x512xf32>
    %147 = vector.extract_strided_slice %146 {offsets = [0, 0], sizes = [8, 128], strides = [1, 1]} : vector<8x512xf32> to vector<8x128xf32>
    %cst_72 = arith.constant 5.000000e-01 : f32
    %148 = vector.broadcast %cst_72 : f32 to vector<8x128xf32>
    %149 = arith.mulf %148, %147 : vector<8x128xf32>
    %150 = math.tanh %149 : vector<8x128xf32>
    %cst_73 = arith.constant 5.000000e-01 : f32
    %151 = vector.broadcast %cst_73 : f32 to vector<8x128xf32>
    %152 = arith.mulf %151, %150 : vector<8x128xf32>
    %cst_74 = arith.constant 5.000000e-01 : f32
    %153 = vector.broadcast %cst_74 : f32 to vector<8x128xf32>
    %154 = arith.addf %152, %153 : vector<8x128xf32>
    %155 = vector.extract_strided_slice %146 {offsets = [0, 128], sizes = [8, 128], strides = [1, 1]} : vector<8x512xf32> to vector<8x128xf32>
    %cst_75 = arith.constant 5.000000e-01 : f32
    %156 = vector.broadcast %cst_75 : f32 to vector<8x128xf32>
    %157 = arith.mulf %156, %155 : vector<8x128xf32>
    %158 = math.tanh %157 : vector<8x128xf32>
    %cst_76 = arith.constant 5.000000e-01 : f32
    %159 = vector.broadcast %cst_76 : f32 to vector<8x128xf32>
    %160 = arith.mulf %159, %158 : vector<8x128xf32>
    %cst_77 = arith.constant 5.000000e-01 : f32
    %161 = vector.broadcast %cst_77 : f32 to vector<8x128xf32>
    %162 = arith.addf %160, %161 : vector<8x128xf32>
    %163 = vector.extract_strided_slice %146 {offsets = [0, 256], sizes = [8, 128], strides = [1, 1]} : vector<8x512xf32> to vector<8x128xf32>
    %164 = math.tanh %163 : vector<8x128xf32>
    %165 = vector.extract_strided_slice %146 {offsets = [0, 384], sizes = [8, 128], strides = [1, 1]} : vector<8x512xf32> to vector<8x128xf32>
    %cst_78 = arith.constant 5.000000e-01 : f32
    %166 = vector.broadcast %cst_78 : f32 to vector<8x128xf32>
    %167 = arith.mulf %166, %165 : vector<8x128xf32>
    %168 = math.tanh %167 : vector<8x128xf32>
    %cst_79 = arith.constant 5.000000e-01 : f32
    %169 = vector.broadcast %cst_79 : f32 to vector<8x128xf32>
    %170 = arith.mulf %169, %168 : vector<8x128xf32>
    %cst_80 = arith.constant 5.000000e-01 : f32
    %171 = vector.broadcast %cst_80 : f32 to vector<8x128xf32>
    %172 = arith.addf %170, %171 : vector<8x128xf32>
    %173 = arith.mulf %162, %134 : vector<8x128xf32>
    %174 = arith.mulf %154, %164 : vector<8x128xf32>
    %175 = arith.addf %173, %174 : vector<8x128xf32>
    %176 = math.tanh %175 : vector<8x128xf32>
    %177 = arith.mulf %172, %176 : vector<8x128xf32>
    %178 = arith.index_cast %c3_i32 : i32 to index
    %c0_81 = arith.constant 0 : index
    %c0_82 = arith.constant 0 : index
    %179 = vector.load %arg17[%178, %c0_81, %c0_82] : memref<8x8x128xf32, #tpu.memory_space<vmem>>, vector<1x8x128xf32>
    %180 = vector.shape_cast %179 : vector<1x8x128xf32> to vector<8x128xf32>
    %181 = vector.shape_cast %177 : vector<8x128xf32> to vector<1x8x128xf32>
    tpu.vector_store %arg17[%178, %c0_81, %c0_82], %181 {strides = array<i32>} : memref<8x8x128xf32, #tpu.memory_space<vmem>>, vector<1x8x128xf32>,
    %c4_i32 = arith.constant 4 : i32
    %182 = arith.index_cast %c4_i32 : i32 to index
    %c0_83 = arith.constant 0 : index
    %c0_84 = arith.constant 0 : index
    %183 = vector.load %arg16[%182, %c0_83, %c0_84] : memref<8x8x512xf32, #tpu.memory_space<vmem>>, vector<1x8x512xf32>
    %184 = vector.shape_cast %183 : vector<1x8x512xf32> to vector<8x512xf32>
    %c0_85 = arith.constant 0 : index
    %c0_86 = arith.constant 0 : index
    %185 = vector.load %arg5[%c0_85, %c0_86] : memref<128x512xf32, #tpu.memory_space<vmem>>, vector<128x512xf32>
    %cst_87 = arith.constant dense<0.000000e+00> : vector<8x512xf32>
    %186 = tpu.matmul %177, %185, %cst_87 {dimension_numbers = #tpu.dot_dimension_numbers<[1], [0], [0], [1], [0, 0, 1, 1], [], []>} : vector<8x128xf32>, vector<128x512xf32>, vector<8x512xf32> -> vector<8x512xf32>
    %187 = arith.addf %184, %186 : vector<8x512xf32>
    %188 = vector.extract_strided_slice %187 {offsets = [0, 0], sizes = [8, 128], strides = [1, 1]} : vector<8x512xf32> to vector<8x128xf32>
    %cst_88 = arith.constant 5.000000e-01 : f32
    %189 = vector.broadcast %cst_88 : f32 to vector<8x128xf32>
    %190 = arith.mulf %189, %188 : vector<8x128xf32>
    %191 = math.tanh %190 : vector<8x128xf32>
    %cst_89 = arith.constant 5.000000e-01 : f32
    %192 = vector.broadcast %cst_89 : f32 to vector<8x128xf32>
    %193 = arith.mulf %192, %191 : vector<8x128xf32>
    %cst_90 = arith.constant 5.000000e-01 : f32
    %194 = vector.broadcast %cst_90 : f32 to vector<8x128xf32>
    %195 = arith.addf %193, %194 : vector<8x128xf32>
    %196 = vector.extract_strided_slice %187 {offsets = [0, 128], sizes = [8, 128], strides = [1, 1]} : vector<8x512xf32> to vector<8x128xf32>
    %cst_91 = arith.constant 5.000000e-01 : f32
    %197 = vector.broadcast %cst_91 : f32 to vector<8x128xf32>
    %198 = arith.mulf %197, %196 : vector<8x128xf32>
    %199 = math.tanh %198 : vector<8x128xf32>
    %cst_92 = arith.constant 5.000000e-01 : f32
    %200 = vector.broadcast %cst_92 : f32 to vector<8x128xf32>
    %201 = arith.mulf %200, %199 : vector<8x128xf32>
    %cst_93 = arith.constant 5.000000e-01 : f32
    %202 = vector.broadcast %cst_93 : f32 to vector<8x128xf32>
    %203 = arith.addf %201, %202 : vector<8x128xf32>
    %204 = vector.extract_strided_slice %187 {offsets = [0, 256], sizes = [8, 128], strides = [1, 1]} : vector<8x512xf32> to vector<8x128xf32>
    %205 = math.tanh %204 : vector<8x128xf32>
    %206 = vector.extract_strided_slice %187 {offsets = [0, 384], sizes = [8, 128], strides = [1, 1]} : vector<8x512xf32> to vector<8x128xf32>
    %cst_94 = arith.constant 5.000000e-01 : f32
    %207 = vector.broadcast %cst_94 : f32 to vector<8x128xf32>
    %208 = arith.mulf %207, %206 : vector<8x128xf32>
    %209 = math.tanh %208 : vector<8x128xf32>
    %cst_95 = arith.constant 5.000000e-01 : f32
    %210 = vector.broadcast %cst_95 : f32 to vector<8x128xf32>
    %211 = arith.mulf %210, %209 : vector<8x128xf32>
    %cst_96 = arith.constant 5.000000e-01 : f32
    %212 = vector.broadcast %cst_96 : f32 to vector<8x128xf32>
    %213 = arith.addf %211, %212 : vector<8x128xf32>
    %214 = arith.mulf %203, %175 : vector<8x128xf32>
    %215 = arith.mulf %195, %205 : vector<8x128xf32>
    %216 = arith.addf %214, %215 : vector<8x128xf32>
    %217 = math.tanh %216 : vector<8x128xf32>
    %218 = arith.mulf %213, %217 : vector<8x128xf32>
    %219 = arith.index_cast %c4_i32 : i32 to index
    %c0_97 = arith.constant 0 : index
    %c0_98 = arith.constant 0 : index
    %220 = vector.load %arg17[%219, %c0_97, %c0_98] : memref<8x8x128xf32, #tpu.memory_space<vmem>>, vector<1x8x128xf32>
    %221 = vector.shape_cast %220 : vector<1x8x128xf32> to vector<8x128xf32>
    %222 = vector.shape_cast %218 : vector<8x128xf32> to vector<1x8x128xf32>
    tpu.vector_store %arg17[%219, %c0_97, %c0_98], %222 {strides = array<i32>} : memref<8x8x128xf32, #tpu.memory_space<vmem>>, vector<1x8x128xf32>,
    %c5_i32 = arith.constant 5 : i32
    %223 = arith.index_cast %c5_i32 : i32 to index
    %c0_99 = arith.constant 0 : index
    %c0_100 = arith.constant 0 : index
    %224 = vector.load %arg16[%223, %c0_99, %c0_100] : memref<8x8x512xf32, #tpu.memory_space<vmem>>, vector<1x8x512xf32>
    %225 = vector.shape_cast %224 : vector<1x8x512xf32> to vector<8x512xf32>
    %c0_101 = arith.constant 0 : index
    %c0_102 = arith.constant 0 : index
    %226 = vector.load %arg5[%c0_101, %c0_102] : memref<128x512xf32, #tpu.memory_space<vmem>>, vector<128x512xf32>
    %cst_103 = arith.constant dense<0.000000e+00> : vector<8x512xf32>
    %227 = tpu.matmul %218, %226, %cst_103 {dimension_numbers = #tpu.dot_dimension_numbers<[1], [0], [0], [1], [0, 0, 1, 1], [], []>} : vector<8x128xf32>, vector<128x512xf32>, vector<8x512xf32> -> vector<8x512xf32>
    %228 = arith.addf %225, %227 : vector<8x512xf32>
    %229 = vector.extract_strided_slice %228 {offsets = [0, 0], sizes = [8, 128], strides = [1, 1]} : vector<8x512xf32> to vector<8x128xf32>
    %cst_104 = arith.constant 5.000000e-01 : f32
    %230 = vector.broadcast %cst_104 : f32 to vector<8x128xf32>
    %231 = arith.mulf %230, %229 : vector<8x128xf32>
    %232 = math.tanh %231 : vector<8x128xf32>
    %cst_105 = arith.constant 5.000000e-01 : f32
    %233 = vector.broadcast %cst_105 : f32 to vector<8x128xf32>
    %234 = arith.mulf %233, %232 : vector<8x128xf32>
    %cst_106 = arith.constant 5.000000e-01 : f32
    %235 = vector.broadcast %cst_106 : f32 to vector<8x128xf32>
    %236 = arith.addf %234, %235 : vector<8x128xf32>
    %237 = vector.extract_strided_slice %228 {offsets = [0, 128], sizes = [8, 128], strides = [1, 1]} : vector<8x512xf32> to vector<8x128xf32>
    %cst_107 = arith.constant 5.000000e-01 : f32
    %238 = vector.broadcast %cst_107 : f32 to vector<8x128xf32>
    %239 = arith.mulf %238, %237 : vector<8x128xf32>
    %240 = math.tanh %239 : vector<8x128xf32>
    %cst_108 = arith.constant 5.000000e-01 : f32
    %241 = vector.broadcast %cst_108 : f32 to vector<8x128xf32>
    %242 = arith.mulf %241, %240 : vector<8x128xf32>
    %cst_109 = arith.constant 5.000000e-01 : f32
    %243 = vector.broadcast %cst_109 : f32 to vector<8x128xf32>
    %244 = arith.addf %242, %243 : vector<8x128xf32>
    %245 = vector.extract_strided_slice %228 {offsets = [0, 256], sizes = [8, 128], strides = [1, 1]} : vector<8x512xf32> to vector<8x128xf32>
    %246 = math.tanh %245 : vector<8x128xf32>
    %247 = vector.extract_strided_slice %228 {offsets = [0, 384], sizes = [8, 128], strides = [1, 1]} : vector<8x512xf32> to vector<8x128xf32>
    %cst_110 = arith.constant 5.000000e-01 : f32
    %248 = vector.broadcast %cst_110 : f32 to vector<8x128xf32>
    %249 = arith.mulf %248, %247 : vector<8x128xf32>
    %250 = math.tanh %249 : vector<8x128xf32>
    %cst_111 = arith.constant 5.000000e-01 : f32
    %251 = vector.broadcast %cst_111 : f32 to vector<8x128xf32>
    %252 = arith.mulf %251, %250 : vector<8x128xf32>
    %cst_112 = arith.constant 5.000000e-01 : f32
    %253 = vector.broadcast %cst_112 : f32 to vector<8x128xf32>
    %254 = arith.addf %252, %253 : vector<8x128xf32>
    %255 = arith.mulf %244, %216 : vector<8x128xf32>
    %256 = arith.mulf %236, %246 : vector<8x128xf32>
    %257 = arith.addf %255, %256 : vector<8x128xf32>
    %258 = math.tanh %257 : vector<8x128xf32>
    %259 = arith.mulf %254, %258 : vector<8x128xf32>
    %260 = arith.index_cast %c5_i32 : i32 to index
    %c0_113 = arith.constant 0 : index
    %c0_114 = arith.constant 0 : index
    %261 = vector.load %arg17[%260, %c0_113, %c0_114] : memref<8x8x128xf32, #tpu.memory_space<vmem>>, vector<1x8x128xf32>
    %262 = vector.shape_cast %261 : vector<1x8x128xf32> to vector<8x128xf32>
    %263 = vector.shape_cast %259 : vector<8x128xf32> to vector<1x8x128xf32>
    tpu.vector_store %arg17[%260, %c0_113, %c0_114], %263 {strides = array<i32>} : memref<8x8x128xf32, #tpu.memory_space<vmem>>, vector<1x8x128xf32>,
    %c6_i32 = arith.constant 6 : i32
    %264 = arith.index_cast %c6_i32 : i32 to index
    %c0_115 = arith.constant 0 : index
    %c0_116 = arith.constant 0 : index
    %265 = vector.load %arg16[%264, %c0_115, %c0_116] : memref<8x8x512xf32, #tpu.memory_space<vmem>>, vector<1x8x512xf32>
    %266 = vector.shape_cast %265 : vector<1x8x512xf32> to vector<8x512xf32>
    %c0_117 = arith.constant 0 : index
    %c0_118 = arith.constant 0 : index
    %267 = vector.load %arg5[%c0_117, %c0_118] : memref<128x512xf32, #tpu.memory_space<vmem>>, vector<128x512xf32>
    %cst_119 = arith.constant dense<0.000000e+00> : vector<8x512xf32>
    %268 = tpu.matmul %259, %267, %cst_119 {dimension_numbers = #tpu.dot_dimension_numbers<[1], [0], [0], [1], [0, 0, 1, 1], [], []>} : vector<8x128xf32>, vector<128x512xf32>, vector<8x512xf32> -> vector<8x512xf32>
    %269 = arith.addf %266, %268 : vector<8x512xf32>
    %270 = vector.extract_strided_slice %269 {offsets = [0, 0], sizes = [8, 128], strides = [1, 1]} : vector<8x512xf32> to vector<8x128xf32>
    %cst_120 = arith.constant 5.000000e-01 : f32
    %271 = vector.broadcast %cst_120 : f32 to vector<8x128xf32>
    %272 = arith.mulf %271, %270 : vector<8x128xf32>
    %273 = math.tanh %272 : vector<8x128xf32>
    %cst_121 = arith.constant 5.000000e-01 : f32
    %274 = vector.broadcast %cst_121 : f32 to vector<8x128xf32>
    %275 = arith.mulf %274, %273 : vector<8x128xf32>
    %cst_122 = arith.constant 5.000000e-01 : f32
    %276 = vector.broadcast %cst_122 : f32 to vector<8x128xf32>
    %277 = arith.addf %275, %276 : vector<8x128xf32>
    %278 = vector.extract_strided_slice %269 {offsets = [0, 128], sizes = [8, 128], strides = [1, 1]} : vector<8x512xf32> to vector<8x128xf32>
    %cst_123 = arith.constant 5.000000e-01 : f32
    %279 = vector.broadcast %cst_123 : f32 to vector<8x128xf32>
    %280 = arith.mulf %279, %278 : vector<8x128xf32>
    %281 = math.tanh %280 : vector<8x128xf32>
    %cst_124 = arith.constant 5.000000e-01 : f32
    %282 = vector.broadcast %cst_124 : f32 to vector<8x128xf32>
    %283 = arith.mulf %282, %281 : vector<8x128xf32>
    %cst_125 = arith.constant 5.000000e-01 : f32
    %284 = vector.broadcast %cst_125 : f32 to vector<8x128xf32>
    %285 = arith.addf %283, %284 : vector<8x128xf32>
    %286 = vector.extract_strided_slice %269 {offsets = [0, 256], sizes = [8, 128], strides = [1, 1]} : vector<8x512xf32> to vector<8x128xf32>
    %287 = math.tanh %286 : vector<8x128xf32>
    %288 = vector.extract_strided_slice %269 {offsets = [0, 384], sizes = [8, 128], strides = [1, 1]} : vector<8x512xf32> to vector<8x128xf32>
    %cst_126 = arith.constant 5.000000e-01 : f32
    %289 = vector.broadcast %cst_126 : f32 to vector<8x128xf32>
    %290 = arith.mulf %289, %288 : vector<8x128xf32>
    %291 = math.tanh %290 : vector<8x128xf32>
    %cst_127 = arith.constant 5.000000e-01 : f32
    %292 = vector.broadcast %cst_127 : f32 to vector<8x128xf32>
    %293 = arith.mulf %292, %291 : vector<8x128xf32>
    %cst_128 = arith.constant 5.000000e-01 : f32
    %294 = vector.broadcast %cst_128 : f32 to vector<8x128xf32>
    %295 = arith.addf %293, %294 : vector<8x128xf32>
    %296 = arith.mulf %285, %257 : vector<8x128xf32>
    %297 = arith.mulf %277, %287 : vector<8x128xf32>
    %298 = arith.addf %296, %297 : vector<8x128xf32>
    %299 = math.tanh %298 : vector<8x128xf32>
    %300 = arith.mulf %295, %299 : vector<8x128xf32>
    %301 = arith.index_cast %c6_i32 : i32 to index
    %c0_129 = arith.constant 0 : index
    %c0_130 = arith.constant 0 : index
    %302 = vector.load %arg17[%301, %c0_129, %c0_130] : memref<8x8x128xf32, #tpu.memory_space<vmem>>, vector<1x8x128xf32>
    %303 = vector.shape_cast %302 : vector<1x8x128xf32> to vector<8x128xf32>
    %304 = vector.shape_cast %300 : vector<8x128xf32> to vector<1x8x128xf32>
    tpu.vector_store %arg17[%301, %c0_129, %c0_130], %304 {strides = array<i32>} : memref<8x8x128xf32, #tpu.memory_space<vmem>>, vector<1x8x128xf32>,
    %c7_i32 = arith.constant 7 : i32
    %305 = arith.index_cast %c7_i32 : i32 to index
    %c0_131 = arith.constant 0 : index
    %c0_132 = arith.constant 0 : index
    %306 = vector.load %arg16[%305, %c0_131, %c0_132] : memref<8x8x512xf32, #tpu.memory_space<vmem>>, vector<1x8x512xf32>
    %307 = vector.shape_cast %306 : vector<1x8x512xf32> to vector<8x512xf32>
    %c0_133 = arith.constant 0 : index
    %c0_134 = arith.constant 0 : index
    %308 = vector.load %arg5[%c0_133, %c0_134] : memref<128x512xf32, #tpu.memory_space<vmem>>, vector<128x512xf32>
    %cst_135 = arith.constant dense<0.000000e+00> : vector<8x512xf32>
    %309 = tpu.matmul %300, %308, %cst_135 {dimension_numbers = #tpu.dot_dimension_numbers<[1], [0], [0], [1], [0, 0, 1, 1], [], []>} : vector<8x128xf32>, vector<128x512xf32>, vector<8x512xf32> -> vector<8x512xf32>
    %310 = arith.addf %307, %309 : vector<8x512xf32>
    %311 = vector.extract_strided_slice %310 {offsets = [0, 0], sizes = [8, 128], strides = [1, 1]} : vector<8x512xf32> to vector<8x128xf32>
    %cst_136 = arith.constant 5.000000e-01 : f32
    %312 = vector.broadcast %cst_136 : f32 to vector<8x128xf32>
    %313 = arith.mulf %312, %311 : vector<8x128xf32>
    %314 = math.tanh %313 : vector<8x128xf32>
    %cst_137 = arith.constant 5.000000e-01 : f32
    %315 = vector.broadcast %cst_137 : f32 to vector<8x128xf32>
    %316 = arith.mulf %315, %314 : vector<8x128xf32>
    %cst_138 = arith.constant 5.000000e-01 : f32
    %317 = vector.broadcast %cst_138 : f32 to vector<8x128xf32>
    %318 = arith.addf %316, %317 : vector<8x128xf32>
    %319 = vector.extract_strided_slice %310 {offsets = [0, 128], sizes = [8, 128], strides = [1, 1]} : vector<8x512xf32> to vector<8x128xf32>
    %cst_139 = arith.constant 5.000000e-01 : f32
    %320 = vector.broadcast %cst_139 : f32 to vector<8x128xf32>
    %321 = arith.mulf %320, %319 : vector<8x128xf32>
    %322 = math.tanh %321 : vector<8x128xf32>
    %cst_140 = arith.constant 5.000000e-01 : f32
    %323 = vector.broadcast %cst_140 : f32 to vector<8x128xf32>
    %324 = arith.mulf %323, %322 : vector<8x128xf32>
    %cst_141 = arith.constant 5.000000e-01 : f32
    %325 = vector.broadcast %cst_141 : f32 to vector<8x128xf32>
    %326 = arith.addf %324, %325 : vector<8x128xf32>
    %327 = vector.extract_strided_slice %310 {offsets = [0, 256], sizes = [8, 128], strides = [1, 1]} : vector<8x512xf32> to vector<8x128xf32>
    %328 = math.tanh %327 : vector<8x128xf32>
    %329 = vector.extract_strided_slice %310 {offsets = [0, 384], sizes = [8, 128], strides = [1, 1]} : vector<8x512xf32> to vector<8x128xf32>
    %cst_142 = arith.constant 5.000000e-01 : f32
    %330 = vector.broadcast %cst_142 : f32 to vector<8x128xf32>
    %331 = arith.mulf %330, %329 : vector<8x128xf32>
    %332 = math.tanh %331 : vector<8x128xf32>
    %cst_143 = arith.constant 5.000000e-01 : f32
    %333 = vector.broadcast %cst_143 : f32 to vector<8x128xf32>
    %334 = arith.mulf %333, %332 : vector<8x128xf32>
    %cst_144 = arith.constant 5.000000e-01 : f32
    %335 = vector.broadcast %cst_144 : f32 to vector<8x128xf32>
    %336 = arith.addf %334, %335 : vector<8x128xf32>
    %337 = arith.mulf %326, %298 : vector<8x128xf32>
    %338 = arith.mulf %318, %328 : vector<8x128xf32>
    %339 = arith.addf %337, %338 : vector<8x128xf32>
    %340 = math.tanh %339 : vector<8x128xf32>
    %341 = arith.mulf %336, %340 : vector<8x128xf32>
    %342 = arith.index_cast %c7_i32 : i32 to index
    %c0_145 = arith.constant 0 : index
    %c0_146 = arith.constant 0 : index
    %343 = vector.load %arg17[%342, %c0_145, %c0_146] : memref<8x8x128xf32, #tpu.memory_space<vmem>>, vector<1x8x128xf32>
    %344 = vector.shape_cast %343 : vector<1x8x128xf32> to vector<8x128xf32>
    %345 = vector.shape_cast %341 : vector<8x128xf32> to vector<1x8x128xf32>
    tpu.vector_store %arg17[%342, %c0_145, %c0_146], %345 {strides = array<i32>} : memref<8x8x128xf32, #tpu.memory_space<vmem>>, vector<1x8x128xf32>,
    %c8_i32_147 = arith.constant 8 : i32
    %c0_148 = arith.constant 0 : index
    %c0_149 = arith.constant 0 : index
    %c0_150 = arith.constant 0 : index
    %346 = vector.load %arg13[%c0_148, %c0_149, %c0_150] : memref<2x8x128xf32, #tpu.memory_space<vmem>>, vector<1x8x128xf32>
    %347 = vector.shape_cast %346 : vector<1x8x128xf32> to vector<8x128xf32>
    %348 = vector.shape_cast %341 : vector<8x128xf32> to vector<1x8x128xf32>
    tpu.vector_store %arg13[%c0_148, %c0_149, %c0_150], %348 {strides = array<i32>} : memref<2x8x128xf32, #tpu.memory_space<vmem>>, vector<1x8x128xf32>,
    %c0_151 = arith.constant 0 : index
    %c0_152 = arith.constant 0 : index
    %c0_153 = arith.constant 0 : index
    %349 = vector.load %arg14[%c0_151, %c0_152, %c0_153] : memref<2x8x128xf32, #tpu.memory_space<vmem>>, vector<1x8x128xf32>
    %350 = vector.shape_cast %349 : vector<1x8x128xf32> to vector<8x128xf32>
    %351 = vector.shape_cast %339 : vector<8x128xf32> to vector<1x8x128xf32>
    tpu.vector_store %arg14[%c0_151, %c0_152, %c0_153], %351 {strides = array<i32>} : memref<2x8x128xf32, #tpu.memory_space<vmem>>, vector<1x8x128xf32>,
    %c0_154 = arith.constant 0 : index
    %c0_155 = arith.constant 0 : index
    %c0_156 = arith.constant 0 : index
    %352 = vector.load %arg17[%c0_154, %c0_155, %c0_156] : memref<8x8x128xf32, #tpu.memory_space<vmem>>, vector<8x8x128xf32>
    %353 = vector.shape_cast %352 : vector<8x8x128xf32> to vector<64x128xf32>
    %c0_157 = arith.constant 0 : index
    %c0_158 = arith.constant 0 : index
    %354 = vector.load %arg7[%c0_157, %c0_158] : memref<128x512xf32, #tpu.memory_space<vmem>>, vector<128x512xf32>
    %cst_159 = arith.constant dense<0.000000e+00> : vector<64x512xf32>
    %355 = tpu.matmul %353, %354, %cst_159 {dimension_numbers = #tpu.dot_dimension_numbers<[1], [0], [0], [1], [0, 0, 1, 1], [], []>} : vector<64x128xf32>, vector<128x512xf32>, vector<64x512xf32> -> vector<64x512xf32>
    %c0_160 = arith.constant 0 : index
    %c0_161 = arith.constant 0 : index
    %356 = vector.load %arg9[%c0_160, %c0_161] : memref<1x512xf32, #tpu.memory_space<vmem>>, vector<1x512xf32>
    %357 = vector.broadcast %356 : vector<1x512xf32> to vector<64x512xf32>
    %358 = arith.addf %355, %357 : vector<64x512xf32>
    %359 = vector.shape_cast %358 : vector<64x512xf32> to vector<8x8x512xf32>
    %c0_162 = arith.constant 0 : index
    %c0_163 = arith.constant 0 : index
    %c0_164 = arith.constant 0 : index
    %360 = vector.load %arg16[%c0_162, %c0_163, %c0_164] : memref<8x8x512xf32, #tpu.memory_space<vmem>>, vector<8x8x512xf32>
    tpu.vector_store %arg16[%c0_162, %c0_163, %c0_164], %359 {strides = array<i32>} : memref<8x8x512xf32, #tpu.memory_space<vmem>>, vector<8x8x512xf32>,
    %c1 = arith.constant 1 : index
    %c0_165 = arith.constant 0 : index
    %c0_166 = arith.constant 0 : index
    %361 = vector.load %arg13[%c1, %c0_165, %c0_166] : memref<2x8x128xf32, #tpu.memory_space<vmem>>, vector<1x8x128xf32>
    %362 = vector.shape_cast %361 : vector<1x8x128xf32> to vector<8x128xf32>
    %c1_167 = arith.constant 1 : index
    %c0_168 = arith.constant 0 : index
    %c0_169 = arith.constant 0 : index
    %363 = vector.load %arg14[%c1_167, %c0_168, %c0_169] : memref<2x8x128xf32, #tpu.memory_space<vmem>>, vector<1x8x128xf32>
    %364 = vector.shape_cast %363 : vector<1x8x128xf32> to vector<8x128xf32>
    %c0_170 = arith.constant 0 : index
    %c0_171 = arith.constant 0 : index
    %365 = vector.load %arg15[%c0_170, %c0_171] : memref<8x128xf32, #tpu.memory_space<vmem>>, vector<8x128xf32>
    %c0_i32_172 = arith.constant 0 : i32
    %366 = arith.index_cast %c0_i32_172 : i32 to index
    %c0_173 = arith.constant 0 : index
    %c0_174 = arith.constant 0 : index
    %367 = vector.load %arg16[%366, %c0_173, %c0_174] : memref<8x8x512xf32, #tpu.memory_space<vmem>>, vector<1x8x512xf32>
    %368 = vector.shape_cast %367 : vector<1x8x512xf32> to vector<8x512xf32>
    %c0_175 = arith.constant 0 : index
    %c0_176 = arith.constant 0 : index
    %369 = vector.load %arg8[%c0_175, %c0_176] : memref<128x512xf32, #tpu.memory_space<vmem>>, vector<128x512xf32>
    %cst_177 = arith.constant dense<0.000000e+00> : vector<8x512xf32>
    %370 = tpu.matmul %362, %369, %cst_177 {dimension_numbers = #tpu.dot_dimension_numbers<[1], [0], [0], [1], [0, 0, 1, 1], [], []>} : vector<8x128xf32>, vector<128x512xf32>, vector<8x512xf32> -> vector<8x512xf32>
    %371 = arith.addf %368, %370 : vector<8x512xf32>
    %372 = vector.extract_strided_slice %371 {offsets = [0, 0], sizes = [8, 128], strides = [1, 1]} : vector<8x512xf32> to vector<8x128xf32>
    %cst_178 = arith.constant 5.000000e-01 : f32
    %373 = vector.broadcast %cst_178 : f32 to vector<8x128xf32>
    %374 = arith.mulf %373, %372 : vector<8x128xf32>
    %375 = math.tanh %374 : vector<8x128xf32>
    %cst_179 = arith.constant 5.000000e-01 : f32
    %376 = vector.broadcast %cst_179 : f32 to vector<8x128xf32>
    %377 = arith.mulf %376, %375 : vector<8x128xf32>
    %cst_180 = arith.constant 5.000000e-01 : f32
    %378 = vector.broadcast %cst_180 : f32 to vector<8x128xf32>
    %379 = arith.addf %377, %378 : vector<8x128xf32>
    %380 = vector.extract_strided_slice %371 {offsets = [0, 128], sizes = [8, 128], strides = [1, 1]} : vector<8x512xf32> to vector<8x128xf32>
    %cst_181 = arith.constant 5.000000e-01 : f32
    %381 = vector.broadcast %cst_181 : f32 to vector<8x128xf32>
    %382 = arith.mulf %381, %380 : vector<8x128xf32>
    %383 = math.tanh %382 : vector<8x128xf32>
    %cst_182 = arith.constant 5.000000e-01 : f32
    %384 = vector.broadcast %cst_182 : f32 to vector<8x128xf32>
    %385 = arith.mulf %384, %383 : vector<8x128xf32>
    %cst_183 = arith.constant 5.000000e-01 : f32
    %386 = vector.broadcast %cst_183 : f32 to vector<8x128xf32>
    %387 = arith.addf %385, %386 : vector<8x128xf32>
    %388 = vector.extract_strided_slice %371 {offsets = [0, 256], sizes = [8, 128], strides = [1, 1]} : vector<8x512xf32> to vector<8x128xf32>
    %389 = math.tanh %388 : vector<8x128xf32>
    %390 = vector.extract_strided_slice %371 {offsets = [0, 384], sizes = [8, 128], strides = [1, 1]} : vector<8x512xf32> to vector<8x128xf32>
    %cst_184 = arith.constant 5.000000e-01 : f32
    %391 = vector.broadcast %cst_184 : f32 to vector<8x128xf32>
    %392 = arith.mulf %391, %390 : vector<8x128xf32>
    %393 = math.tanh %392 : vector<8x128xf32>
    %cst_185 = arith.constant 5.000000e-01 : f32
    %394 = vector.broadcast %cst_185 : f32 to vector<8x128xf32>
    %395 = arith.mulf %394, %393 : vector<8x128xf32>
    %cst_186 = arith.constant 5.000000e-01 : f32
    %396 = vector.broadcast %cst_186 : f32 to vector<8x128xf32>
    %397 = arith.addf %395, %396 : vector<8x128xf32>
    %398 = arith.mulf %387, %364 : vector<8x128xf32>
    %399 = arith.mulf %379, %389 : vector<8x128xf32>
    %400 = arith.addf %398, %399 : vector<8x128xf32>
    %401 = math.tanh %400 : vector<8x128xf32>
    %402 = arith.mulf %397, %401 : vector<8x128xf32>
    %403 = arith.addi %4, %c0_i32_172 : i32
    %404 = vector.broadcast %403 : i32 to vector<8x1xi32>
    %405 = arith.cmpi slt, %404, %3 : vector<8x1xi32>
    %406 = arith.extui %405 : vector<8x1xi1> to vector<8x1xi32>
    %407 = arith.sitofp %406 : vector<8x1xi32> to vector<8x1xf32>
    %408 = vector.broadcast %407 : vector<8x1xf32> to vector<8x128xf32>
    %409 = arith.mulf %402, %408 : vector<8x128xf32>
    %410 = arith.addf %365, %409 : vector<8x128xf32>
    %c1_i32_187 = arith.constant 1 : i32
    %411 = arith.index_cast %c1_i32_187 : i32 to index
    %c0_188 = arith.constant 0 : index
    %c0_189 = arith.constant 0 : index
    %412 = vector.load %arg16[%411, %c0_188, %c0_189] : memref<8x8x512xf32, #tpu.memory_space<vmem>>, vector<1x8x512xf32>
    %413 = vector.shape_cast %412 : vector<1x8x512xf32> to vector<8x512xf32>
    %c0_190 = arith.constant 0 : index
    %c0_191 = arith.constant 0 : index
    %414 = vector.load %arg8[%c0_190, %c0_191] : memref<128x512xf32, #tpu.memory_space<vmem>>, vector<128x512xf32>
    %cst_192 = arith.constant dense<0.000000e+00> : vector<8x512xf32>
    %415 = tpu.matmul %402, %414, %cst_192 {dimension_numbers = #tpu.dot_dimension_numbers<[1], [0], [0], [1], [0, 0, 1, 1], [], []>} : vector<8x128xf32>, vector<128x512xf32>, vector<8x512xf32> -> vector<8x512xf32>
    %416 = arith.addf %413, %415 : vector<8x512xf32>
    %417 = vector.extract_strided_slice %416 {offsets = [0, 0], sizes = [8, 128], strides = [1, 1]} : vector<8x512xf32> to vector<8x128xf32>
    %cst_193 = arith.constant 5.000000e-01 : f32
    %418 = vector.broadcast %cst_193 : f32 to vector<8x128xf32>
    %419 = arith.mulf %418, %417 : vector<8x128xf32>
    %420 = math.tanh %419 : vector<8x128xf32>
    %cst_194 = arith.constant 5.000000e-01 : f32
    %421 = vector.broadcast %cst_194 : f32 to vector<8x128xf32>
    %422 = arith.mulf %421, %420 : vector<8x128xf32>
    %cst_195 = arith.constant 5.000000e-01 : f32
    %423 = vector.broadcast %cst_195 : f32 to vector<8x128xf32>
    %424 = arith.addf %422, %423 : vector<8x128xf32>
    %425 = vector.extract_strided_slice %416 {offsets = [0, 128], sizes = [8, 128], strides = [1, 1]} : vector<8x512xf32> to vector<8x128xf32>
    %cst_196 = arith.constant 5.000000e-01 : f32
    %426 = vector.broadcast %cst_196 : f32 to vector<8x128xf32>
    %427 = arith.mulf %426, %425 : vector<8x128xf32>
    %428 = math.tanh %427 : vector<8x128xf32>
    %cst_197 = arith.constant 5.000000e-01 : f32
    %429 = vector.broadcast %cst_197 : f32 to vector<8x128xf32>
    %430 = arith.mulf %429, %428 : vector<8x128xf32>
    %cst_198 = arith.constant 5.000000e-01 : f32
    %431 = vector.broadcast %cst_198 : f32 to vector<8x128xf32>
    %432 = arith.addf %430, %431 : vector<8x128xf32>
    %433 = vector.extract_strided_slice %416 {offsets = [0, 256], sizes = [8, 128], strides = [1, 1]} : vector<8x512xf32> to vector<8x128xf32>
    %434 = math.tanh %433 : vector<8x128xf32>
    %435 = vector.extract_strided_slice %416 {offsets = [0, 384], sizes = [8, 128], strides = [1, 1]} : vector<8x512xf32> to vector<8x128xf32>
    %cst_199 = arith.constant 5.000000e-01 : f32
    %436 = vector.broadcast %cst_199 : f32 to vector<8x128xf32>
    %437 = arith.mulf %436, %435 : vector<8x128xf32>
    %438 = math.tanh %437 : vector<8x128xf32>
    %cst_200 = arith.constant 5.000000e-01 : f32
    %439 = vector.broadcast %cst_200 : f32 to vector<8x128xf32>
    %440 = arith.mulf %439, %438 : vector<8x128xf32>
    %cst_201 = arith.constant 5.000000e-01 : f32
    %441 = vector.broadcast %cst_201 : f32 to vector<8x128xf32>
    %442 = arith.addf %440, %441 : vector<8x128xf32>
    %443 = arith.mulf %432, %400 : vector<8x128xf32>
    %444 = arith.mulf %424, %434 : vector<8x128xf32>
    %445 = arith.addf %443, %444 : vector<8x128xf32>
    %446 = math.tanh %445 : vector<8x128xf32>
    %447 = arith.mulf %442, %446 : vector<8x128xf32>
    %448 = arith.addi %4, %c1_i32_187 : i32
    %449 = vector.broadcast %448 : i32 to vector<8x1xi32>
    %450 = arith.cmpi slt, %449, %3 : vector<8x1xi32>
    %451 = arith.extui %450 : vector<8x1xi1> to vector<8x1xi32>
    %452 = arith.sitofp %451 : vector<8x1xi32> to vector<8x1xf32>
    %453 = vector.broadcast %452 : vector<8x1xf32> to vector<8x128xf32>
    %454 = arith.mulf %447, %453 : vector<8x128xf32>
    %455 = arith.addf %410, %454 : vector<8x128xf32>
    %c2_i32_202 = arith.constant 2 : i32
    %456 = arith.index_cast %c2_i32_202 : i32 to index
    %c0_203 = arith.constant 0 : index
    %c0_204 = arith.constant 0 : index
    %457 = vector.load %arg16[%456, %c0_203, %c0_204] : memref<8x8x512xf32, #tpu.memory_space<vmem>>, vector<1x8x512xf32>
    %458 = vector.shape_cast %457 : vector<1x8x512xf32> to vector<8x512xf32>
    %c0_205 = arith.constant 0 : index
    %c0_206 = arith.constant 0 : index
    %459 = vector.load %arg8[%c0_205, %c0_206] : memref<128x512xf32, #tpu.memory_space<vmem>>, vector<128x512xf32>
    %cst_207 = arith.constant dense<0.000000e+00> : vector<8x512xf32>
    %460 = tpu.matmul %447, %459, %cst_207 {dimension_numbers = #tpu.dot_dimension_numbers<[1], [0], [0], [1], [0, 0, 1, 1], [], []>} : vector<8x128xf32>, vector<128x512xf32>, vector<8x512xf32> -> vector<8x512xf32>
    %461 = arith.addf %458, %460 : vector<8x512xf32>
    %462 = vector.extract_strided_slice %461 {offsets = [0, 0], sizes = [8, 128], strides = [1, 1]} : vector<8x512xf32> to vector<8x128xf32>
    %cst_208 = arith.constant 5.000000e-01 : f32
    %463 = vector.broadcast %cst_208 : f32 to vector<8x128xf32>
    %464 = arith.mulf %463, %462 : vector<8x128xf32>
    %465 = math.tanh %464 : vector<8x128xf32>
    %cst_209 = arith.constant 5.000000e-01 : f32
    %466 = vector.broadcast %cst_209 : f32 to vector<8x128xf32>
    %467 = arith.mulf %466, %465 : vector<8x128xf32>
    %cst_210 = arith.constant 5.000000e-01 : f32
    %468 = vector.broadcast %cst_210 : f32 to vector<8x128xf32>
    %469 = arith.addf %467, %468 : vector<8x128xf32>
    %470 = vector.extract_strided_slice %461 {offsets = [0, 128], sizes = [8, 128], strides = [1, 1]} : vector<8x512xf32> to vector<8x128xf32>
    %cst_211 = arith.constant 5.000000e-01 : f32
    %471 = vector.broadcast %cst_211 : f32 to vector<8x128xf32>
    %472 = arith.mulf %471, %470 : vector<8x128xf32>
    %473 = math.tanh %472 : vector<8x128xf32>
    %cst_212 = arith.constant 5.000000e-01 : f32
    %474 = vector.broadcast %cst_212 : f32 to vector<8x128xf32>
    %475 = arith.mulf %474, %473 : vector<8x128xf32>
    %cst_213 = arith.constant 5.000000e-01 : f32
    %476 = vector.broadcast %cst_213 : f32 to vector<8x128xf32>
    %477 = arith.addf %475, %476 : vector<8x128xf32>
    %478 = vector.extract_strided_slice %461 {offsets = [0, 256], sizes = [8, 128], strides = [1, 1]} : vector<8x512xf32> to vector<8x128xf32>
    %479 = math.tanh %478 : vector<8x128xf32>
    %480 = vector.extract_strided_slice %461 {offsets = [0, 384], sizes = [8, 128], strides = [1, 1]} : vector<8x512xf32> to vector<8x128xf32>
    %cst_214 = arith.constant 5.000000e-01 : f32
    %481 = vector.broadcast %cst_214 : f32 to vector<8x128xf32>
    %482 = arith.mulf %481, %480 : vector<8x128xf32>
    %483 = math.tanh %482 : vector<8x128xf32>
    %cst_215 = arith.constant 5.000000e-01 : f32
    %484 = vector.broadcast %cst_215 : f32 to vector<8x128xf32>
    %485 = arith.mulf %484, %483 : vector<8x128xf32>
    %cst_216 = arith.constant 5.000000e-01 : f32
    %486 = vector.broadcast %cst_216 : f32 to vector<8x128xf32>
    %487 = arith.addf %485, %486 : vector<8x128xf32>
    %488 = arith.mulf %477, %445 : vector<8x128xf32>
    %489 = arith.mulf %469, %479 : vector<8x128xf32>
    %490 = arith.addf %488, %489 : vector<8x128xf32>
    %491 = math.tanh %490 : vector<8x128xf32>
    %492 = arith.mulf %487, %491 : vector<8x128xf32>
    %493 = arith.addi %4, %c2_i32_202 : i32
    %494 = vector.broadcast %493 : i32 to vector<8x1xi32>
    %495 = arith.cmpi slt, %494, %3 : vector<8x1xi32>
    %496 = arith.extui %495 : vector<8x1xi1> to vector<8x1xi32>
    %497 = arith.sitofp %496 : vector<8x1xi32> to vector<8x1xf32>
    %498 = vector.broadcast %497 : vector<8x1xf32> to vector<8x128xf32>
    %499 = arith.mulf %492, %498 : vector<8x128xf32>
    %500 = arith.addf %455, %499 : vector<8x128xf32>
    %c3_i32_217 = arith.constant 3 : i32
    %501 = arith.index_cast %c3_i32_217 : i32 to index
    %c0_218 = arith.constant 0 : index
    %c0_219 = arith.constant 0 : index
    %502 = vector.load %arg16[%501, %c0_218, %c0_219] : memref<8x8x512xf32, #tpu.memory_space<vmem>>, vector<1x8x512xf32>
    %503 = vector.shape_cast %502 : vector<1x8x512xf32> to vector<8x512xf32>
    %c0_220 = arith.constant 0 : index
    %c0_221 = arith.constant 0 : index
    %504 = vector.load %arg8[%c0_220, %c0_221] : memref<128x512xf32, #tpu.memory_space<vmem>>, vector<128x512xf32>
    %cst_222 = arith.constant dense<0.000000e+00> : vector<8x512xf32>
    %505 = tpu.matmul %492, %504, %cst_222 {dimension_numbers = #tpu.dot_dimension_numbers<[1], [0], [0], [1], [0, 0, 1, 1], [], []>} : vector<8x128xf32>, vector<128x512xf32>, vector<8x512xf32> -> vector<8x512xf32>
    %506 = arith.addf %503, %505 : vector<8x512xf32>
    %507 = vector.extract_strided_slice %506 {offsets = [0, 0], sizes = [8, 128], strides = [1, 1]} : vector<8x512xf32> to vector<8x128xf32>
    %cst_223 = arith.constant 5.000000e-01 : f32
    %508 = vector.broadcast %cst_223 : f32 to vector<8x128xf32>
    %509 = arith.mulf %508, %507 : vector<8x128xf32>
    %510 = math.tanh %509 : vector<8x128xf32>
    %cst_224 = arith.constant 5.000000e-01 : f32
    %511 = vector.broadcast %cst_224 : f32 to vector<8x128xf32>
    %512 = arith.mulf %511, %510 : vector<8x128xf32>
    %cst_225 = arith.constant 5.000000e-01 : f32
    %513 = vector.broadcast %cst_225 : f32 to vector<8x128xf32>
    %514 = arith.addf %512, %513 : vector<8x128xf32>
    %515 = vector.extract_strided_slice %506 {offsets = [0, 128], sizes = [8, 128], strides = [1, 1]} : vector<8x512xf32> to vector<8x128xf32>
    %cst_226 = arith.constant 5.000000e-01 : f32
    %516 = vector.broadcast %cst_226 : f32 to vector<8x128xf32>
    %517 = arith.mulf %516, %515 : vector<8x128xf32>
    %518 = math.tanh %517 : vector<8x128xf32>
    %cst_227 = arith.constant 5.000000e-01 : f32
    %519 = vector.broadcast %cst_227 : f32 to vector<8x128xf32>
    %520 = arith.mulf %519, %518 : vector<8x128xf32>
    %cst_228 = arith.constant 5.000000e-01 : f32
    %521 = vector.broadcast %cst_228 : f32 to vector<8x128xf32>
    %522 = arith.addf %520, %521 : vector<8x128xf32>
    %523 = vector.extract_strided_slice %506 {offsets = [0, 256], sizes = [8, 128], strides = [1, 1]} : vector<8x512xf32> to vector<8x128xf32>
    %524 = math.tanh %523 : vector<8x128xf32>
    %525 = vector.extract_strided_slice %506 {offsets = [0, 384], sizes = [8, 128], strides = [1, 1]} : vector<8x512xf32> to vector<8x128xf32>
    %cst_229 = arith.constant 5.000000e-01 : f32
    %526 = vector.broadcast %cst_229 : f32 to vector<8x128xf32>
    %527 = arith.mulf %526, %525 : vector<8x128xf32>
    %528 = math.tanh %527 : vector<8x128xf32>
    %cst_230 = arith.constant 5.000000e-01 : f32
    %529 = vector.broadcast %cst_230 : f32 to vector<8x128xf32>
    %530 = arith.mulf %529, %528 : vector<8x128xf32>
    %cst_231 = arith.constant 5.000000e-01 : f32
    %531 = vector.broadcast %cst_231 : f32 to vector<8x128xf32>
    %532 = arith.addf %530, %531 : vector<8x128xf32>
    %533 = arith.mulf %522, %490 : vector<8x128xf32>
    %534 = arith.mulf %514, %524 : vector<8x128xf32>
    %535 = arith.addf %533, %534 : vector<8x128xf32>
    %536 = math.tanh %535 : vector<8x128xf32>
    %537 = arith.mulf %532, %536 : vector<8x128xf32>
    %538 = arith.addi %4, %c3_i32_217 : i32
    %539 = vector.broadcast %538 : i32 to vector<8x1xi32>
    %540 = arith.cmpi slt, %539, %3 : vector<8x1xi32>
    %541 = arith.extui %540 : vector<8x1xi1> to vector<8x1xi32>
    %542 = arith.sitofp %541 : vector<8x1xi32> to vector<8x1xf32>
    %543 = vector.broadcast %542 : vector<8x1xf32> to vector<8x128xf32>
    %544 = arith.mulf %537, %543 : vector<8x128xf32>
    %545 = arith.addf %500, %544 : vector<8x128xf32>
    %c4_i32_232 = arith.constant 4 : i32
    %546 = arith.index_cast %c4_i32_232 : i32 to index
    %c0_233 = arith.constant 0 : index
    %c0_234 = arith.constant 0 : index
    %547 = vector.load %arg16[%546, %c0_233, %c0_234] : memref<8x8x512xf32, #tpu.memory_space<vmem>>, vector<1x8x512xf32>
    %548 = vector.shape_cast %547 : vector<1x8x512xf32> to vector<8x512xf32>
    %c0_235 = arith.constant 0 : index
    %c0_236 = arith.constant 0 : index
    %549 = vector.load %arg8[%c0_235, %c0_236] : memref<128x512xf32, #tpu.memory_space<vmem>>, vector<128x512xf32>
    %cst_237 = arith.constant dense<0.000000e+00> : vector<8x512xf32>
    %550 = tpu.matmul %537, %549, %cst_237 {dimension_numbers = #tpu.dot_dimension_numbers<[1], [0], [0], [1], [0, 0, 1, 1], [], []>} : vector<8x128xf32>, vector<128x512xf32>, vector<8x512xf32> -> vector<8x512xf32>
    %551 = arith.addf %548, %550 : vector<8x512xf32>
    %552 = vector.extract_strided_slice %551 {offsets = [0, 0], sizes = [8, 128], strides = [1, 1]} : vector<8x512xf32> to vector<8x128xf32>
    %cst_238 = arith.constant 5.000000e-01 : f32
    %553 = vector.broadcast %cst_238 : f32 to vector<8x128xf32>
    %554 = arith.mulf %553, %552 : vector<8x128xf32>
    %555 = math.tanh %554 : vector<8x128xf32>
    %cst_239 = arith.constant 5.000000e-01 : f32
    %556 = vector.broadcast %cst_239 : f32 to vector<8x128xf32>
    %557 = arith.mulf %556, %555 : vector<8x128xf32>
    %cst_240 = arith.constant 5.000000e-01 : f32
    %558 = vector.broadcast %cst_240 : f32 to vector<8x128xf32>
    %559 = arith.addf %557, %558 : vector<8x128xf32>
    %560 = vector.extract_strided_slice %551 {offsets = [0, 128], sizes = [8, 128], strides = [1, 1]} : vector<8x512xf32> to vector<8x128xf32>
    %cst_241 = arith.constant 5.000000e-01 : f32
    %561 = vector.broadcast %cst_241 : f32 to vector<8x128xf32>
    %562 = arith.mulf %561, %560 : vector<8x128xf32>
    %563 = math.tanh %562 : vector<8x128xf32>
    %cst_242 = arith.constant 5.000000e-01 : f32
    %564 = vector.broadcast %cst_242 : f32 to vector<8x128xf32>
    %565 = arith.mulf %564, %563 : vector<8x128xf32>
    %cst_243 = arith.constant 5.000000e-01 : f32
    %566 = vector.broadcast %cst_243 : f32 to vector<8x128xf32>
    %567 = arith.addf %565, %566 : vector<8x128xf32>
    %568 = vector.extract_strided_slice %551 {offsets = [0, 256], sizes = [8, 128], strides = [1, 1]} : vector<8x512xf32> to vector<8x128xf32>
    %569 = math.tanh %568 : vector<8x128xf32>
    %570 = vector.extract_strided_slice %551 {offsets = [0, 384], sizes = [8, 128], strides = [1, 1]} : vector<8x512xf32> to vector<8x128xf32>
    %cst_244 = arith.constant 5.000000e-01 : f32
    %571 = vector.broadcast %cst_244 : f32 to vector<8x128xf32>
    %572 = arith.mulf %571, %570 : vector<8x128xf32>
    %573 = math.tanh %572 : vector<8x128xf32>
    %cst_245 = arith.constant 5.000000e-01 : f32
    %574 = vector.broadcast %cst_245 : f32 to vector<8x128xf32>
    %575 = arith.mulf %574, %573 : vector<8x128xf32>
    %cst_246 = arith.constant 5.000000e-01 : f32
    %576 = vector.broadcast %cst_246 : f32 to vector<8x128xf32>
    %577 = arith.addf %575, %576 : vector<8x128xf32>
    %578 = arith.mulf %567, %535 : vector<8x128xf32>
    %579 = arith.mulf %559, %569 : vector<8x128xf32>
    %580 = arith.addf %578, %579 : vector<8x128xf32>
    %581 = math.tanh %580 : vector<8x128xf32>
    %582 = arith.mulf %577, %581 : vector<8x128xf32>
    %583 = arith.addi %4, %c4_i32_232 : i32
    %584 = vector.broadcast %583 : i32 to vector<8x1xi32>
    %585 = arith.cmpi slt, %584, %3 : vector<8x1xi32>
    %586 = arith.extui %585 : vector<8x1xi1> to vector<8x1xi32>
    %587 = arith.sitofp %586 : vector<8x1xi32> to vector<8x1xf32>
    %588 = vector.broadcast %587 : vector<8x1xf32> to vector<8x128xf32>
    %589 = arith.mulf %582, %588 : vector<8x128xf32>
    %590 = arith.addf %545, %589 : vector<8x128xf32>
    %c5_i32_247 = arith.constant 5 : i32
    %591 = arith.index_cast %c5_i32_247 : i32 to index
    %c0_248 = arith.constant 0 : index
    %c0_249 = arith.constant 0 : index
    %592 = vector.load %arg16[%591, %c0_248, %c0_249] : memref<8x8x512xf32, #tpu.memory_space<vmem>>, vector<1x8x512xf32>
    %593 = vector.shape_cast %592 : vector<1x8x512xf32> to vector<8x512xf32>
    %c0_250 = arith.constant 0 : index
    %c0_251 = arith.constant 0 : index
    %594 = vector.load %arg8[%c0_250, %c0_251] : memref<128x512xf32, #tpu.memory_space<vmem>>, vector<128x512xf32>
    %cst_252 = arith.constant dense<0.000000e+00> : vector<8x512xf32>
    %595 = tpu.matmul %582, %594, %cst_252 {dimension_numbers = #tpu.dot_dimension_numbers<[1], [0], [0], [1], [0, 0, 1, 1], [], []>} : vector<8x128xf32>, vector<128x512xf32>, vector<8x512xf32> -> vector<8x512xf32>
    %596 = arith.addf %593, %595 : vector<8x512xf32>
    %597 = vector.extract_strided_slice %596 {offsets = [0, 0], sizes = [8, 128], strides = [1, 1]} : vector<8x512xf32> to vector<8x128xf32>
    %cst_253 = arith.constant 5.000000e-01 : f32
    %598 = vector.broadcast %cst_253 : f32 to vector<8x128xf32>
    %599 = arith.mulf %598, %597 : vector<8x128xf32>
    %600 = math.tanh %599 : vector<8x128xf32>
    %cst_254 = arith.constant 5.000000e-01 : f32
    %601 = vector.broadcast %cst_254 : f32 to vector<8x128xf32>
    %602 = arith.mulf %601, %600 : vector<8x128xf32>
    %cst_255 = arith.constant 5.000000e-01 : f32
    %603 = vector.broadcast %cst_255 : f32 to vector<8x128xf32>
    %604 = arith.addf %602, %603 : vector<8x128xf32>
    %605 = vector.extract_strided_slice %596 {offsets = [0, 128], sizes = [8, 128], strides = [1, 1]} : vector<8x512xf32> to vector<8x128xf32>
    %cst_256 = arith.constant 5.000000e-01 : f32
    %606 = vector.broadcast %cst_256 : f32 to vector<8x128xf32>
    %607 = arith.mulf %606, %605 : vector<8x128xf32>
    %608 = math.tanh %607 : vector<8x128xf32>
    %cst_257 = arith.constant 5.000000e-01 : f32
    %609 = vector.broadcast %cst_257 : f32 to vector<8x128xf32>
    %610 = arith.mulf %609, %608 : vector<8x128xf32>
    %cst_258 = arith.constant 5.000000e-01 : f32
    %611 = vector.broadcast %cst_258 : f32 to vector<8x128xf32>
    %612 = arith.addf %610, %611 : vector<8x128xf32>
    %613 = vector.extract_strided_slice %596 {offsets = [0, 256], sizes = [8, 128], strides = [1, 1]} : vector<8x512xf32> to vector<8x128xf32>
    %614 = math.tanh %613 : vector<8x128xf32>
    %615 = vector.extract_strided_slice %596 {offsets = [0, 384], sizes = [8, 128], strides = [1, 1]} : vector<8x512xf32> to vector<8x128xf32>
    %cst_259 = arith.constant 5.000000e-01 : f32
    %616 = vector.broadcast %cst_259 : f32 to vector<8x128xf32>
    %617 = arith.mulf %616, %615 : vector<8x128xf32>
    %618 = math.tanh %617 : vector<8x128xf32>
    %cst_260 = arith.constant 5.000000e-01 : f32
    %619 = vector.broadcast %cst_260 : f32 to vector<8x128xf32>
    %620 = arith.mulf %619, %618 : vector<8x128xf32>
    %cst_261 = arith.constant 5.000000e-01 : f32
    %621 = vector.broadcast %cst_261 : f32 to vector<8x128xf32>
    %622 = arith.addf %620, %621 : vector<8x128xf32>
    %623 = arith.mulf %612, %580 : vector<8x128xf32>
    %624 = arith.mulf %604, %614 : vector<8x128xf32>
    %625 = arith.addf %623, %624 : vector<8x128xf32>
    %626 = math.tanh %625 : vector<8x128xf32>
    %627 = arith.mulf %622, %626 : vector<8x128xf32>
    %628 = arith.addi %4, %c5_i32_247 : i32
    %629 = vector.broadcast %628 : i32 to vector<8x1xi32>
    %630 = arith.cmpi slt, %629, %3 : vector<8x1xi32>
    %631 = arith.extui %630 : vector<8x1xi1> to vector<8x1xi32>
    %632 = arith.sitofp %631 : vector<8x1xi32> to vector<8x1xf32>
    %633 = vector.broadcast %632 : vector<8x1xf32> to vector<8x128xf32>
    %634 = arith.mulf %627, %633 : vector<8x128xf32>
    %635 = arith.addf %590, %634 : vector<8x128xf32>
    %c6_i32_262 = arith.constant 6 : i32
    %636 = arith.index_cast %c6_i32_262 : i32 to index
    %c0_263 = arith.constant 0 : index
    %c0_264 = arith.constant 0 : index
    %637 = vector.load %arg16[%636, %c0_263, %c0_264] : memref<8x8x512xf32, #tpu.memory_space<vmem>>, vector<1x8x512xf32>
    %638 = vector.shape_cast %637 : vector<1x8x512xf32> to vector<8x512xf32>
    %c0_265 = arith.constant 0 : index
    %c0_266 = arith.constant 0 : index
    %639 = vector.load %arg8[%c0_265, %c0_266] : memref<128x512xf32, #tpu.memory_space<vmem>>, vector<128x512xf32>
    %cst_267 = arith.constant dense<0.000000e+00> : vector<8x512xf32>
    %640 = tpu.matmul %627, %639, %cst_267 {dimension_numbers = #tpu.dot_dimension_numbers<[1], [0], [0], [1], [0, 0, 1, 1], [], []>} : vector<8x128xf32>, vector<128x512xf32>, vector<8x512xf32> -> vector<8x512xf32>
    %641 = arith.addf %638, %640 : vector<8x512xf32>
    %642 = vector.extract_strided_slice %641 {offsets = [0, 0], sizes = [8, 128], strides = [1, 1]} : vector<8x512xf32> to vector<8x128xf32>
    %cst_268 = arith.constant 5.000000e-01 : f32
    %643 = vector.broadcast %cst_268 : f32 to vector<8x128xf32>
    %644 = arith.mulf %643, %642 : vector<8x128xf32>
    %645 = math.tanh %644 : vector<8x128xf32>
    %cst_269 = arith.constant 5.000000e-01 : f32
    %646 = vector.broadcast %cst_269 : f32 to vector<8x128xf32>
    %647 = arith.mulf %646, %645 : vector<8x128xf32>
    %cst_270 = arith.constant 5.000000e-01 : f32
    %648 = vector.broadcast %cst_270 : f32 to vector<8x128xf32>
    %649 = arith.addf %647, %648 : vector<8x128xf32>
    %650 = vector.extract_strided_slice %641 {offsets = [0, 128], sizes = [8, 128], strides = [1, 1]} : vector<8x512xf32> to vector<8x128xf32>
    %cst_271 = arith.constant 5.000000e-01 : f32
    %651 = vector.broadcast %cst_271 : f32 to vector<8x128xf32>
    %652 = arith.mulf %651, %650 : vector<8x128xf32>
    %653 = math.tanh %652 : vector<8x128xf32>
    %cst_272 = arith.constant 5.000000e-01 : f32
    %654 = vector.broadcast %cst_272 : f32 to vector<8x128xf32>
    %655 = arith.mulf %654, %653 : vector<8x128xf32>
    %cst_273 = arith.constant 5.000000e-01 : f32
    %656 = vector.broadcast %cst_273 : f32 to vector<8x128xf32>
    %657 = arith.addf %655, %656 : vector<8x128xf32>
    %658 = vector.extract_strided_slice %641 {offsets = [0, 256], sizes = [8, 128], strides = [1, 1]} : vector<8x512xf32> to vector<8x128xf32>
    %659 = math.tanh %658 : vector<8x128xf32>
    %660 = vector.extract_strided_slice %641 {offsets = [0, 384], sizes = [8, 128], strides = [1, 1]} : vector<8x512xf32> to vector<8x128xf32>
    %cst_274 = arith.constant 5.000000e-01 : f32
    %661 = vector.broadcast %cst_274 : f32 to vector<8x128xf32>
    %662 = arith.mulf %661, %660 : vector<8x128xf32>
    %663 = math.tanh %662 : vector<8x128xf32>
    %cst_275 = arith.constant 5.000000e-01 : f32
    %664 = vector.broadcast %cst_275 : f32 to vector<8x128xf32>
    %665 = arith.mulf %664, %663 : vector<8x128xf32>
    %cst_276 = arith.constant 5.000000e-01 : f32
    %666 = vector.broadcast %cst_276 : f32 to vector<8x128xf32>
    %667 = arith.addf %665, %666 : vector<8x128xf32>
    %668 = arith.mulf %657, %625 : vector<8x128xf32>
    %669 = arith.mulf %649, %659 : vector<8x128xf32>
    %670 = arith.addf %668, %669 : vector<8x128xf32>
    %671 = math.tanh %670 : vector<8x128xf32>
    %672 = arith.mulf %667, %671 : vector<8x128xf32>
    %673 = arith.addi %4, %c6_i32_262 : i32
    %674 = vector.broadcast %673 : i32 to vector<8x1xi32>
    %675 = arith.cmpi slt, %674, %3 : vector<8x1xi32>
    %676 = arith.extui %675 : vector<8x1xi1> to vector<8x1xi32>
    %677 = arith.sitofp %676 : vector<8x1xi32> to vector<8x1xf32>
    %678 = vector.broadcast %677 : vector<8x1xf32> to vector<8x128xf32>
    %679 = arith.mulf %672, %678 : vector<8x128xf32>
    %680 = arith.addf %635, %679 : vector<8x128xf32>
    %c7_i32_277 = arith.constant 7 : i32
    %681 = arith.index_cast %c7_i32_277 : i32 to index
    %c0_278 = arith.constant 0 : index
    %c0_279 = arith.constant 0 : index
    %682 = vector.load %arg16[%681, %c0_278, %c0_279] : memref<8x8x512xf32, #tpu.memory_space<vmem>>, vector<1x8x512xf32>
    %683 = vector.shape_cast %682 : vector<1x8x512xf32> to vector<8x512xf32>
    %c0_280 = arith.constant 0 : index
    %c0_281 = arith.constant 0 : index
    %684 = vector.load %arg8[%c0_280, %c0_281] : memref<128x512xf32, #tpu.memory_space<vmem>>, vector<128x512xf32>
    %cst_282 = arith.constant dense<0.000000e+00> : vector<8x512xf32>
    %685 = tpu.matmul %672, %684, %cst_282 {dimension_numbers = #tpu.dot_dimension_numbers<[1], [0], [0], [1], [0, 0, 1, 1], [], []>} : vector<8x128xf32>, vector<128x512xf32>, vector<8x512xf32> -> vector<8x512xf32>
    %686 = arith.addf %683, %685 : vector<8x512xf32>
    %687 = vector.extract_strided_slice %686 {offsets = [0, 0], sizes = [8, 128], strides = [1, 1]} : vector<8x512xf32> to vector<8x128xf32>
    %cst_283 = arith.constant 5.000000e-01 : f32
    %688 = vector.broadcast %cst_283 : f32 to vector<8x128xf32>
    %689 = arith.mulf %688, %687 : vector<8x128xf32>
    %690 = math.tanh %689 : vector<8x128xf32>
    %cst_284 = arith.constant 5.000000e-01 : f32
    %691 = vector.broadcast %cst_284 : f32 to vector<8x128xf32>
    %692 = arith.mulf %691, %690 : vector<8x128xf32>
    %cst_285 = arith.constant 5.000000e-01 : f32
    %693 = vector.broadcast %cst_285 : f32 to vector<8x128xf32>
    %694 = arith.addf %692, %693 : vector<8x128xf32>
    %695 = vector.extract_strided_slice %686 {offsets = [0, 128], sizes = [8, 128], strides = [1, 1]} : vector<8x512xf32> to vector<8x128xf32>
    %cst_286 = arith.constant 5.000000e-01 : f32
    %696 = vector.broadcast %cst_286 : f32 to vector<8x128xf32>
    %697 = arith.mulf %696, %695 : vector<8x128xf32>
    %698 = math.tanh %697 : vector<8x128xf32>
    %cst_287 = arith.constant 5.000000e-01 : f32
    %699 = vector.broadcast %cst_287 : f32 to vector<8x128xf32>
    %700 = arith.mulf %699, %698 : vector<8x128xf32>
    %cst_288 = arith.constant 5.000000e-01 : f32
    %701 = vector.broadcast %cst_288 : f32 to vector<8x128xf32>
    %702 = arith.addf %700, %701 : vector<8x128xf32>
    %703 = vector.extract_strided_slice %686 {offsets = [0, 256], sizes = [8, 128], strides = [1, 1]} : vector<8x512xf32> to vector<8x128xf32>
    %704 = math.tanh %703 : vector<8x128xf32>
    %705 = vector.extract_strided_slice %686 {offsets = [0, 384], sizes = [8, 128], strides = [1, 1]} : vector<8x512xf32> to vector<8x128xf32>
    %cst_289 = arith.constant 5.000000e-01 : f32
    %706 = vector.broadcast %cst_289 : f32 to vector<8x128xf32>
    %707 = arith.mulf %706, %705 : vector<8x128xf32>
    %708 = math.tanh %707 : vector<8x128xf32>
    %cst_290 = arith.constant 5.000000e-01 : f32
    %709 = vector.broadcast %cst_290 : f32 to vector<8x128xf32>
    %710 = arith.mulf %709, %708 : vector<8x128xf32>
    %cst_291 = arith.constant 5.000000e-01 : f32
    %711 = vector.broadcast %cst_291 : f32 to vector<8x128xf32>
    %712 = arith.addf %710, %711 : vector<8x128xf32>
    %713 = arith.mulf %702, %670 : vector<8x128xf32>
    %714 = arith.mulf %694, %704 : vector<8x128xf32>
    %715 = arith.addf %713, %714 : vector<8x128xf32>
    %716 = math.tanh %715 : vector<8x128xf32>
    %717 = arith.mulf %712, %716 : vector<8x128xf32>
    %718 = arith.addi %4, %c7_i32_277 : i32
    %719 = vector.broadcast %718 : i32 to vector<8x1xi32>
    %720 = arith.cmpi slt, %719, %3 : vector<8x1xi32>
    %721 = arith.extui %720 : vector<8x1xi1> to vector<8x1xi32>
    %722 = arith.sitofp %721 : vector<8x1xi32> to vector<8x1xf32>
    %723 = vector.broadcast %722 : vector<8x1xf32> to vector<8x128xf32>
    %724 = arith.mulf %717, %723 : vector<8x128xf32>
    %725 = arith.addf %680, %724 : vector<8x128xf32>
    %c8_i32_292 = arith.constant 8 : i32
    %c0_293 = arith.constant 0 : index
    %c0_294 = arith.constant 0 : index
    %726 = vector.load %arg15[%c0_293, %c0_294] : memref<8x128xf32, #tpu.memory_space<vmem>>, vector<8x128xf32>
    tpu.vector_store %arg15[%c0_293, %c0_294], %725 {strides = array<i32>} : memref<8x128xf32, #tpu.memory_space<vmem>>, vector<8x128xf32>,
    %c1_295 = arith.constant 1 : index
    %c0_296 = arith.constant 0 : index
    %c0_297 = arith.constant 0 : index
    %727 = vector.load %arg13[%c1_295, %c0_296, %c0_297] : memref<2x8x128xf32, #tpu.memory_space<vmem>>, vector<1x8x128xf32>
    %728 = vector.shape_cast %727 : vector<1x8x128xf32> to vector<8x128xf32>
    %729 = vector.shape_cast %717 : vector<8x128xf32> to vector<1x8x128xf32>
    tpu.vector_store %arg13[%c1_295, %c0_296, %c0_297], %729 {strides = array<i32>} : memref<2x8x128xf32, #tpu.memory_space<vmem>>, vector<1x8x128xf32>,
    %c1_298 = arith.constant 1 : index
    %c0_299 = arith.constant 0 : index
    %c0_300 = arith.constant 0 : index
    %730 = vector.load %arg14[%c1_298, %c0_299, %c0_300] : memref<2x8x128xf32, #tpu.memory_space<vmem>>, vector<1x8x128xf32>
    %731 = vector.shape_cast %730 : vector<1x8x128xf32> to vector<8x128xf32>
    %732 = vector.shape_cast %715 : vector<8x128xf32> to vector<1x8x128xf32>
    tpu.vector_store %arg14[%c1_298, %c0_299, %c0_300], %732 {strides = array<i32>} : memref<2x8x128xf32, #tpu.memory_space<vmem>>, vector<1x8x128xf32>,
    %c0_i32_301 = arith.constant 0 : i32
    %733 = arith.cmpi eq, %arg1, %c0_i32_301 : i32
    %734 = arith.extui %733 : i1 to i32
    %c0_i32_302 = arith.constant 0 : i32
    %735 = arith.cmpi ne, %734, %c0_i32_302 : i32
    scf.if %735 {
      %c0_303 = arith.constant 0 : index
      %c0_304 = arith.constant 0 : index
      %736 = vector.load %arg15[%c0_303, %c0_304] : memref<8x128xf32, #tpu.memory_space<vmem>>, vector<8x128xf32>
      %c0_305 = arith.constant 0 : index
      %c0_306 = arith.constant 0 : index
      %737 = vector.load %arg10[%c0_305, %c0_306] : memref<128x3xf32, #tpu.memory_space<vmem>>, vector<128x3xf32>
      %cst_307 = arith.constant dense<0.000000e+00> : vector<8x3xf32>
      %738 = tpu.matmul %736, %737, %cst_307 {dimension_numbers = #tpu.dot_dimension_numbers<[1], [0], [0], [1], [0, 0, 1, 1], [], []>} : vector<8x128xf32>, vector<128x3xf32>, vector<8x3xf32> -> vector<8x3xf32>
      %c0_308 = arith.constant 0 : index
      %c0_309 = arith.constant 0 : index
      %739 = vector.load %arg11[%c0_308, %c0_309] : memref<1x3xf32, #tpu.memory_space<vmem>>, vector<1x3xf32>
      %740 = vector.broadcast %739 : vector<1x3xf32> to vector<8x3xf32>
      %741 = arith.addf %738, %740 : vector<8x3xf32>
      %c0_310 = arith.constant 0 : index
      %c0_311 = arith.constant 0 : index
      %742 = vector.load %arg12[%c0_310, %c0_311] : memref<8x3xf32, #tpu.memory_space<vmem>>, vector<8x3xf32>
      tpu.vector_store %arg12[%c0_310, %c0_311], %741 {strides = array<i32>} : memref<8x3xf32, #tpu.memory_space<vmem>>, vector<8x3xf32>,
    } else {
    }
    return
  }
  func.func @transform_0(%arg0: i32, %arg1: i32) -> (i32, i32, i32) {
    %c0_i32 = arith.constant 0 : i32
    %c0_i32_0 = arith.constant 0 : i32
    return %arg1, %arg0, %c0_i32 : i32, i32, i32
  }
  func.func @transform_1(%arg0: i32, %arg1: i32) -> (i32, i32) {
    %c0_i32 = arith.constant 0 : i32
    %c0_i32_0 = arith.constant 0 : i32
    return %arg0, %c0_i32 : i32, i32
  }
  func.func @transform_2(%arg0: i32, %arg1: i32) -> (i32, i32) {
    %c0_i32 = arith.constant 0 : i32
    %c0_i32_0 = arith.constant 0 : i32
    %c0_i32_1 = arith.constant 0 : i32
    return %c0_i32, %c0_i32_0 : i32, i32
  }
  func.func @transform_3(%arg0: i32, %arg1: i32) -> (i32, i32) {
    %c0_i32 = arith.constant 0 : i32
    %c0_i32_0 = arith.constant 0 : i32
    %c0_i32_1 = arith.constant 0 : i32
    return %c0_i32, %c0_i32_0 : i32, i32
  }
  func.func @transform_4(%arg0: i32, %arg1: i32) -> (i32, i32) {
    %c0_i32 = arith.constant 0 : i32
    %c0_i32_0 = arith.constant 0 : i32
    %c0_i32_1 = arith.constant 0 : i32
    return %c0_i32, %c0_i32_0 : i32, i32
  }
  func.func @transform_5(%arg0: i32, %arg1: i32) -> (i32, i32) {
    %c0_i32 = arith.constant 0 : i32
    %c0_i32_0 = arith.constant 0 : i32
    %c0_i32_1 = arith.constant 0 : i32
    return %c0_i32, %c0_i32_0 : i32, i32
  }
  func.func @transform_6(%arg0: i32, %arg1: i32) -> (i32, i32) {
    %c0_i32 = arith.constant 0 : i32
    %c0_i32_0 = arith.constant 0 : i32
    %c0_i32_1 = arith.constant 0 : i32
    return %c0_i32, %c0_i32_0 : i32, i32
  }
  func.func @transform_7(%arg0: i32, %arg1: i32) -> (i32, i32) {
    %c0_i32 = arith.constant 0 : i32
    %c0_i32_0 = arith.constant 0 : i32
    %c0_i32_1 = arith.constant 0 : i32
    return %c0_i32, %c0_i32_0 : i32, i32
  }
  func.func @transform_8(%arg0: i32, %arg1: i32) -> (i32, i32) {
    %c0_i32 = arith.constant 0 : i32
    %c0_i32_0 = arith.constant 0 : i32
    %c0_i32_1 = arith.constant 0 : i32
    return %c0_i32, %c0_i32_0 : i32, i32
  }
  func.func @transform_9(%arg0: i32, %arg1: i32) -> (i32, i32) {
    %c0_i32 = arith.constant 0 : i32
    %c0_i32_0 = arith.constant 0 : i32
    %c0_i32_1 = arith.constant 0 : i32
    return %c0_i32, %c0_i32_0 : i32, i32
  }
  func.func @transform_10(%arg0: i32, %arg1: i32) -> (i32, i32) {
    %c0_i32 = arith.constant 0 : i32
    %c0_i32_0 = arith.constant 0 : i32
    return %arg0, %c0_i32 : i32, i32
  }
}

</mosaic_0001>

<bundles_post_ra>
// kernel: tpu_custom_call.1
= control target key start
LH: loop header
LB: loop body
LE: loop exit
PB: predicated region body
PF: predicated region fallthrough
CT: control target
= control target key end

     0   :  { %15 = vsyncpa [#allocation8], 0  ;;  %s7124_s0 = inlined_call_operand.vmem [shape: f32[8,8,12], index: 0, kind: input, shape index: {}]   ;;  %s7125_s1 = inlined_call_operand.vmem [shape: s32[8,1], index: 1, kind: input, shape index: {}]   ;;  %s7126_s2 = inlined_call_operand.vmem [shape: f32[12,512], index: 2, kind: input, shape index: {}]   ;;  %s7127_s3 = inlined_call_operand.hbm [shape: f32[128,512], index: 3, kind: input, shape index: {}]   ;;  %s7128_s4 = inlined_call_operand.vmem [shape: f32[1,512], index: 4, kind: input, shape index: {}]   ;;  %s7129_s5 = inlined_call_operand.hbm [shape: f32[128,512], index: 5, kind: input, shape index: {}]   ;;  %s7130_s6 = inlined_call_operand.hbm [shape: f32[128,512], index: 6, kind: input, shape index: {}]   ;;  %s7131_s7 = inlined_call_operand.vmem [shape: f32[1,512], index: 7, kind: input, shape index: {}]   ;;  %s7132_s8 = inlined_call_operand.vmem [shape: f32[128,3], index: 8, kind: input, shape index: {}]   ;;  %s7133_s9 = inlined_call_operand.vmem [shape: f32[1,3], index: 9, kind: input, shape index: {}]   ;;  %s7134_s10 = inlined_call_operand.vmem [shape: f32[8,3], index: 10, kind: output, shape index: {}]  }
   0x1   :  { %16 = vsyncpa [#allocation10], 0  ;;  %s5860_s13 = smov [#allocation9]   ;;  %s5861_s15 = smov [#allocation7]  }
   0x2   :  { %s42_s14 = sshll.u32 %s5860_s13, 4  ;;  %s28_s16 = sshll.u32 %s5861_s15, 4  ;;  %s43_s14 = int_to_ptr.vmem [resolvable:$true] %s42_s14  ;;  %s5925_s16 = int_to_ptr.vmem [resolvable:$true] %s28_s16 }
   0x3   :  { %s5790_s19 = scalar_lea.hbm %s7129_s5, 8192 }
   0x4   :  { %p5791_p0 = scmp.ne.s32.totalorder %s7129_s5, %s5790_s19  ;;  %p5794_p1 = scmp.lt.u32.totalorder %s5790_s19, %s7129_s5 }
   0x6   :  { %p5796_p2 = pnand %p5794_p1, %p5791_p0 }
   0x8   :  { %5799 = shalt.err (!%p5796_p2)
}
   0x9   :  { %s5800_s24 = scalar_lea.vmem %s43_s14, 8192  ;;  %p5805_p4 = scmp.lt.s32.totalorder %s43_s14, %s43_s14 }
   0xa   :  { %p5801_p3 = scmp.ne.s32.totalorder %s43_s14, %s5800_s24  ;;  %p5806_p5 = scmp.lt.s32.totalorder %s5800_s24, %s5800_s24 }
   0xc   :  { %p5807_p6 = por %p5806_p5, %p5805_p4 }
   0xe   :  { %p5808_p7 = pnand %p5807_p6, %p5801_p3 }
  0x10   :  { %5811 = shalt.err (!%p5808_p7)
}
  0x11   :  { %s5862_s25 = smov 512   ;;  %s5863_s26 = smov 32  }
  0x12   :  { %48 = dma.hbm_to_vmem [thread:$0]  %s7129_s5, 8192, %s43_s14, [#allocation10], %s5862_s25, %s5862_s25, %s5863_s26  }
  0x13   :  { %s5812_s11 = scalar_lea.hbm %s7127_s3, 8192 }
  0x14   :  { %p5813_p8 = scmp.ne.s32.totalorder %s7127_s3, %s5812_s11  ;;  %p5816_p9 = scmp.lt.u32.totalorder %s5812_s11, %s7127_s3 }
  0x16   :  { %p5818_p10 = pnand %p5816_p9, %p5813_p8 }
  0x18   :  { %5821 = shalt.err (!%p5818_p10)
}
  0x19   :  { %s5822_s18 = scalar_lea.vmem %s5925_s16, 8192  ;;  %p5827_p12 = scmp.lt.s32.totalorder %s5925_s16, %s5925_s16 }
  0x1a   :  { %p5823_p11 = scmp.ne.s32.totalorder %s5925_s16, %s5822_s18  ;;  %p5828_p13 = scmp.lt.s32.totalorder %s5822_s18, %s5822_s18 }
  0x1c   :  { %p5829_p0 = por %p5828_p13, %p5827_p12 }
  0x1e   :  { %p5830_p1 = pnand %p5829_p0, %p5823_p11 }
  0x20   :  { %5833 = shalt.err (!%p5830_p1)
}
  0x21   :  { %34 = dma.hbm_to_vmem [thread:$0]  %s7127_s3, 8192, %s5925_s16, [#allocation8], %s5862_s25, %s5862_s25, %s5863_s26  }
  0x22   :  { %s5864_s19 = smov [#allocation11]   ;;  %s5834_s23 = scalar_lea.hbm %s7130_s6, 8192 }
  0x23   :  { %s54_s20 = sshll.u32 %s5864_s19, 4  ;;  %p5835_p2 = scmp.ne.s32.totalorder %s7130_s6, %s5834_s23  ;;  %s55_s20 = int_to_ptr.vmem [resolvable:$true] %s54_s20 }
  0x24   :  { %p5838_p3 = scmp.lt.u32.totalorder %s5834_s23, %s7130_s6 }
  0x26   :  { %p5840_p4 = pnand %p5838_p3, %p5835_p2 }
  0x28   :  { %5843 = shalt.err (!%p5840_p4)
}
  0x29   :  { %s5844_s30 = scalar_lea.vmem %s55_s20, 8192  ;;  %p5849_p6 = scmp.lt.s32.totalorder %s55_s20, %s55_s20 }
  0x2a   :  { %p5845_p5 = scmp.ne.s32.totalorder %s55_s20, %s5844_s30  ;;  %p5850_p7 = scmp.lt.s32.totalorder %s5844_s30, %s5844_s30 }
  0x2c   :  { %p5851_p8 = por %p5850_p7, %p5849_p6 }
  0x2e   :  { %p5852_p9 = pnand %p5851_p8, %p5845_p5 }
  0x30   :  { %5855 = shalt.err (!%p5852_p9)
}
  0x31   :  { %60 = dma.hbm_to_vmem [thread:$0]  %s7130_s6, 8192, %s55_s20, [#allocation10], %s5862_s25, %s5862_s25, %s5863_s26  }
  0x32   :  { %5856 = dma.done.wait [#allocation8], 8192  }
  0x33   :  { %5857 = vsyncadd [#allocation8], 4294959104 }
  0x34   :  { %5858 = dma.done.wait [#allocation10], 16384  }
  0x35   :  { %5859 = vsyncadd [#allocation10], 4294950912  ;;  %v5865_v0 = vmov 0.0   ;;  %vm150_vm0 = vcmask 1043456   ;;  %vm5866_vm1 = vmmov 1   ;;  %v96_v2 = vld [vmem:[%s7126_s2 + $0x8] sm:$0xff] }
  0x36   :  { %227 = vmatprep.mubr.f32.mxu0 %v5865_v0  ;;  %340 = vmatprep.mubr.f32.mxu1 %v5865_v0  ;;  %vm5979_vm2 = vmpackc.low %vm150_vm0, %vm5866_vm1  ;;  %v100_v3 = vld [vmem:[%s7126_s2 + $0x28] sm:$0xf]  ;;  %v98_v4 = vld [vmem:[%s7126_s2 + $0x18] sm:$0xff]  ;;  %vm125_vm3 = vcmask 97280   ;;  %vm5869_vm12 = vmmov 0   ;;  %vm4263_vm13 = vcmask 23552  }
  0x37   :  { %v4360_v5 = vpack.c.bf16 %v100_v3, %v96_v2  ;;  %v102_v6 = vld [vmem:[%s7126_s2 + $0x38] sm:$0xf]  ;;  %v95_v7 = vld [vmem:[%s7126_s2] sm:$0xff]  ;;  %v97_v11 = vld [vmem:[%s7126_s2 + $0x10] sm:$0xff] }
  0x38   :  { %v99_v8 = vld [vmem:[%s7126_s2 + $0x20] sm:$0xf]  ;;  %v4366_v9 = vpack.c.bf16 %v102_v6, %v98_v4  ;;  %v101_v12 = vld [vmem:[%s7126_s2 + $0x30] sm:$0xf]  ;;  %v428_v15 = vld [vmem:[#allocation7 + $0x8] sm:$0xff] }
  0x39   :  { %v4363_v10 = vpack.c.bf16 %v99_v8, %v95_v7  ;;  %v87_v13 = vld [vmem:[%s7124_s0] sm:$0xff]  ;;  %4362 = vmatprep.subr.msk.bf16.mxu0 %vm5979_vm2, %v4360_v5  ;;  %v4369_v14 = vpack.c.bf16 %v101_v12, %v97_v11  ;;  %v432_v16 = vld [vmem:[#allocation7 + $0x28] sm:$0xff]  ;;  %v430_v17 = vld [vmem:[#allocation7 + $0x18] sm:$0xff] }
  0x3a   :  { %4368 = vmatprep.subr.msk.bf16.mxu1 %vm5979_vm2, %v4366_v9  ;;  %v6016_v18 = vpack.c.bf16 %v432_v16, %v428_v15  ;;  %v434_v19 = vld [vmem:[#allocation7 + $0x38] sm:$0xff]  ;;  %v427_v20 = vld [vmem:[#allocation7] sm:$0xff]  ;;  %v429_v24 = vld [vmem:[#allocation7 + $0x10] sm:$0xff] }
  0x3b   :  { %4365 = vmatpush1.bf16.msk.msra.mxu0 %vm5979_vm2, %v4363_v10  ;;  %v431_v21 = vld [vmem:[#allocation7 + $0x20] sm:$0xff]  ;;  %4371 = vmatpush1.bf16.msk.msra.mxu1 %vm5979_vm2, %v4369_v14  ;;  %v6020_v22 = vpack.c.bf16 %v434_v19, %v430_v17  ;;  %v433_v25 = vld [vmem:[#allocation7 + $0x30] sm:$0xff]  ;;  %v436_v27 = vld [vmem:[#allocation7 + $0x48] sm:$0xff] }
  0x3c   :  { %v6022_v23 = vpack.c.bf16 %v431_v21, %v427_v20  ;;  %4373 = vmatprep.subr.bf16.mxu0 %v6016_v18  ;;  %v6025_v26 = vpack.c.bf16 %v433_v25, %v429_v24  ;;  %v440_v28 = vld [vmem:[#allocation7 + $0x68] sm:$0xff]  ;;  %v438_v29 = vld [vmem:[#allocation7 + $0x58] sm:$0xff]  ;;  %v435_v32 = vld [vmem:[#allocation7 + $0x40] sm:$0xff] }
  0x3d   :  { %4405 = vmatprep.subr.bf16.mxu1 %v6020_v22  ;;  %v6029_v30 = vpack.c.bf16 %v440_v28, %v436_v27  ;;  %v442_v31 = vld [vmem:[#allocation7 + $0x78] sm:$0xff]  ;;  %v439_v33 = vld [vmem:[#allocation7 + $0x60] sm:$0xff]  ;;  %v88_v34 = vld [vmem:[%s7124_s0 + $0x8] sm:$0xff] }
  0x3e   :  { %4273 = vmatmul.mubr.msk.f32.vlgmr.msra.gmra.mrb[0].mxu0 %vm125_vm3, %v87_v13  ;;  %4283 = vmatmul.mubr.msk.f32.vlgmr.msra.gmra.mrb[0].mxu1 %vm125_vm3, %v87_v13  ;;  %v6036_v35 = vpack.c.bf16 %v442_v31, %v438_v29  ;;  %v6038_v36 = vpack.c.bf16 %v439_v33, %v435_v32  ;;  %v437_v37 = vld [vmem:[#allocation7 + $0x50] sm:$0xff]  ;;  %v444_v40 = vld [vmem:[#allocation7 + $0x88] sm:$0xff]  ;;  %v446_v42 = vld [vmem:[#allocation7 + $0x98] sm:$0xff] }
  0x3f   :  { %4375 = vmatpush1.bf16.msra.mxu0 %v6022_v23  ;;  %v441_v38 = vld [vmem:[#allocation7 + $0x70] sm:$0xff]  ;;  %4407 = vmatpush1.bf16.msra.mxu1 %v6025_v26  ;;  %v448_v41 = vld [vmem:[#allocation7 + $0xa8] sm:$0xff]  ;;  %v450_v44 = vld [vmem:[#allocation7 + $0xb8] sm:$0xff] }
  0x40   :  { %233 = vmatprep.mubr.f32.mxu0 %v5865_v0  ;;  %v6042_v39 = vpack.c.bf16 %v441_v38, %v437_v37  ;;  %346 = vmatprep.mubr.f32.mxu1 %v5865_v0  ;;  %v6046_v43 = vpack.c.bf16 %v448_v41, %v444_v40  ;;  %v443_v45 = vld [vmem:[#allocation7 + $0x80] sm:$0xff]  ;;  %v89_v47 = vld [vmem:[%s7124_s0 + $0x10] sm:$0xff]  ;;  %v6053_v48 = vpack.c.bf16 %v450_v44, %v446_v42  ;;  %v452_v52 = vld [vmem:[#allocation7 + $0xc8] sm:$0xff] }
  0x41   :  { %4377 = vmatprep.subr.bf16.mxu0 %v6029_v30  ;;  %v447_v46 = vld [vmem:[#allocation7 + $0xa0] sm:$0xff]  ;;  %4409 = vmatprep.subr.bf16.mxu1 %v6036_v35  ;;  %v445_v49 = vld [vmem:[#allocation7 + $0x90] sm:$0xff]  ;;  %v456_v53 = vld [vmem:[#allocation7 + $0xe8] sm:$0xff] }
  0x42   :  { %4274 = vmatmul.mubr.msk.f32.gmra.mrb[2].mxu0 %vm125_vm3, %v88_v34  ;;  %v449_v50 = vld [vmem:[#allocation7 + $0xb0] sm:$0xff]  ;;  %4284 = vmatmul.mubr.msk.f32.gmra.mrb[2].mxu1 %vm125_vm3, %v88_v34  ;;  %v6057_v51 = vpack.c.bf16 %v447_v46, %v443_v45  ;;  %v454_v54 = vld [vmem:[#allocation7 + $0xd8] sm:$0xff]  ;;  %v451_v57 = vld [vmem:[#allocation7 + $0xc0] sm:$0xff]  ;;  %v6065_v59 = vpack.c.bf16 %v456_v53, %v452_v52 }
  0x43   :  { %4379 = vmatpush1.bf16.msra.mxu0 %v6038_v36  ;;  %4411 = vmatpush1.bf16.msra.mxu1 %v6042_v39  ;;  %v6061_v55 = vpack.c.bf16 %v449_v50, %v445_v49  ;;  %v458_v56 = vld [vmem:[#allocation7 + $0xf8] sm:$0xff]  ;;  %v455_v58 = vld [vmem:[#allocation7 + $0xe0] sm:$0xff]  ;;  %v453_v60 = vld [vmem:[#allocation7 + $0xd0] sm:$0xff] }
  0x44   :  { %239 = vmatprep.mubr.f32.mxu0 %v5865_v0  ;;  %352 = vmatprep.mubr.f32.mxu1 %v5865_v0  ;;  %v457_v61 = vld [vmem:[#allocation7 + $0xf0] sm:$0xff]  ;;  %v6069_v62 = vpack.c.bf16 %v458_v56, %v454_v54  ;;  %v460_v63 = vld [vmem:[#allocation7 + $0x108] sm:$0xff]  ;;  %v90_v2 = vld [vmem:[%s7124_s0 + $0x18] sm:$0xff]  ;;  %v6076_v3 = vpack.c.bf16 %v455_v58, %v451_v57 }
  0x45   :  { %4381 = vmatprep.subr.bf16.mxu0 %v6046_v43  ;;  %4413 = vmatprep.subr.bf16.mxu1 %v6053_v48  ;;  %v464_v1 = vld [vmem:[#allocation7 + $0x128] sm:$0xff]  ;;  %v462_v4 = vld [vmem:[#allocation7 + $0x118] sm:$0xff]  ;;  %v6080_v6 = vpack.c.bf16 %v457_v61, %v453_v60  ;;  %v459_v7 = vld [vmem:[#allocation7 + $0x100] sm:$0xff] }
  0x46   :  { %4275 = vmatmul.mubr.msk.f32.gmra.mrb[4].mxu0 %vm125_vm3, %v89_v47  ;;  %4285 = vmatmul.mubr.msk.f32.gmra.mrb[4].mxu1 %vm125_vm3, %v89_v47  ;;  %v466_v5 = vld [vmem:[#allocation7 + $0x138] sm:$0xff]  ;;  %v463_v8 = vld [vmem:[#allocation7 + $0x120] sm:$0xff]  ;;  %v6084_v9 = vpack.c.bf16 %v464_v1, %v460_v63  ;;  %v461_v10 = vld [vmem:[#allocation7 + $0x110] sm:$0xff] }
  0x47   :  { %4383 = vmatpush1.bf16.msra.mxu0 %v6057_v51  ;;  %4415 = vmatpush1.bf16.msra.mxu1 %v6061_v55  ;;  %v465_v11 = vld [vmem:[#allocation7 + $0x130] sm:$0xff]  ;;  %v6088_v12 = vpack.c.bf16 %v466_v5, %v462_v4  ;;  %v468_v13 = vld [vmem:[#allocation7 + $0x148] sm:$0xff]  ;;  %v91_v15 = vld [vmem:[%s7124_s0 + $0x20] sm:$0xff]  ;;  %v6095_v16 = vpack.c.bf16 %v463_v8, %v459_v7  ;;  %v105_v8 = vlaneseq }
  0x48   :  { %245 = vmatprep.mubr.f32.mxu0 %v5865_v0  ;;  %358 = vmatprep.mubr.f32.mxu1 %v5865_v0  ;;  %v472_v14 = vld [vmem:[#allocation7 + $0x168] sm:$0xff]  ;;  %v470_v17 = vld [vmem:[#allocation7 + $0x158] sm:$0xff]  ;;  %v6099_v20 = vpack.c.bf16 %v465_v11, %v461_v10  ;;  %v467_v21 = vld [vmem:[#allocation7 + $0x140] sm:$0xff] }
  0x49   :  { %4385 = vmatprep.subr.bf16.mxu0 %v6065_v59  ;;  %4417 = vmatprep.subr.bf16.mxu1 %v6069_v62  ;;  %v474_v19 = vld [vmem:[#allocation7 + $0x178] sm:$0xff]  ;;  %v471_v24 = vld [vmem:[#allocation7 + $0x160] sm:$0xff]  ;;  %v6103_v25 = vpack.c.bf16 %v472_v14, %v468_v13  ;;  %v469_v27 = vld [vmem:[#allocation7 + $0x150] sm:$0xff]  ;;  %v6205_v10 = vshrl.u32 %v105_v8, 7 }
  0x4a   :  { %4276 = vmatmul.mubr.msk.f32.gmra.mrb[6].mxu0 %vm125_vm3, %v90_v2  ;;  %4286 = vmatmul.mubr.msk.f32.gmra.mrb[6].mxu1 %vm125_vm3, %v90_v2  ;;  %v473_v28 = vld [vmem:[#allocation7 + $0x170] sm:$0xff]  ;;  %v6107_v29 = vpack.c.bf16 %v474_v19, %v470_v17  ;;  %v476_v31 = vld [vmem:[#allocation7 + $0x188] sm:$0xff]  ;;  %v6114_v34 = vpack.c.bf16 %v471_v24, %v467_v21  ;;  %v478_v37 = vld [vmem:[#allocation7 + $0x198] sm:$0xff] }
  0x4b   :  { %4387 = vmatpush1.bf16.msra.mxu0 %v6076_v3  ;;  %4419 = vmatpush1.bf16.msra.mxu1 %v6080_v6  ;;  %v480_v32 = vld [vmem:[#allocation7 + $0x1a8] sm:$0xff]  ;;  %v482_v38 = vld [vmem:[#allocation7 + $0x1b8] sm:$0xff]  ;;  %v6118_v40 = vpack.c.bf16 %v473_v28, %v469_v27  ;;  %v475_v41 = vld [vmem:[#allocation7 + $0x180] sm:$0xff]  ;;  %v107_v11 = vsub.s32 0, %v6205_v10  ;;  %v111_v14 = vsub.s32 1, %v6205_v10  ;;  %v115_v17 = vsub.s32 2, %v6205_v10 }
  0x4c   :  { %251 = vmatprep.mubr.f32.mxu0 %v5865_v0  ;;  %364 = vmatprep.mubr.f32.mxu1 %v5865_v0  ;;  %v92_v33 = vld [vmem:[%s7124_s0 + $0x28] sm:$0xff]  ;;  %v479_v42 = vld [vmem:[#allocation7 + $0x1a0] sm:$0xff]  ;;  %v6122_v44 = vpack.c.bf16 %v480_v32, %v476_v31  ;;  %v477_v45 = vld [vmem:[#allocation7 + $0x190] sm:$0xff]  ;;  %v6126_v47 = vpack.c.bf16 %v482_v38, %v478_v37  ;;  %v119_v28 = vsub.s32 3, %v6205_v10 }
  0x4d   :  { %4389 = vmatprep.subr.bf16.mxu0 %v6084_v9  ;;  %4421 = vmatprep.subr.bf16.mxu1 %v6088_v12  ;;  %v481_v46 = vld [vmem:[#allocation7 + $0x1b0] sm:$0xff]  ;;  %v484_v49 = vld [vmem:[#allocation7 + $0x1c8] sm:$0xff]  ;;  %v6133_v53 = vpack.c.bf16 %v479_v42, %v475_v41  ;;  %v486_v54 = vld [vmem:[#allocation7 + $0x1d8] sm:$0xff] }
  0x4e   :  { %4277 = vmatmul.mubr.msk.f32.gmra.mrb[8].mxu0 %vm125_vm3, %v91_v15  ;;  %4287 = vmatmul.mubr.msk.f32.gmra.mrb[8].mxu1 %vm125_vm3, %v91_v15  ;;  %v488_v50 = vld [vmem:[#allocation7 + $0x1e8] sm:$0xff]  ;;  %v93_v52 = vld [vmem:[%s7124_s0 + $0x30] sm:$0xff]  ;;  %v490_v56 = vld [vmem:[#allocation7 + $0x1f8] sm:$0xff]  ;;  %v6137_v57 = vpack.c.bf16 %v481_v46, %v477_v45 }
  0x4f   :  { %4391 = vmatpush1.bf16.msra.mxu0 %v6095_v16  ;;  %4423 = vmatpush1.bf16.msra.mxu1 %v6099_v20  ;;  %v483_v58 = vld [vmem:[#allocation7 + $0x1c0] sm:$0xff]  ;;  %v6141_v61 = vpack.c.bf16 %v488_v50, %v484_v49  ;;  %v485_v63 = vld [vmem:[#allocation7 + $0x1d0] sm:$0xff]  ;;  %v6145_v2 = vpack.c.bf16 %v490_v56, %v486_v54  ;;  %v94_v4 = vld [vmem:[%s7124_s0 + $0x38] sm:$0xff] }
  0x50   :  { %257 = vmatprep.mubr.f32.mxu0 %v5865_v0  ;;  %370 = vmatprep.mubr.f32.mxu1 %v5865_v0  ;;  %v487_v60 = vld [vmem:[#allocation7 + $0x1e0] sm:$0xff]  ;;  %v489_v1 = vld [vmem:[#allocation7 + $0x1f0] sm:$0xff] }
  0x51   :  { %4393 = vmatprep.subr.bf16.mxu0 %v6103_v25  ;;  %4425 = vmatprep.subr.bf16.mxu1 %v6107_v29  ;;  %v6152_v5 = vpack.c.bf16 %v487_v60, %v483_v58  ;;  %v6156_v7 = vpack.c.bf16 %v489_v1, %v485_v63  ;;  %v103_v13 = vld [vmem:[%s7128_s4] sm:$0xf] }
  0x52   :  { %4278 = vmatmul.mubr.msk.f32.gmra.mrb[10].mxu0 %vm125_vm3, %v92_v33  ;;  %4288 = vmatmul.mubr.msk.f32.gmra.mrb[10].mxu1 %vm125_vm3, %v92_v33  ;;  %v6214_v15 = vrot.slane %v103_v13, %v107_v11  ;;  %v6224_v21 = vrot.slane %v103_v13, %v115_v17  ;;  %v6231_v41 = vrot.slane %v103_v13, %v119_v28 }
  0x53   :  { %4395 = vmatpush1.bf16.msra.mxu0 %v6114_v34  ;;  %4427 = vmatpush1.bf16.msra.mxu1 %v6118_v40 }
  0x54   :  { %263 = vmatprep.mubr.f32.mxu0 %v5865_v0  ;;  %376 = vmatprep.mubr.f32.mxu1 %v5865_v0 }
  0x55   :  { %4397 = vmatprep.subr.bf16.mxu0 %v6122_v44  ;;  %4429 = vmatprep.subr.bf16.mxu1 %v6126_v47 }
  0x56   :  { %4279 = vmatmul.mubr.msk.f32.gmra.mrb[12].mxu0 %vm125_vm3, %v93_v52  ;;  %4289 = vmatmul.mubr.msk.f32.gmra.mrb[12].mxu1 %vm125_vm3, %v93_v52 }
  0x57   :  { %4399 = vmatpush1.bf16.msra.mxu0 %v6133_v53  ;;  %4431 = vmatpush1.bf16.msra.mxu1 %v6137_v57 }
  0x58   :  { %269 = vmatprep.mubr.f32.mxu0 %v5865_v0  ;;  %382 = vmatprep.mubr.f32.mxu1 %v5865_v0 }
  0x59   :  { %4401 = vmatprep.subr.bf16.mxu0 %v6141_v61  ;;  %4433 = vmatprep.subr.bf16.mxu1 %v6145_v2 }
  0x5a   :  { %4280 = vmatmul.mubr.msk.f32.gmra.mrb[14].mxu0 %vm125_vm3, %v94_v4  ;;  %4290 = vmatmul.mubr.msk.f32.gmra.mrb[14].mxu1 %vm125_vm3, %v94_v4 }
  0x5b   :  { %4403 = vmatpush1.bf16.msra.mxu0 %v6152_v5  ;;  %4435 = vmatpush1.bf16.msra.mxu1 %v6156_v7 }
  0x5c   :  { %555 = vmatprep.mubr.f32.mxu0 %v5865_v0  ;;  %626 = vmatprep.mubr.f32.mxu1 %v5865_v0 }
  0x5d   :  { %4437 = vmatprep.subr.bf16.mxu0 %v6016_v18  ;;  %4469 = vmatprep.subr.bf16.mxu1 %v6020_v22 }
  0x5e   :  { %556 = vmatmul.mubr.f32.vlgmr.msra.gmra.mrb[0].mxu0 %v5865_v0  ;;  %627 = vmatmul.mubr.f32.vlgmr.msra.gmra.mrb[0].mxu1 %v5865_v0 }
  0x5f   :  { %4439 = vmatpush1.bf16.msra.mxu0 %v6022_v23  ;;  %4471 = vmatpush1.bf16.msra.mxu1 %v6025_v26 }
  0x60   :  { %4441 = vmatprep.subr.bf16.mxu0 %v6029_v30  ;;  %4473 = vmatprep.subr.bf16.mxu1 %v6036_v35 }
  0x61   :  { %789 = vmatprep.mubr.f32.mxu0 %v5865_v0  ;;  %860 = vmatprep.mubr.f32.mxu1 %v5865_v0 }
  0x63   :  { %4443 = vmatpush1.bf16.msra.mxu0 %v6038_v36  ;;  %4475 = vmatpush1.bf16.msra.mxu1 %v6042_v39 }
  0x64   :  { %4445 = vmatprep.subr.bf16.mxu0 %v6046_v43  ;;  %4477 = vmatprep.subr.bf16.mxu1 %v6053_v48 }
  0x67   :  { %4447 = vmatpush1.bf16.msra.mxu0 %v6057_v51  ;;  %4479 = vmatpush1.bf16.msra.mxu1 %v6061_v55 }
  0x68   :  { %4449 = vmatprep.subr.bf16.mxu0 %v6065_v59  ;;  %4481 = vmatprep.subr.bf16.mxu1 %v6069_v62 }
  0x6b   :  { %4451 = vmatpush1.bf16.msra.mxu0 %v6076_v3  ;;  %4483 = vmatpush1.bf16.msra.mxu1 %v6080_v6 }
  0x6c   :  { %4453 = vmatprep.subr.bf16.mxu0 %v6084_v9  ;;  %4485 = vmatprep.subr.bf16.mxu1 %v6088_v12 }
  0x6f   :  { %4455 = vmatpush1.bf16.msra.mxu0 %v6095_v16  ;;  %4487 = vmatpush1.bf16.msra.mxu1 %v6099_v20 }
  0x70   :  { %4457 = vmatprep.subr.bf16.mxu0 %v6103_v25  ;;  %4489 = vmatprep.subr.bf16.mxu1 %v6107_v29 }
  0x73   :  { %4459 = vmatpush1.bf16.msra.mxu0 %v6114_v34  ;;  %4491 = vmatpush1.bf16.msra.mxu1 %v6118_v40 }
  0x74   :  { %4461 = vmatprep.subr.bf16.mxu0 %v6122_v44  ;;  %4493 = vmatprep.subr.bf16.mxu1 %v6126_v47 }
  0x77   :  { %4463 = vmatpush1.bf16.msra.mxu0 %v6133_v53  ;;  %4495 = vmatpush1.bf16.msra.mxu1 %v6137_v57 }
  0x78   :  { %4465 = vmatprep.subr.bf16.mxu0 %v6141_v61  ;;  %4497 = vmatprep.subr.bf16.mxu1 %v6145_v2 }
  0x7b   :  { %4467 = vmatpush1.bf16.msra.mxu0 %v6152_v5  ;;  %4499 = vmatpush1.bf16.msra.mxu1 %v6156_v7 }
  0x7c   :  { %4501 = vmatprep.subr.bf16.mxu0 %v6016_v18  ;;  %4533 = vmatprep.subr.bf16.mxu1 %v6020_v22  ;;  %v6219_v18 = vrot.slane %v103_v13, %v111_v14 }
 0x131   :  { %v557_v22 = vpop.f32.mrb[0].mxu0  ;;  %v628_v24 = vpop.f32.mrb[0].mxu1 }
 0x132   :  { %v5484_v19 = vadd.f32 %v557_v22, %v6214_v15  ;;  %v559_v27 = vpop.f32.mrb[1].mxu0  ;;  %v630_v32 = vpop.f32.mrb[1].mxu1  ;;  %v5500_v38 = vadd.f32 %v628_v24, %v6224_v21 }
 0x133   :  { %v5485_v31 = vadd.f32 %v559_v27, %v6219_v18  ;;  %v5501_v42 = vadd.f32 %v630_v32, %v6231_v41 }
 0x134   :  { %v637_v33 = vmul.f32 0.5, %v5484_v19 }
 0x135   :  { %v641_v37 = vmul.f32 0.5, %v5485_v31  ;;  %v646_v45 = vmul.f32 0.5, %v5501_v42 }
 0x136   :  { %5629 = vtanh.f32 %v637_v33 }
 0x137   :  { %5631 = vtanh.f32 %v641_v37 }
 0x138   :  { %5633 = vtanh.f32 %v5500_v38 }
 0x139   :  { %5635 = vtanh.f32 %v646_v45 }
 0x140   :  { %v5630_v46 = vpop.eup %5629 }
 0x141   :  { %v5632_v49 = vpop.eup %5631  ;;  %v639_v50 = vmul.f32 0.5, %v5630_v46 }
 0x142   :  { %v643_v52 = vmul.f32 0.5, %v5632_v49  ;;  %v5634_v56 = vpop.eup %5633 }
 0x143   :  { %v640_v54 = vadd.f32 0.5, %v639_v50  ;;  %v5636_v4 = vpop.eup %5635 }
 0x144   :  { %v644_v58 = vadd.f32 0.5, %v643_v52  ;;  %v648_v8 = vmul.f32 0.5, %v5636_v4 }
 0x145   :  { %v651_v60 = vmul.f32 %v5634_v56, %v640_v54 }
 0x146   :  { %v650_v63 = vmul.f32 0.0, %v644_v58  ;;  %v649_v13 = vadd.f32 0.5, %v648_v8 }
 0x148   :  { %v6234_v1 = vadd.f32 %v651_v60, %v650_v63 }
 0x14a   :  { %5637 = vtanh.f32 %v6234_v1 }
 0x154   :  { %v5638_v22 = vpop.eup %5637 }
 0x155   :  { %v6237_v19 = vmul.f32 %v5638_v22, %v649_v13  ;;  %v1132_v13 = vld [vmem:[#allocation7 + $0x8] sm:$0xff]  ;;  %v1134_v22 = vld [vmem:[#allocation7 + $0x18] sm:$0xff] }
 0x157   :  { %790 = vmatmul.mubr.f32.vlgmr.msra.gmra.mrb[2].mxu0 %v6237_v19  ;;  %861 = vmatmul.mubr.f32.vlgmr.msra.gmra.mrb[2].mxu1 %v6237_v19 }
 0x158   :  { %4503 = vmatpush1.bf16.msra.mxu0 %v6022_v23  ;;  %4535 = vmatpush1.bf16.msra.mxu1 %v6025_v26 }
 0x159   :  { %4505 = vmatprep.subr.bf16.mxu0 %v6029_v30  ;;  %4537 = vmatprep.subr.bf16.mxu1 %v6036_v35 }
 0x15a   :  { %1024 = vmatprep.mubr.f32.mxu0 %v5865_v0  ;;  %1095 = vmatprep.mubr.f32.mxu1 %v5865_v0 }
 0x15c   :  { %4507 = vmatpush1.bf16.msra.mxu0 %v6038_v36  ;;  %4539 = vmatpush1.bf16.msra.mxu1 %v6042_v39 }
 0x15d   :  { %4509 = vmatprep.subr.bf16.mxu0 %v6046_v43  ;;  %4541 = vmatprep.subr.bf16.mxu1 %v6053_v48 }
 0x160   :  { %4511 = vmatpush1.bf16.msra.mxu0 %v6057_v51  ;;  %4543 = vmatpush1.bf16.msra.mxu1 %v6061_v55 }
 0x161   :  { %4513 = vmatprep.subr.bf16.mxu0 %v6065_v59  ;;  %4545 = vmatprep.subr.bf16.mxu1 %v6069_v62 }
 0x164   :  { %4515 = vmatpush1.bf16.msra.mxu0 %v6076_v3  ;;  %4547 = vmatpush1.bf16.msra.mxu1 %v6080_v6 }
 0x165   :  { %4517 = vmatprep.subr.bf16.mxu0 %v6084_v9  ;;  %4549 = vmatprep.subr.bf16.mxu1 %v6088_v12 }
 0x168   :  { %4519 = vmatpush1.bf16.msra.mxu0 %v6095_v16  ;;  %4551 = vmatpush1.bf16.msra.mxu1 %v6099_v20 }
 0x169   :  { %4521 = vmatprep.subr.bf16.mxu0 %v6103_v25  ;;  %4553 = vmatprep.subr.bf16.mxu1 %v6107_v29 }
 0x16c   :  { %4523 = vmatpush1.bf16.msra.mxu0 %v6114_v34  ;;  %4555 = vmatpush1.bf16.msra.mxu1 %v6118_v40 }
 0x16d   :  { %4525 = vmatprep.subr.bf16.mxu0 %v6122_v44  ;;  %4557 = vmatprep.subr.bf16.mxu1 %v6126_v47 }
 0x170   :  { %4527 = vmatpush1.bf16.msra.mxu0 %v6133_v53  ;;  %4559 = vmatpush1.bf16.msra.mxu1 %v6137_v57 }
 0x171   :  { %4529 = vmatprep.subr.bf16.mxu0 %v6141_v61  ;;  %4561 = vmatprep.subr.bf16.mxu1 %v6145_v2 }
 0x174   :  { %4531 = vmatpush1.bf16.msra.mxu0 %v6152_v5  ;;  %4563 = vmatpush1.bf16.msra.mxu1 %v6156_v7 }
 0x22a   :  { %v791_v23 = vpop.f32.mrb[2].mxu0  ;;  %v862_v26 = vpop.f32.mrb[2].mxu1 }
 0x22b   :  { %v5486_v30 = vadd.f32 %v791_v23, %v6214_v15  ;;  %v793_v35 = vpop.f32.mrb[3].mxu0  ;;  %v864_v36 = vpop.f32.mrb[3].mxu1  ;;  %v5502_v31 = vadd.f32 %v862_v26, %v6224_v21  ;;  %v1138_v26 = vld [vmem:[#allocation7 + $0x38] sm:$0xff] }
 0x22c   :  { %v5487_v39 = vadd.f32 %v793_v35, %v6219_v18  ;;  %v5503_v32 = vadd.f32 %v864_v36, %v6231_v41  ;;  %v1135_v35 = vld [vmem:[#allocation7 + $0x20] sm:$0xff]  ;;  %v6289_v36 = vpack.c.bf16 %v1138_v26, %v1134_v22  ;;  %v1389_v22 = vld [vmem:[#allocation7 + $0xb8] sm:$0xff] }
 0x22d   :  { %v871_v24 = vmul.f32 0.5, %v5486_v30  ;;  %v1131_v30 = vld [vmem:[#allocation7] sm:$0xff] }
 0x22e   :  { %v875_v27 = vmul.f32 0.5, %v5487_v39  ;;  %v880_v33 = vmul.f32 0.5, %v5503_v32  ;;  %v6291_v39 = vpack.c.bf16 %v1135_v35, %v1131_v30  ;;  %4597 = vmatprep.subr.bf16.mxu1 %v6289_v36  ;;  %v1140_v32 = vld [vmem:[#allocation7 + $0x48] sm:$0xff]  ;;  %v1382_v26 = vld [vmem:[#allocation7 + $0x80] sm:$0xff] }
 0x22f   :  { %5639 = vtanh.f32 %v871_v24  ;;  %v1133_v24 = vld [vmem:[#allocation7 + $0x10] sm:$0xff]  ;;  %v1386_v30 = vld [vmem:[#allocation7 + $0xa0] sm:$0xff] }
 0x230   :  { %5641 = vtanh.f32 %v875_v27  ;;  %v1137_v27 = vld [vmem:[#allocation7 + $0x30] sm:$0xff] }
 0x231   :  { %5643 = vtanh.f32 %v5502_v31  ;;  %v6294_v31 = vpack.c.bf16 %v1137_v27, %v1133_v24  ;;  %v6361_v24 = vpack.c.bf16 %v1386_v30, %v1382_v26  ;;  %v1384_v27 = vld [vmem:[#allocation7 + $0x90] sm:$0xff] }
 0x232   :  { %5645 = vtanh.f32 %v880_v33  ;;  %v1144_v33 = vld [vmem:[#allocation7 + $0x68] sm:$0xff]  ;;  %v1412_v26 = vld [vmem:[#allocation7 + $0x170] sm:$0xff] }
 0x239   :  { %v5640_v37 = vpop.eup %5639 }
 0x23a   :  { %v5642_v38 = vpop.eup %5641  ;;  %v873_v42 = vmul.f32 0.5, %v5640_v37  ;;  %v1142_v37 = vld [vmem:[#allocation7 + $0x58] sm:$0xff] }
 0x23b   :  { %v877_v45 = vmul.f32 0.5, %v5642_v38  ;;  %v5644_v49 = vpop.eup %5643  ;;  %v6299_v38 = vpack.c.bf16 %v1144_v33, %v1140_v32  ;;  %v1388_v32 = vld [vmem:[#allocation7 + $0xb0] sm:$0xff] }
 0x23c   :  { %v874_v46 = vadd.f32 0.5, %v873_v42  ;;  %v5646_v58 = vpop.eup %5645  ;;  %v1146_v42 = vld [vmem:[#allocation7 + $0x78] sm:$0xff]  ;;  %v6364_v33 = vpack.c.bf16 %v1388_v32, %v1384_v27  ;;  %v1415_v27 = vld [vmem:[#allocation7 + $0x188] sm:$0xff] }
 0x23d   :  { %v878_v50 = vadd.f32 0.5, %v877_v45  ;;  %v882_v60 = vmul.f32 0.5, %v5646_v58  ;;  %v1139_v45 = vld [vmem:[#allocation7 + $0x40] sm:$0xff]  ;;  %v1419_v32 = vld [vmem:[#allocation7 + $0x1a8] sm:$0xff] }
 0x23e   :  { %v885_v52 = vmul.f32 %v5644_v49, %v874_v46  ;;  %v1143_v46 = vld [vmem:[#allocation7 + $0x60] sm:$0xff]  ;;  %v6301_v49 = vpack.c.bf16 %v1146_v42, %v1142_v37  ;;  %v1391_v37 = vld [vmem:[#allocation7 + $0xc8] sm:$0xff] }
 0x23f   :  { %v884_v54 = vmul.f32 %v878_v50, %v6234_v1  ;;  %v883_v63 = vadd.f32 0.5, %v882_v60  ;;  %v1136_v1 = vld [vmem:[#allocation7 + $0x28] sm:$0xff]  ;;  %v6303_v50 = vpack.c.bf16 %v1143_v46, %v1139_v45  ;;  %v1393_v45 = vld [vmem:[#allocation7 + $0xd8] sm:$0xff] }
 0x240   :  { %v6287_v23 = vpack.c.bf16 %v1136_v1, %v1132_v13  ;;  %v1385_v13 = vld [vmem:[#allocation7 + $0x98] sm:$0xff]  ;;  %v1395_v42 = vld [vmem:[#allocation7 + $0xe8] sm:$0xff] }
 0x241   :  { %v6278_v56 = vadd.f32 %v885_v52, %v884_v54  ;;  %v1141_v52 = vld [vmem:[#allocation7 + $0x50] sm:$0xff]  ;;  %v6359_v35 = vpack.c.bf16 %v1389_v22, %v1385_v13  ;;  %v6369_v46 = vpack.c.bf16 %v1395_v42, %v1391_v37  ;;  %v1417_v37 = vld [vmem:[#allocation7 + $0x198] sm:$0xff]  ;;  %v6405_v42 = vpack.c.bf16 %v1419_v32, %v1415_v27 }
 0x242   :  { %4565 = vmatprep.subr.bf16.mxu0 %v6287_v23  ;;  %v1145_v54 = vld [vmem:[#allocation7 + $0x70] sm:$0xff] }
 0x243   :  { %5647 = vtanh.f32 %v6278_v56  ;;  %v6306_v58 = vpack.c.bf16 %v1145_v54, %v1141_v52  ;;  %v1397_v52 = vld [vmem:[#allocation7 + $0xf8] sm:$0xff]  ;;  %v1390_v54 = vld [vmem:[#allocation7 + $0xc0] sm:$0xff]  ;;  %v1408_v22 = vld [vmem:[#allocation7 + $0x150] sm:$0xff] }
 0x244   :  { %v6400_v30 = vpack.c.bf16 %v1412_v26, %v1408_v22 }
 0x24d   :  { %v5648_v4 = vpop.eup %5647 }
 0x24e   :  { %v6281_v8 = vmul.f32 %v5648_v4, %v883_v63  ;;  %v1387_v4 = vld [vmem:[#allocation7 + $0xa8] sm:$0xff] }
 0x250   :  { %1025 = vmatmul.mubr.f32.vlgmr.msra.gmra.mrb[4].mxu0 %v6281_v8  ;;  %1096 = vmatmul.mubr.f32.vlgmr.msra.gmra.mrb[4].mxu1 %v6281_v8 }
 0x251   :  { %1259 = vmatprep.mubr.f32.mxu0 %v5865_v0  ;;  %1330 = vmatprep.mubr.f32.mxu1 %v5865_v0 }
 0x252   :  { %4567 = vmatpush1.bf16.msra.mxu0 %v6291_v39  ;;  %4599 = vmatpush1.bf16.msra.mxu1 %v6294_v31 }
 0x253   :  { %4569 = vmatprep.subr.bf16.mxu0 %v6299_v38  ;;  %4601 = vmatprep.subr.bf16.mxu1 %v6301_v49 }
 0x256   :  { %4571 = vmatpush1.bf16.msra.mxu0 %v6303_v50  ;;  %4603 = vmatpush1.bf16.msra.mxu1 %v6306_v58 }
 0x257   :  { %4573 = vmatprep.subr.bf16.mxu0 %v6046_v43  ;;  %4605 = vmatprep.subr.bf16.mxu1 %v6053_v48 }
 0x25a   :  { %4575 = vmatpush1.bf16.msra.mxu0 %v6057_v51  ;;  %4607 = vmatpush1.bf16.msra.mxu1 %v6061_v55 }
 0x25b   :  { %4577 = vmatprep.subr.bf16.mxu0 %v6065_v59  ;;  %4609 = vmatprep.subr.bf16.mxu1 %v6069_v62 }
 0x25e   :  { %4579 = vmatpush1.bf16.msra.mxu0 %v6076_v3  ;;  %4611 = vmatpush1.bf16.msra.mxu1 %v6080_v6 }
 0x25f   :  { %4581 = vmatprep.subr.bf16.mxu0 %v6084_v9  ;;  %4613 = vmatprep.subr.bf16.mxu1 %v6088_v12 }
 0x262   :  { %4583 = vmatpush1.bf16.msra.mxu0 %v6095_v16  ;;  %4615 = vmatpush1.bf16.msra.mxu1 %v6099_v20 }
 0x263   :  { %4585 = vmatprep.subr.bf16.mxu0 %v6103_v25  ;;  %4617 = vmatprep.subr.bf16.mxu1 %v6107_v29 }
 0x266   :  { %4587 = vmatpush1.bf16.msra.mxu0 %v6114_v34  ;;  %4619 = vmatpush1.bf16.msra.mxu1 %v6118_v40 }
 0x267   :  { %4589 = vmatprep.subr.bf16.mxu0 %v6122_v44  ;;  %4621 = vmatprep.subr.bf16.mxu1 %v6126_v47 }
 0x26a   :  { %4591 = vmatpush1.bf16.msra.mxu0 %v6133_v53  ;;  %4623 = vmatpush1.bf16.msra.mxu1 %v6137_v57 }
 0x26b   :  { %4593 = vmatprep.subr.bf16.mxu0 %v6141_v61  ;;  %4625 = vmatprep.subr.bf16.mxu1 %v6145_v2 }
 0x26e   :  { %4595 = vmatpush1.bf16.msra.mxu0 %v6152_v5  ;;  %4627 = vmatpush1.bf16.msra.mxu1 %v6156_v7 }
 0x26f   :  { %4629 = vmatprep.subr.bf16.mxu0 %v6287_v23  ;;  %4661 = vmatprep.subr.bf16.mxu1 %v6289_v36 }
 0x323   :  { %v1026_v43 = vpop.f32.mrb[4].mxu0  ;;  %v1097_v48 = vpop.f32.mrb[4].mxu1 }
 0x324   :  { %v5488_v51 = vadd.f32 %v1026_v43, %v6214_v15  ;;  %v1028_v55 = vpop.f32.mrb[5].mxu0  ;;  %v1099_v59 = vpop.f32.mrb[5].mxu1  ;;  %v5504_v9 = vadd.f32 %v1097_v48, %v6224_v21  ;;  %v1394_v43 = vld [vmem:[#allocation7 + $0xe0] sm:$0xff]  ;;  %v6371_v48 = vpack.c.bf16 %v1397_v52, %v1393_v45  ;;  %v1421_v45 = vld [vmem:[#allocation7 + $0x1b8] sm:$0xff] }
 0x325   :  { %v5489_v62 = vadd.f32 %v1028_v55, %v6219_v18  ;;  %v5505_v12 = vadd.f32 %v1099_v59, %v6231_v41  ;;  %v1392_v55 = vld [vmem:[#allocation7 + $0xd0] sm:$0xff]  ;;  %v1414_v52 = vld [vmem:[#allocation7 + $0x180] sm:$0xff] }
 0x326   :  { %v1106_v3 = vmul.f32 0.5, %v5488_v51  ;;  %v6373_v51 = vpack.c.bf16 %v1394_v43, %v1390_v54  ;;  %v1396_v59 = vld [vmem:[#allocation7 + $0xf0] sm:$0xff]  ;;  %v1418_v54 = vld [vmem:[#allocation7 + $0x1a0] sm:$0xff]  ;;  %v6407_v43 = vpack.c.bf16 %v1421_v45, %v1417_v37 }
 0x327   :  { %v1110_v6 = vmul.f32 0.5, %v5489_v62  ;;  %v1115_v16 = vmul.f32 0.5, %v5505_v12  ;;  %v6376_v62 = vpack.c.bf16 %v1396_v59, %v1392_v55  ;;  %v6409_v55 = vpack.c.bf16 %v1418_v54, %v1414_v52  ;;  %v1416_v59 = vld [vmem:[#allocation7 + $0x190] sm:$0xff] }
 0x328   :  { %5649 = vtanh.f32 %v1106_v3  ;;  %v1399_v3 = vld [vmem:[#allocation7 + $0x108] sm:$0xff] }
 0x329   :  { %5651 = vtanh.f32 %v1110_v6  ;;  %v1403_v6 = vld [vmem:[#allocation7 + $0x128] sm:$0xff] }
 0x32a   :  { %5653 = vtanh.f32 %v5504_v9  ;;  %v1401_v9 = vld [vmem:[#allocation7 + $0x118] sm:$0xff]  ;;  %v6381_v12 = vpack.c.bf16 %v1403_v6, %v1399_v3  ;;  %v1420_v3 = vld [vmem:[#allocation7 + $0x1b0] sm:$0xff] }
 0x32b   :  { %5655 = vtanh.f32 %v1115_v16  ;;  %v1405_v16 = vld [vmem:[#allocation7 + $0x138] sm:$0xff]  ;;  %v6412_v6 = vpack.c.bf16 %v1420_v3, %v1416_v59 }
 0x332   :  { %v5650_v20 = vpop.eup %5649 }
 0x333   :  { %v5652_v25 = vpop.eup %5651  ;;  %v1108_v29 = vmul.f32 0.5, %v5650_v20  ;;  %v1398_v20 = vld [vmem:[#allocation7 + $0x100] sm:$0xff] }
 0x334   :  { %v1112_v34 = vmul.f32 0.5, %v5652_v25  ;;  %v5654_v44 = vpop.eup %5653  ;;  %v1402_v25 = vld [vmem:[#allocation7 + $0x120] sm:$0xff] }
 0x335   :  { %v1109_v40 = vadd.f32 0.5, %v1108_v29  ;;  %v5656_v2 = vpop.eup %5655  ;;  %v6383_v29 = vpack.c.bf16 %v1405_v16, %v1401_v9  ;;  %v1423_v9 = vld [vmem:[#allocation7 + $0x1c8] sm:$0xff] }
 0x336   :  { %v1113_v47 = vadd.f32 0.5, %v1112_v34  ;;  %v1117_v5 = vmul.f32 0.5, %v5656_v2  ;;  %v6385_v34 = vpack.c.bf16 %v1402_v25, %v1398_v20  ;;  %v1409_v2 = vld [vmem:[#allocation7 + $0x158] sm:$0xff]  ;;  %v1427_v16 = vld [vmem:[#allocation7 + $0x1e8] sm:$0xff] }
 0x337   :  { %v1120_v53 = vmul.f32 %v5654_v44, %v1109_v40  ;;  %v1400_v40 = vld [vmem:[#allocation7 + $0x110] sm:$0xff]  ;;  %v1425_v20 = vld [vmem:[#allocation7 + $0x1d8] sm:$0xff]  ;;  %v6417_v25 = vpack.c.bf16 %v1427_v16, %v1423_v9 }
 0x338   :  { %v1119_v57 = vmul.f32 %v1113_v47, %v6278_v56  ;;  %v1118_v7 = vadd.f32 0.5, %v1117_v5  ;;  %v1383_v56 = vld [vmem:[#allocation7 + $0x88] sm:$0xff]  ;;  %v1404_v44 = vld [vmem:[#allocation7 + $0x130] sm:$0xff] }
 0x339   :  { %v6357_v1 = vpack.c.bf16 %v1387_v4, %v1383_v56  ;;  %v6388_v47 = vpack.c.bf16 %v1404_v44, %v1400_v40  ;;  %v1410_v56 = vld [vmem:[#allocation7 + $0x160] sm:$0xff]  ;;  %v1429_v40 = vld [vmem:[#allocation7 + $0x1f8] sm:$0xff] }
 0x33a   :  { %v6342_v61 = vadd.f32 %v1120_v53, %v1119_v57  ;;  %v1407_v53 = vld [vmem:[#allocation7 + $0x148] sm:$0xff]  ;;  %v1422_v44 = vld [vmem:[#allocation7 + $0x1c0] sm:$0xff] }
 0x33b   :  { %v1411_v57 = vld [vmem:[#allocation7 + $0x168] sm:$0xff] }
 0x33c   :  { %5657 = vtanh.f32 %v6342_v61  ;;  %v6393_v5 = vpack.c.bf16 %v1411_v57, %v1407_v53  ;;  %v1426_v53 = vld [vmem:[#allocation7 + $0x1e0] sm:$0xff]  ;;  %v6419_v57 = vpack.c.bf16 %v1429_v40, %v1425_v20 }
 0x346   :  { %v5658_v60 = vpop.eup %5657 }
 0x347   :  { %v6345_v63 = vmul.f32 %v5658_v60, %v1118_v7  ;;  %v1413_v7 = vld [vmem:[#allocation7 + $0x178] sm:$0xff]  ;;  %v1406_v60 = vld [vmem:[#allocation7 + $0x140] sm:$0xff] }
 0x348   :  { %v6395_v4 = vpack.c.bf16 %v1413_v7, %v1409_v2  ;;  %v6397_v13 = vpack.c.bf16 %v1410_v56, %v1406_v60  ;;  %v6421_v2 = vpack.c.bf16 %v1426_v53, %v1422_v44  ;;  %v1424_v7 = vld [vmem:[#allocation7 + $0x1d0] sm:$0xff] }
 0x349   :  { %1260 = vmatmul.mubr.f32.vlgmr.msra.gmra.mrb[6].mxu0 %v6345_v63  ;;  %1331 = vmatmul.mubr.f32.vlgmr.msra.gmra.mrb[6].mxu1 %v6345_v63  ;;  %v1428_v60 = vld [vmem:[#allocation7 + $0x1f0] sm:$0xff] }
 0x34a   :  { %4631 = vmatpush1.bf16.msra.mxu0 %v6291_v39  ;;  %4663 = vmatpush1.bf16.msra.mxu1 %v6294_v31  ;;  %v6424_v56 = vpack.c.bf16 %v1428_v60, %v1424_v7 }
 0x34b   :  { %4633 = vmatprep.subr.bf16.mxu0 %v6299_v38  ;;  %4665 = vmatprep.subr.bf16.mxu1 %v6301_v49 }
 0x34c   :  { %1494 = vmatprep.mubr.f32.mxu0 %v5865_v0  ;;  %1565 = vmatprep.mubr.f32.mxu1 %v5865_v0 }
 0x34e   :  { %4635 = vmatpush1.bf16.msra.mxu0 %v6303_v50  ;;  %4667 = vmatpush1.bf16.msra.mxu1 %v6306_v58 }
 0x34f   :  { %4637 = vmatprep.subr.bf16.mxu0 %v6357_v1  ;;  %4669 = vmatprep.subr.bf16.mxu1 %v6359_v35 }
 0x352   :  { %4639 = vmatpush1.bf16.msra.mxu0 %v6361_v24  ;;  %4671 = vmatpush1.bf16.msra.mxu1 %v6364_v33 }
 0x353   :  { %4641 = vmatprep.subr.bf16.mxu0 %v6369_v46  ;;  %4673 = vmatprep.subr.bf16.mxu1 %v6371_v48 }
 0x356   :  { %4643 = vmatpush1.bf16.msra.mxu0 %v6373_v51  ;;  %4675 = vmatpush1.bf16.msra.mxu1 %v6376_v62 }
 0x357   :  { %4645 = vmatprep.subr.bf16.mxu0 %v6381_v12  ;;  %4677 = vmatprep.subr.bf16.mxu1 %v6383_v29 }
 0x35a   :  { %4647 = vmatpush1.bf16.msra.mxu0 %v6385_v34  ;;  %4679 = vmatpush1.bf16.msra.mxu1 %v6388_v47 }
 0x35b   :  { %4649 = vmatprep.subr.bf16.mxu0 %v6393_v5  ;;  %4681 = vmatprep.subr.bf16.mxu1 %v6395_v4 }
 0x35e   :  { %4651 = vmatpush1.bf16.msra.mxu0 %v6397_v13  ;;  %4683 = vmatpush1.bf16.msra.mxu1 %v6400_v30 }
 0x35f   :  { %4653 = vmatprep.subr.bf16.mxu0 %v6405_v42  ;;  %4685 = vmatprep.subr.bf16.mxu1 %v6407_v43 }
 0x362   :  { %4655 = vmatpush1.bf16.msra.mxu0 %v6409_v55  ;;  %4687 = vmatpush1.bf16.msra.mxu1 %v6412_v6 }
 0x363   :  { %4657 = vmatprep.subr.bf16.mxu0 %v6417_v25  ;;  %4689 = vmatprep.subr.bf16.mxu1 %v6419_v57 }
 0x366   :  { %4659 = vmatpush1.bf16.msra.mxu0 %v6421_v2  ;;  %4691 = vmatpush1.bf16.msra.mxu1 %v6424_v56 }
 0x367   :  { %4693 = vmatprep.subr.bf16.mxu0 %v6287_v23  ;;  %4725 = vmatprep.subr.bf16.mxu1 %v6289_v36 }
 0x41c   :  { %v1261_v22 = vpop.f32.mrb[6].mxu0  ;;  %v1332_v26 = vpop.f32.mrb[6].mxu1 }
 0x41d   :  { %v5490_v27 = vadd.f32 %v1261_v22, %v6214_v15  ;;  %v1263_v32 = vpop.f32.mrb[7].mxu0  ;;  %v1334_v37 = vpop.f32.mrb[7].mxu1  ;;  %v5506_v59 = vadd.f32 %v1332_v26, %v6224_v21 }
 0x41e   :  { %v5491_v45 = vadd.f32 %v1263_v32, %v6219_v18  ;;  %v5507_v3 = vadd.f32 %v1334_v37, %v6231_v41 }
 0x41f   :  { %v1341_v52 = vmul.f32 0.5, %v5490_v27 }
 0x420   :  { %v1345_v54 = vmul.f32 0.5, %v5491_v45  ;;  %v1350_v9 = vmul.f32 0.5, %v5507_v3 }
 0x421   :  { %5659 = vtanh.f32 %v1341_v52 }
 0x422   :  { %5661 = vtanh.f32 %v1345_v54 }
 0x423   :  { %5663 = vtanh.f32 %v5506_v59 }
 0x424   :  { %5665 = vtanh.f32 %v1350_v9 }
 0x42b   :  { %v5660_v16 = vpop.eup %5659 }
 0x42c   :  { %v5662_v20 = vpop.eup %5661  ;;  %v1343_v40 = vmul.f32 0.5, %v5660_v16 }
 0x42d   :  { %v1347_v44 = vmul.f32 0.5, %v5662_v20  ;;  %v5664_v7 = vpop.eup %5663 }
 0x42e   :  { %v1344_v53 = vadd.f32 0.5, %v1343_v40  ;;  %v5666_v26 = vpop.eup %5665 }
 0x42f   :  { %v1348_v60 = vadd.f32 0.5, %v1347_v44  ;;  %v1352_v45 = vmul.f32 0.5, %v5666_v26 }
 0x430   :  { %v1355_v22 = vmul.f32 %v5664_v7, %v1344_v53 }
 0x431   :  { %v1354_v27 = vmul.f32 %v1348_v60, %v6342_v61  ;;  %v1353_v52 = vadd.f32 0.5, %v1352_v45 }
 0x433   :  { %v6436_v32 = vadd.f32 %v1355_v22, %v1354_v27 }
 0x435   :  { %5667 = vtanh.f32 %v6436_v32 }
 0x43f   :  { %v5668_v37 = vpop.eup %5667 }
 0x440   :  { %v6439_v54 = vmul.f32 %v5668_v37, %v1353_v52 }
 0x442   :  { %1495 = vmatmul.mubr.f32.vlgmr.msra.gmra.mrb[8].mxu0 %v6439_v54  ;;  %1566 = vmatmul.mubr.f32.vlgmr.msra.gmra.mrb[8].mxu1 %v6439_v54 }
 0x443   :  { %4695 = vmatpush1.bf16.msra.mxu0 %v6291_v39  ;;  %4727 = vmatpush1.bf16.msra.mxu1 %v6294_v31 }
 0x444   :  { %4697 = vmatprep.subr.bf16.mxu0 %v6299_v38  ;;  %4729 = vmatprep.subr.bf16.mxu1 %v6301_v49 }
 0x445   :  { %1729 = vmatprep.mubr.f32.mxu0 %v5865_v0  ;;  %1800 = vmatprep.mubr.f32.mxu1 %v5865_v0 }
 0x447   :  { %4699 = vmatpush1.bf16.msra.mxu0 %v6303_v50  ;;  %4731 = vmatpush1.bf16.msra.mxu1 %v6306_v58 }
 0x448   :  { %4701 = vmatprep.subr.bf16.mxu0 %v6357_v1  ;;  %4733 = vmatprep.subr.bf16.mxu1 %v6359_v35 }
 0x44b   :  { %4703 = vmatpush1.bf16.msra.mxu0 %v6361_v24  ;;  %4735 = vmatpush1.bf16.msra.mxu1 %v6364_v33 }
 0x44c   :  { %4705 = vmatprep.subr.bf16.mxu0 %v6369_v46  ;;  %4737 = vmatprep.subr.bf16.mxu1 %v6371_v48 }
 0x44f   :  { %4707 = vmatpush1.bf16.msra.mxu0 %v6373_v51  ;;  %4739 = vmatpush1.bf16.msra.mxu1 %v6376_v62 }
 0x450   :  { %4709 = vmatprep.subr.bf16.mxu0 %v6381_v12  ;;  %4741 = vmatprep.subr.bf16.mxu1 %v6383_v29 }
 0x453   :  { %4711 = vmatpush1.bf16.msra.mxu0 %v6385_v34  ;;  %4743 = vmatpush1.bf16.msra.mxu1 %v6388_v47 }
 0x454   :  { %4713 = vmatprep.subr.bf16.mxu0 %v6393_v5  ;;  %4745 = vmatprep.subr.bf16.mxu1 %v6395_v4 }
 0x457   :  { %4715 = vmatpush1.bf16.msra.mxu0 %v6397_v13  ;;  %4747 = vmatpush1.bf16.msra.mxu1 %v6400_v30 }
 0x458   :  { %4717 = vmatprep.subr.bf16.mxu0 %v6405_v42  ;;  %4749 = vmatprep.subr.bf16.mxu1 %v6407_v43 }
 0x45b   :  { %4719 = vmatpush1.bf16.msra.mxu0 %v6409_v55  ;;  %4751 = vmatpush1.bf16.msra.mxu1 %v6412_v6 }
 0x45c   :  { %4721 = vmatprep.subr.bf16.mxu0 %v6417_v25  ;;  %4753 = vmatprep.subr.bf16.mxu1 %v6419_v57 }
 0x45f   :  { %4723 = vmatpush1.bf16.msra.mxu0 %v6421_v2  ;;  %4755 = vmatpush1.bf16.msra.mxu1 %v6424_v56 }
 0x460   :  { %4757 = vmatprep.subr.bf16.mxu0 %v6287_v23  ;;  %4789 = vmatprep.subr.bf16.mxu1 %v6289_v36 }
 0x515   :  { %v1496_v61 = vpop.f32.mrb[8].mxu0  ;;  %v1567_v59 = vpop.f32.mrb[8].mxu1 }
 0x516   :  { %v5492_v3 = vadd.f32 %v1496_v61, %v6214_v15  ;;  %v1498_v9 = vpop.f32.mrb[9].mxu0  ;;  %v1569_v16 = vpop.f32.mrb[9].mxu1  ;;  %v5508_v53 = vadd.f32 %v1567_v59, %v6224_v21 }
 0x517   :  { %v5493_v20 = vadd.f32 %v1498_v9, %v6219_v18  ;;  %v5509_v7 = vadd.f32 %v1569_v16, %v6231_v41 }
 0x518   :  { %v1576_v40 = vmul.f32 0.5, %v5492_v3 }
 0x519   :  { %v1580_v44 = vmul.f32 0.5, %v5493_v20  ;;  %v1585_v23 = vmul.f32 0.5, %v5509_v7 }
 0x51a   :  { %5669 = vtanh.f32 %v1576_v40 }
 0x51b   :  { %5671 = vtanh.f32 %v1580_v44 }
 0x51c   :  { %5673 = vtanh.f32 %v5508_v53 }
 0x51d   :  { %5675 = vtanh.f32 %v1585_v23 }
 0x524   :  { %v5670_v60 = vpop.eup %5669 }
 0x525   :  { %v5672_v36 = vpop.eup %5671  ;;  %v1578_v22 = vmul.f32 0.5, %v5670_v60 }
 0x526   :  { %v1582_v27 = vmul.f32 0.5, %v5672_v36  ;;  %v5674_v45 = vpop.eup %5673 }
 0x527   :  { %v1579_v26 = vadd.f32 0.5, %v1578_v22  ;;  %v5676_v59 = vpop.eup %5675 }
 0x528   :  { %v1583_v52 = vadd.f32 0.5, %v1582_v27  ;;  %v1587_v9 = vmul.f32 0.5, %v5676_v59 }
 0x529   :  { %v1590_v37 = vmul.f32 %v5674_v45, %v1579_v26 }
 0x52a   :  { %v1589_v61 = vmul.f32 %v1583_v52, %v6436_v32  ;;  %v1588_v20 = vadd.f32 0.5, %v1587_v9 }
 0x52c   :  { %v6482_v3 = vadd.f32 %v1590_v37, %v1589_v61 }
 0x52e   :  { %5677 = vtanh.f32 %v6482_v3 }
 0x538   :  { %v5678_v16 = vpop.eup %5677 }
 0x539   :  { %v6485_v40 = vmul.f32 %v5678_v16, %v1588_v20 }
 0x53b   :  { %1730 = vmatmul.mubr.f32.vlgmr.msra.gmra.mrb[10].mxu0 %v6485_v40  ;;  %1801 = vmatmul.mubr.f32.vlgmr.msra.gmra.mrb[10].mxu1 %v6485_v40 }
 0x53c   :  { %4759 = vmatpush1.bf16.msra.mxu0 %v6291_v39  ;;  %4791 = vmatpush1.bf16.msra.mxu1 %v6294_v31 }
 0x53d   :  { %4761 = vmatprep.subr.bf16.mxu0 %v6299_v38  ;;  %4793 = vmatprep.subr.bf16.mxu1 %v6301_v49 }
 0x53e   :  { %1964 = vmatprep.mubr.f32.mxu0 %v5865_v0  ;;  %2035 = vmatprep.mubr.f32.mxu1 %v5865_v0 }
 0x540   :  { %4763 = vmatpush1.bf16.msra.mxu0 %v6303_v50  ;;  %4795 = vmatpush1.bf16.msra.mxu1 %v6306_v58 }
 0x541   :  { %4765 = vmatprep.subr.bf16.mxu0 %v6357_v1  ;;  %4797 = vmatprep.subr.bf16.mxu1 %v6359_v35 }
 0x544   :  { %4767 = vmatpush1.bf16.msra.mxu0 %v6361_v24  ;;  %4799 = vmatpush1.bf16.msra.mxu1 %v6364_v33 }
 0x545   :  { %4769 = vmatprep.subr.bf16.mxu0 %v6369_v46  ;;  %4801 = vmatprep.subr.bf16.mxu1 %v6371_v48 }
 0x548   :  { %4771 = vmatpush1.bf16.msra.mxu0 %v6373_v51  ;;  %4803 = vmatpush1.bf16.msra.mxu1 %v6376_v62 }
 0x549   :  { %4773 = vmatprep.subr.bf16.mxu0 %v6381_v12  ;;  %4805 = vmatprep.subr.bf16.mxu1 %v6383_v29 }
 0x54c   :  { %4775 = vmatpush1.bf16.msra.mxu0 %v6385_v34  ;;  %4807 = vmatpush1.bf16.msra.mxu1 %v6388_v47 }
 0x54d   :  { %4777 = vmatprep.subr.bf16.mxu0 %v6393_v5  ;;  %4809 = vmatprep.subr.bf16.mxu1 %v6395_v4 }
 0x550   :  { %4779 = vmatpush1.bf16.msra.mxu0 %v6397_v13  ;;  %4811 = vmatpush1.bf16.msra.mxu1 %v6400_v30 }
 0x551   :  { %4781 = vmatprep.subr.bf16.mxu0 %v6405_v42  ;;  %4813 = vmatprep.subr.bf16.mxu1 %v6407_v43 }
 0x554   :  { %4783 = vmatpush1.bf16.msra.mxu0 %v6409_v55  ;;  %4815 = vmatpush1.bf16.msra.mxu1 %v6412_v6 }
 0x555   :  { %4785 = vmatprep.subr.bf16.mxu0 %v6417_v25  ;;  %4817 = vmatprep.subr.bf16.mxu1 %v6419_v57 }
 0x558   :  { %4787 = vmatpush1.bf16.msra.mxu0 %v6421_v2  ;;  %4819 = vmatpush1.bf16.msra.mxu1 %v6424_v56 }
 0x60e   :  { %v1731_v39 = vpop.f32.mrb[10].mxu0  ;;  %v1802_v31 = vpop.f32.mrb[10].mxu1 }
 0x60f   :  { %v5494_v38 = vadd.f32 %v1731_v39, %v6214_v15  ;;  %v1733_v49 = vpop.f32.mrb[11].mxu0  ;;  %v1804_v50 = vpop.f32.mrb[11].mxu1  ;;  %v5510_v53 = vadd.f32 %v1802_v31, %v6224_v21 }
 0x610   :  { %v5495_v58 = vadd.f32 %v1733_v49, %v6219_v18  ;;  %v5511_v7 = vadd.f32 %v1804_v50, %v6231_v41  ;;  %v2074_v49 = vld [vmem:[#allocation7 + $0x18] sm:$0xff] }
 0x611   :  { %v1811_v32 = vmul.f32 0.5, %v5494_v38  ;;  %v2072_v38 = vld [vmem:[#allocation7 + $0x8] sm:$0xff] }
 0x612   :  { %v1815_v44 = vmul.f32 0.5, %v5495_v58  ;;  %v1820_v23 = vmul.f32 0.5, %v5511_v7  ;;  %v2078_v58 = vld [vmem:[#allocation7 + $0x38] sm:$0xff] }
 0x613   :  { %5679 = vtanh.f32 %v1811_v32  ;;  %v2071_v32 = vld [vmem:[#allocation7] sm:$0xff] }
 0x614   :  { %5681 = vtanh.f32 %v1815_v44  ;;  %v2075_v44 = vld [vmem:[#allocation7 + $0x20] sm:$0xff] }
 0x615   :  { %5683 = vtanh.f32 %v5510_v53  ;;  %v4852_v53 = vpack.c.bf16 %v2078_v58, %v2074_v49  ;;  %v4822_v7 = vpack.c.bf16 %v2075_v44, %v2071_v32  ;;  %v2311_v44 = vld [vmem:[#allocation9] sm:$0xff] }
 0x616   :  { %5685 = vtanh.f32 %v1820_v23  ;;  %v2073_v23 = vld [vmem:[#allocation7 + $0x10] sm:$0xff] }
 0x617   :  { %4853 = vmatprep.subr.bf16.mxu1 %v4852_v53  ;;  %v2315_v53 = vld [vmem:[#allocation9 + $0x20] sm:$0xff] }
 0x61d   :  { %v5680_v60 = vpop.eup %5679 }
 0x61e   :  { %v5682_v36 = vpop.eup %5681  ;;  %v1813_v22 = vmul.f32 0.5, %v5680_v60  ;;  %v2077_v60 = vld [vmem:[#allocation7 + $0x30] sm:$0xff] }
 0x61f   :  { %v1817_v27 = vmul.f32 0.5, %v5682_v36  ;;  %v5684_v45 = vpop.eup %5683  ;;  %v4854_v36 = vpack.c.bf16 %v2077_v60, %v2073_v23  ;;  %v2317_v23 = vld [vmem:[#allocation9 + $0x30] sm:$0xff]  ;;  %v2320_v60 = vld [vmem:[#allocation9 + $0x48] sm:$0xff] }
 0x620   :  { %v1814_v26 = vadd.f32 0.5, %v1813_v22  ;;  %v5686_v9 = vpop.eup %5685  ;;  %v2080_v22 = vld [vmem:[#allocation7 + $0x48] sm:$0xff] }
 0x621   :  { %v1818_v52 = vadd.f32 0.5, %v1817_v27  ;;  %v1822_v20 = vmul.f32 0.5, %v5686_v9  ;;  %v2084_v27 = vld [vmem:[#allocation7 + $0x68] sm:$0xff] }
 0x622   :  { %v1825_v37 = vmul.f32 %v5684_v45, %v1814_v26  ;;  %v2082_v26 = vld [vmem:[#allocation7 + $0x58] sm:$0xff]  ;;  %v4824_v45 = vpack.c.bf16 %v2084_v27, %v2080_v22 }
 0x623   :  { %v1824_v61 = vmul.f32 %v1818_v52, %v6482_v3  ;;  %v1823_v16 = vadd.f32 0.5, %v1822_v20  ;;  %v2076_v3 = vld [vmem:[#allocation7 + $0x28] sm:$0xff]  ;;  %v2086_v52 = vld [vmem:[#allocation7 + $0x78] sm:$0xff] }
 0x624   :  { %v4820_v50 = vpack.c.bf16 %v2076_v3, %v2072_v38  ;;  %v4856_v9 = vpack.c.bf16 %v2086_v52, %v2082_v26  ;;  %v2322_v22 = vld [vmem:[#allocation9 + $0x58] sm:$0xff]  ;;  %v4886_v52 = vpack.c.bf16 %v2315_v53, %v2311_v44 }
 0x625   :  { %v6526_v59 = vadd.f32 %v1825_v37, %v1824_v61  ;;  %v2079_v37 = vld [vmem:[#allocation7 + $0x40] sm:$0xff]  ;;  %v2326_v27 = vld [vmem:[#allocation9 + $0x78] sm:$0xff] }
 0x626   :  { %4821 = vmatprep.subr.bf16.mxu0 %v4820_v50  ;;  %v2083_v61 = vld [vmem:[#allocation7 + $0x60] sm:$0xff] }
 0x627   :  { %5687 = vtanh.f32 %v6526_v59  ;;  %v4826_v20 = vpack.c.bf16 %v2083_v61, %v2079_v37  ;;  %v2319_v61 = vld [vmem:[#allocation9 + $0x40] sm:$0xff] }
 0x631   :  { %v5688_v39 = vpop.eup %5687 }
 0x632   :  { %v6529_v31 = vmul.f32 %v5688_v39, %v1823_v16  ;;  %v2081_v16 = vld [vmem:[#allocation7 + $0x50] sm:$0xff] }
 0x633   :  { %v2085_v39 = vld [vmem:[#allocation7 + $0x70] sm:$0xff] }
 0x634   :  { %1965 = vmatmul.mubr.f32.vlgmr.msra.gmra.mrb[12].mxu0 %v6529_v31  ;;  %2036 = vmatmul.mubr.f32.vlgmr.msra.gmra.mrb[12].mxu1 %v6529_v31  ;;  %v4858_v38 = vpack.c.bf16 %v2085_v39, %v2081_v16  ;;  %v4920_v16 = vpack.c.bf16 %v2326_v27, %v2322_v22  ;;  %v2321_v39 = vld [vmem:[#allocation9 + $0x50] sm:$0xff] }
 0x635   :  { %2199 = vmatprep.mubr.f32.mxu0 %v5865_v0  ;;  %2270 = vmatprep.mubr.f32.mxu1 %v5865_v0  ;;  %v2345_v22 = vld [vmem:[#allocation9 + $0x110] sm:$0xff] }
 0x636   :  { %4823 = vmatpush1.bf16.msra.mxu0 %v4822_v7  ;;  %4855 = vmatpush1.bf16.msra.mxu1 %v4854_v36  ;;  %v2313_v7 = vld [vmem:[#allocation9 + $0x10] sm:$0xff]  ;;  %v2324_v36 = vld [vmem:[#allocation9 + $0x68] sm:$0xff] }
 0x637   :  { %4825 = vmatprep.subr.bf16.mxu0 %v4824_v45  ;;  %4857 = vmatprep.subr.bf16.mxu1 %v4856_v9  ;;  %v4918_v37 = vpack.c.bf16 %v2317_v23, %v2313_v7  ;;  %v2343_v7 = vld [vmem:[#allocation9 + $0x100] sm:$0xff]  ;;  %v2349_v27 = vld [vmem:[#allocation9 + $0x130] sm:$0xff] }
 0x638   :  { %v2347_v23 = vld [vmem:[#allocation9 + $0x120] sm:$0xff] }
 0x63a   :  { %4827 = vmatpush1.bf16.msra.mxu0 %v4826_v20  ;;  %4859 = vmatpush1.bf16.msra.mxu1 %v4858_v38  ;;  %v4888_v20 = vpack.c.bf16 %v2324_v36, %v2320_v60  ;;  %v2325_v38 = vld [vmem:[#allocation9 + $0x70] sm:$0xff] }
 0x63b   :  { %4829 = vmatprep.subr.bf16.mxu0 %v6357_v1  ;;  %4861 = vmatprep.subr.bf16.mxu1 %v6359_v35  ;;  %v2312_v1 = vld [vmem:[#allocation9 + $0x8] sm:$0xff] }
 0x63c   :  { %v2316_v35 = vld [vmem:[#allocation9 + $0x28] sm:$0xff] }
 0x63e   :  { %4831 = vmatpush1.bf16.msra.mxu0 %v6361_v24  ;;  %4863 = vmatpush1.bf16.msra.mxu1 %v6364_v33  ;;  %v2314_v24 = vld [vmem:[#allocation9 + $0x18] sm:$0xff]  ;;  %v4884_v33 = vpack.c.bf16 %v2316_v35, %v2312_v1  ;;  %v2328_v1 = vld [vmem:[#allocation9 + $0x88] sm:$0xff] }
 0x63f   :  { %4833 = vmatprep.subr.bf16.mxu0 %v6369_v46  ;;  %4865 = vmatprep.subr.bf16.mxu1 %v6371_v48  ;;  %v2318_v46 = vld [vmem:[#allocation9 + $0x38] sm:$0xff]  ;;  %v2332_v35 = vld [vmem:[#allocation9 + $0xa8] sm:$0xff] }
 0x640   :  { %v4916_v48 = vpack.c.bf16 %v2318_v46, %v2314_v24  ;;  %v2330_v24 = vld [vmem:[#allocation9 + $0x98] sm:$0xff] }
 0x642   :  { %4835 = vmatpush1.bf16.msra.mxu0 %v6373_v51  ;;  %4867 = vmatpush1.bf16.msra.mxu1 %v6376_v62 }
 0x643   :  { %4837 = vmatprep.subr.bf16.mxu0 %v6381_v12  ;;  %4869 = vmatprep.subr.bf16.mxu1 %v6383_v29 }
 0x646   :  { %4839 = vmatpush1.bf16.msra.mxu0 %v6385_v34  ;;  %4871 = vmatpush1.bf16.msra.mxu1 %v6388_v47 }
 0x647   :  { %4841 = vmatprep.subr.bf16.mxu0 %v6393_v5  ;;  %4873 = vmatprep.subr.bf16.mxu1 %v6395_v4 }
 0x64a   :  { %4843 = vmatpush1.bf16.msra.mxu0 %v6397_v13  ;;  %4875 = vmatpush1.bf16.msra.mxu1 %v6400_v30 }
 0x64b   :  { %4845 = vmatprep.subr.bf16.mxu0 %v6405_v42  ;;  %4877 = vmatprep.subr.bf16.mxu1 %v6407_v43 }
 0x64e   :  { %4847 = vmatpush1.bf16.msra.mxu0 %v6409_v55  ;;  %4879 = vmatpush1.bf16.msra.mxu1 %v6412_v6 }
 0x64f   :  { %4849 = vmatprep.subr.bf16.mxu0 %v6417_v25  ;;  %4881 = vmatprep.subr.bf16.mxu1 %v6419_v57 }
 0x652   :  { %4851 = vmatpush1.bf16.msra.mxu0 %v6421_v2  ;;  %4883 = vmatpush1.bf16.msra.mxu1 %v6424_v56 }
 0x653   :  { %4885 = vmatprep.subr.bf16.mxu0 %v4884_v33  ;;  %4917 = vmatprep.subr.bf16.mxu1 %v4916_v48  ;;  %v2334_v33 = vld [vmem:[#allocation9 + $0xb8] sm:$0xff]  ;;  %v4922_v48 = vpack.c.bf16 %v2325_v38, %v2321_v39 }
 0x707   :  { %v1966_v51 = vpop.f32.mrb[12].mxu0  ;;  %v2037_v62 = vpop.f32.mrb[12].mxu1 }
 0x708   :  { %v5496_v12 = vadd.f32 %v1966_v51, %v6214_v15  ;;  %v1968_v29 = vpop.f32.mrb[13].mxu0  ;;  %v2039_v34 = vpop.f32.mrb[13].mxu1  ;;  %v5512_v13 = vadd.f32 %v2037_v62, %v6224_v21  ;;  %v2327_v51 = vld [vmem:[#allocation9 + $0x80] sm:$0xff] }
 0x709   :  { %v5497_v47 = vadd.f32 %v1968_v29, %v6219_v18  ;;  %v5513_v30 = vadd.f32 %v2039_v34, %v6231_v41  ;;  %v2331_v62 = vld [vmem:[#allocation9 + $0xa0] sm:$0xff]  ;;  %v4924_v29 = vpack.c.bf16 %v2334_v33, %v2330_v24  ;;  %v2329_v34 = vld [vmem:[#allocation9 + $0x90] sm:$0xff]  ;;  %v2360_v24 = vld [vmem:[#allocation9 + $0x188] sm:$0xff] }
 0x70a   :  { %v2046_v5 = vmul.f32 0.5, %v5496_v12  ;;  %v4892_v12 = vpack.c.bf16 %v2332_v35, %v2328_v1  ;;  %v2353_v1 = vld [vmem:[#allocation9 + $0x150] sm:$0xff]  ;;  %v2364_v33 = vld [vmem:[#allocation9 + $0x1a8] sm:$0xff] }
 0x70b   :  { %v2050_v4 = vmul.f32 0.5, %v5497_v47  ;;  %v2055_v42 = vmul.f32 0.5, %v5513_v30  ;;  %v2333_v47 = vld [vmem:[#allocation9 + $0xb0] sm:$0xff]  ;;  %v2342_v30 = vld [vmem:[#allocation9 + $0xf8] sm:$0xff] }
 0x70c   :  { %5689 = vtanh.f32 %v2046_v5  ;;  %v2336_v5 = vld [vmem:[#allocation9 + $0xc8] sm:$0xff]  ;;  %v2357_v35 = vld [vmem:[#allocation9 + $0x170] sm:$0xff] }
 0x70d   :  { %5691 = vtanh.f32 %v2050_v4  ;;  %v2340_v4 = vld [vmem:[#allocation9 + $0xe8] sm:$0xff] }
 0x70e   :  { %5693 = vtanh.f32 %v5512_v13  ;;  %v2338_v13 = vld [vmem:[#allocation9 + $0xd8] sm:$0xff] }
 0x70f   :  { %5695 = vtanh.f32 %v2055_v42  ;;  %v4894_v42 = vpack.c.bf16 %v2331_v62, %v2327_v51  ;;  %v4938_v62 = vpack.c.bf16 %v2357_v35, %v2353_v1  ;;  %v2685_v1 = vld [vmem:[#allocation11 + $0xa8] sm:$0xff]  ;;  %v2683_v35 = vld [vmem:[#allocation11 + $0x98] sm:$0xff] }
 0x716   :  { %v5690_v43 = vpop.eup %5689 }
 0x717   :  { %v5692_v55 = vpop.eup %5691  ;;  %v2048_v6 = vmul.f32 0.5, %v5690_v43  ;;  %v4926_v43 = vpack.c.bf16 %v2333_v47, %v2329_v34  ;;  %v4908_v34 = vpack.c.bf16 %v2364_v33, %v2360_v24  ;;  %v2687_v33 = vld [vmem:[#allocation11 + $0xb8] sm:$0xff] }
 0x718   :  { %v2052_v25 = vmul.f32 0.5, %v5692_v55  ;;  %v5694_v2 = vpop.eup %5693  ;;  %v2335_v55 = vld [vmem:[#allocation9 + $0xc0] sm:$0xff] }
 0x719   :  { %v2049_v57 = vadd.f32 0.5, %v2048_v6  ;;  %v5696_v58 = vpop.eup %5695  ;;  %v2339_v6 = vld [vmem:[#allocation9 + $0xe0] sm:$0xff] }
 0x71a   :  { %v2053_v56 = vadd.f32 0.5, %v2052_v25  ;;  %v2057_v32 = vmul.f32 0.5, %v5696_v58  ;;  %v4896_v25 = vpack.c.bf16 %v2340_v4, %v2336_v5  ;;  %v2346_v58 = vld [vmem:[#allocation9 + $0x118] sm:$0xff]  ;;  %v4898_v44 = vpack.c.bf16 %v2339_v6, %v2335_v55  ;;  %v2361_v5 = vld [vmem:[#allocation9 + $0x190] sm:$0xff] }
 0x71b   :  { %v2060_v3 = vmul.f32 %v5694_v2, %v2049_v57  ;;  %v4928_v57 = vpack.c.bf16 %v2342_v30, %v2338_v13  ;;  %v2337_v2 = vld [vmem:[#allocation9 + $0xd0] sm:$0xff]  ;;  %v2368_v13 = vld [vmem:[#allocation9 + $0x1c8] sm:$0xff] }
 0x71c   :  { %v2059_v49 = vmul.f32 %v2053_v56, %v6526_v59  ;;  %v2058_v26 = vadd.f32 0.5, %v2057_v32  ;;  %v2323_v59 = vld [vmem:[#allocation9 + $0x60] sm:$0xff]  ;;  %v2341_v56 = vld [vmem:[#allocation9 + $0xf0] sm:$0xff]  ;;  %v2350_v32 = vld [vmem:[#allocation9 + $0x138] sm:$0xff] }
 0x71d   :  { %v4890_v46 = vpack.c.bf16 %v2323_v59, %v2319_v61  ;;  %v4930_v53 = vpack.c.bf16 %v2341_v56, %v2337_v2  ;;  %v4932_v36 = vpack.c.bf16 %v2350_v32, %v2346_v58  ;;  %v4902_v61 = vpack.c.bf16 %v2347_v23, %v2343_v7  ;;  %v2365_v4 = vld [vmem:[#allocation9 + $0x1b0] sm:$0xff]  ;;  %v2372_v30 = vld [vmem:[#allocation9 + $0x1e8] sm:$0xff]  ;;  %v2371_v56 = vld [vmem:[#allocation9 + $0x1e0] sm:$0xff] }
 0x71e   :  { %v6564_v50 = vadd.f32 %v2060_v3, %v2059_v49  ;;  %v2344_v3 = vld [vmem:[#allocation9 + $0x108] sm:$0xff]  ;;  %v4934_v59 = vpack.c.bf16 %v2349_v27, %v2345_v22  ;;  %v4942_v6 = vpack.c.bf16 %v2365_v4, %v2361_v5  ;;  %v2666_v23 = vld [vmem:[#allocation11 + $0x10] sm:$0xff]  ;;  %v2675_v27 = vld [vmem:[#allocation11 + $0x58] sm:$0xff] }
 0x71f   :  { %v2348_v49 = vld [vmem:[#allocation9 + $0x128] sm:$0xff]  ;;  %v2691_v4 = vld [vmem:[#allocation11 + $0xd8] sm:$0xff] }
 0x720   :  { %5697 = vtanh.f32 %v6564_v50  ;;  %v4900_v60 = vpack.c.bf16 %v2348_v49, %v2344_v3  ;;  %v2369_v3 = vld [vmem:[#allocation9 + $0x1d0] sm:$0xff]  ;;  %v2677_v22 = vld [vmem:[#allocation11 + $0x68] sm:$0xff] }
 0x721   :  { %v2373_v49 = vld [vmem:[#allocation9 + $0x1f0] sm:$0xff]  ;;  %v2693_v5 = vld [vmem:[#allocation11 + $0xe8] sm:$0xff] }
 0x722   :  { %v4946_v32 = vpack.c.bf16 %v2373_v49, %v2369_v3  ;;  %v2701_v3 = vld [vmem:[#allocation11 + $0x128] sm:$0xff]  ;;  %v2699_v49 = vld [vmem:[#allocation11 + $0x118] sm:$0xff] }
 0x72a   :  { %v5698_v45 = vpop.eup %5697 }
 0x72b   :  { %v6567_v9 = vmul.f32 %v5698_v45, %v2058_v26  ;;  %v2352_v26 = vld [vmem:[#allocation9 + $0x148] sm:$0xff] }
 0x72c   :  { %v2356_v45 = vld [vmem:[#allocation9 + $0x168] sm:$0xff] }
 0x72d   :  { %2200 = vmatmul.mubr.f32.vlgmr.msra.gmra.mrb[14].mxu0 %v6567_v9  ;;  %2271 = vmatmul.mubr.f32.vlgmr.msra.gmra.mrb[14].mxu1 %v6567_v9  ;;  %v4904_v39 = vpack.c.bf16 %v2356_v45, %v2352_v26  ;;  %v2679_v45 = vld [vmem:[#allocation11 + $0x78] sm:$0xff] }
 0x72e   :  { %4887 = vmatpush1.bf16.msra.mxu0 %v4886_v52  ;;  %4919 = vmatpush1.bf16.msra.mxu1 %v4918_v37  ;;  %v2354_v52 = vld [vmem:[#allocation9 + $0x158] sm:$0xff] }
 0x72f   :  { %4889 = vmatprep.subr.bf16.mxu0 %v4888_v20  ;;  %4921 = vmatprep.subr.bf16.mxu1 %v4920_v16  ;;  %v2358_v37 = vld [vmem:[#allocation9 + $0x178] sm:$0xff]  ;;  %v2351_v20 = vld [vmem:[#allocation9 + $0x140] sm:$0xff] }
 0x730   :  { %2461 = vmatprep.mubr.f32.mxu0 %v5865_v0  ;;  %2574 = vmatprep.mubr.f32.mxu1 %v5865_v0  ;;  %v2355_v16 = vld [vmem:[#allocation9 + $0x160] sm:$0xff]  ;;  %v4936_v38 = vpack.c.bf16 %v2358_v37, %v2354_v52 }
 0x731   :  { %v4906_v51 = vpack.c.bf16 %v2355_v16, %v2351_v20  ;;  %v2672_v52 = vld [vmem:[#allocation11 + $0x40] sm:$0xff]  ;;  %v2674_v20 = vld [vmem:[#allocation11 + $0x50] sm:$0xff] }
 0x732   :  { %4891 = vmatpush1.bf16.msra.mxu0 %v4890_v46  ;;  %4923 = vmatpush1.bf16.msra.mxu1 %v4922_v48  ;;  %v2362_v46 = vld [vmem:[#allocation9 + $0x198] sm:$0xff]  ;;  %v2676_v37 = vld [vmem:[#allocation11 + $0x60] sm:$0xff]  ;;  %v2678_v16 = vld [vmem:[#allocation11 + $0x70] sm:$0xff] }
 0x733   :  { %4893 = vmatprep.subr.bf16.mxu0 %v4892_v12  ;;  %4925 = vmatprep.subr.bf16.mxu1 %v4924_v29  ;;  %v2366_v48 = vld [vmem:[#allocation9 + $0x1b8] sm:$0xff]  ;;  %v2359_v12 = vld [vmem:[#allocation9 + $0x180] sm:$0xff] }
 0x734   :  { %v2363_v29 = vld [vmem:[#allocation9 + $0x1a0] sm:$0xff]  ;;  %v4940_v47 = vpack.c.bf16 %v2366_v48, %v2362_v46 }
 0x735   :  { %v4910_v55 = vpack.c.bf16 %v2363_v29, %v2359_v12  ;;  %v2680_v46 = vld [vmem:[#allocation11 + $0x80] sm:$0xff]  ;;  %v2682_v12 = vld [vmem:[#allocation11 + $0x90] sm:$0xff] }
 0x736   :  { %4895 = vmatpush1.bf16.msra.mxu0 %v4894_v42  ;;  %4927 = vmatpush1.bf16.msra.mxu1 %v4926_v43  ;;  %v2370_v42 = vld [vmem:[#allocation9 + $0x1d8] sm:$0xff]  ;;  %v2684_v48 = vld [vmem:[#allocation11 + $0xa0] sm:$0xff]  ;;  %v2686_v29 = vld [vmem:[#allocation11 + $0xb0] sm:$0xff] }
 0x737   :  { %4897 = vmatprep.subr.bf16.mxu0 %v4896_v25  ;;  %4929 = vmatprep.subr.bf16.mxu1 %v4928_v57  ;;  %v2374_v43 = vld [vmem:[#allocation9 + $0x1f8] sm:$0xff]  ;;  %v2367_v25 = vld [vmem:[#allocation9 + $0x1c0] sm:$0xff]  ;;  %v4912_v57 = vpack.c.bf16 %v2372_v30, %v2368_v13 }
 0x738   :  { %v4944_v2 = vpack.c.bf16 %v2374_v43, %v2370_v42  ;;  %v4914_v58 = vpack.c.bf16 %v2371_v56, %v2367_v25  ;;  %v2695_v30 = vld [vmem:[#allocation11 + $0xf8] sm:$0xff]  ;;  %v2688_v42 = vld [vmem:[#allocation11 + $0xc0] sm:$0xff]  ;;  %v2690_v25 = vld [vmem:[#allocation11 + $0xd0] sm:$0xff] }
 0x739   :  { %v2692_v43 = vld [vmem:[#allocation11 + $0xe0] sm:$0xff]  ;;  %v2697_v56 = vld [vmem:[#allocation11 + $0x108] sm:$0xff] }
 0x73a   :  { %4899 = vmatpush1.bf16.msra.mxu0 %v4898_v44  ;;  %4931 = vmatpush1.bf16.msra.mxu1 %v4930_v53  ;;  %v2664_v44 = vld [vmem:[#allocation11] sm:$0xff] }
 0x73b   :  { %4901 = vmatprep.subr.bf16.mxu0 %v4900_v60  ;;  %4933 = vmatprep.subr.bf16.mxu1 %v4932_v36  ;;  %v2670_v60 = vld [vmem:[#allocation11 + $0x30] sm:$0xff]  ;;  %v2673_v36 = vld [vmem:[#allocation11 + $0x48] sm:$0xff] }
 0x73c   :  { %v6613_v26 = vpack.c.bf16 %v2677_v22, %v2673_v36  ;;  %v2709_v36 = vld [vmem:[#allocation11 + $0x168] sm:$0xff]  ;;  %v2707_v22 = vld [vmem:[#allocation11 + $0x158] sm:$0xff] }
 0x73e   :  { %4903 = vmatpush1.bf16.msra.mxu0 %v4902_v61  ;;  %4935 = vmatpush1.bf16.msra.mxu1 %v4934_v59  ;;  %v6615_v61 = vpack.c.bf16 %v2679_v45, %v2675_v27  ;;  %v6617_v59 = vpack.c.bf16 %v2676_v37, %v2672_v52  ;;  %v2711_v27 = vld [vmem:[#allocation11 + $0x178] sm:$0xff]  ;;  %v2704_v37 = vld [vmem:[#allocation11 + $0x140] sm:$0xff] }
 0x73f   :  { %4905 = vmatprep.subr.bf16.mxu0 %v4904_v39  ;;  %4937 = vmatprep.subr.bf16.mxu1 %v4936_v38  ;;  %v6620_v39 = vpack.c.bf16 %v2678_v16, %v2674_v20  ;;  %v2681_v38 = vld [vmem:[#allocation11 + $0x88] sm:$0xff]  ;;  %v6662_v52 = vpack.c.bf16 %v2711_v27, %v2707_v22  ;;  %v2708_v20 = vld [vmem:[#allocation11 + $0x160] sm:$0xff]  ;;  %v2706_v16 = vld [vmem:[#allocation11 + $0x150] sm:$0xff] }
 0x740   :  { %v6625_v24 = vpack.c.bf16 %v2685_v1, %v2681_v38  ;;  %v6665_v38 = vpack.c.bf16 %v2708_v20, %v2704_v37  ;;  %v2710_v1 = vld [vmem:[#allocation11 + $0x170] sm:$0xff]  ;;  %v6701_v27 = vld [vmem:[%s7125_s1] sm:$0xff]  ;;  %v5867_v37 = vmov 0  }
 0x741   :  { %5622 = vset.pattern.permute.xlu0 %v5867_v37  ;;  %vm4291_vm4 = vcmp.gt.s32.totalorder %v6701_v27, 0  ;;  %vm4293_vm5 = vcmp.gt.s32.totalorder %v6701_v27, 1  ;;  %5628 = vset.pattern.permute.xlu1 %v5867_v37  ;;  %vm4295_vm6 = vcmp.gt.s32.totalorder %v6701_v27, 2  ;;  %vm4297_vm7 = vcmp.gt.s32.totalorder %v6701_v27, 3 }
 0x742   :  { %4907 = vmatpush1.bf16.msra.mxu0 %v4906_v51  ;;  %4939 = vmatpush1.bf16.msra.mxu1 %v4938_v62  ;;  %v6627_v51 = vpack.c.bf16 %v2687_v33, %v2683_v35  ;;  %v6629_v62 = vpack.c.bf16 %v2684_v48, %v2680_v46  ;;  %v2713_v35 = vld [vmem:[#allocation11 + $0x188] sm:$0xff]  ;;  %v6669_v46 = vpack.c.bf16 %v2710_v1, %v2706_v16  ;;  %v4292_v20 = vsel %vm4291_vm4, 1.0, %v5865_v0 }
 0x743   :  { %4909 = vmatprep.subr.bf16.mxu0 %v4908_v34  ;;  %4941 = vmatprep.subr.bf16.mxu1 %v4940_v47  ;;  %v6632_v34 = vpack.c.bf16 %v2686_v29, %v2682_v12  ;;  %v2689_v47 = vld [vmem:[#allocation11 + $0xc8] sm:$0xff]  ;;  %v2715_v12 = vld [vmem:[#allocation11 + $0x198] sm:$0xff]  ;;  %v4294_v16 = vsel %vm4293_vm5, 1.0, %v5865_v0  ;;  %vm4299_vm8 = vcmp.gt.s32.totalorder %v6701_v27, 4  ;;  %vm4301_vm9 = vcmp.gt.s32.totalorder %v6701_v27, 5 }
 0x744   :  { %v6637_v13 = vpack.c.bf16 %v2693_v5, %v2689_v47  ;;  %v2717_v33 = vld [vmem:[#allocation11 + $0x1a8] sm:$0xff]  ;;  %v2719_v29 = vld [vmem:[#allocation11 + $0x1b8] sm:$0xff]  ;;  %v2712_v47 = vld [vmem:[#allocation11 + $0x180] sm:$0xff]  ;;  %v5623_v1 = vpack.i.bf16 %v4294_v16, %v4292_v20  ;;  %vm4303_vm10 = vcmp.gt.s32.totalorder %v6701_v27, 6 }
 0x745   :  { %v6671_v48 = vpack.c.bf16 %v2717_v33, %v2713_v35  ;;  %v6673_v5 = vpack.c.bf16 %v2719_v29, %v2715_v12 }
 0x746   :  { %4911 = vmatpush1.bf16.msra.mxu0 %v4910_v55  ;;  %4943 = vmatpush1.bf16.msra.mxu1 %v4942_v6  ;;  %v6639_v55 = vpack.c.bf16 %v2695_v30, %v2691_v4  ;;  %v6641_v6 = vpack.c.bf16 %v2692_v43, %v2688_v42  ;;  %v2716_v4 = vld [vmem:[#allocation11 + $0x1a0] sm:$0xff]  ;;  %v2714_v30 = vld [vmem:[#allocation11 + $0x190] sm:$0xff] }
 0x747   :  { %4913 = vmatprep.subr.bf16.mxu0 %v4912_v57  ;;  %4945 = vmatprep.subr.bf16.mxu1 %v4944_v2  ;;  %v2694_v57 = vld [vmem:[#allocation11 + $0xf0] sm:$0xff]  ;;  %v6676_v43 = vpack.c.bf16 %v2716_v4, %v2712_v47 }
 0x748   :  { %v6644_v2 = vpack.c.bf16 %v2694_v57, %v2690_v25  ;;  %v2718_v42 = vld [vmem:[#allocation11 + $0x1b0] sm:$0xff]  ;;  %v2721_v57 = vld [vmem:[#allocation11 + $0x1c8] sm:$0xff]  ;;  %5624 = vperm.xlu0 %5622, %v5623_v1  }
 0x749   :  { %v6680_v25 = vpack.c.bf16 %v2718_v42, %v2714_v30 }
 0x74a   :  { %4915 = vmatpush1.bf16.msra.mxu0 %v4914_v58  ;;  %4947 = vmatpush1.bf16.msra.mxu1 %v4946_v32  ;;  %v6649_v58 = vpack.c.bf16 %v2701_v3, %v2697_v56  ;;  %v2703_v32 = vld [vmem:[#allocation11 + $0x138] sm:$0xff]  ;;  %v2725_v56 = vld [vmem:[#allocation11 + $0x1e8] sm:$0xff] }
 0x74b   :  { %v2723_v3 = vld [vmem:[#allocation11 + $0x1d8] sm:$0xff] }
 0x74d   :  { %2462 = vmatmul.mubr.f32.vlgmr.msra.gmra.mrb[16].mxu0 %v6237_v19  ;;  %2575 = vmatmul.mubr.f32.vlgmr.msra.gmra.mrb[16].mxu1 %v6237_v19  ;;  %v2665_v19 = vld [vmem:[#allocation11 + $0x8] sm:$0xff] }
 0x74e   :  { %2467 = vmatprep.mubr.f32.mxu0 %v5865_v0  ;;  %2580 = vmatprep.mubr.f32.mxu1 %v5865_v0 }
 0x751   :  { %2468 = vmatmul.mubr.f32.gmra.mrb[18].mxu0 %v6281_v8  ;;  %2581 = vmatmul.mubr.f32.gmra.mrb[18].mxu1 %v6281_v8  ;;  %v2669_v8 = vld [vmem:[#allocation11 + $0x28] sm:$0xff] }
 0x752   :  { %2473 = vmatprep.mubr.f32.mxu0 %v5865_v0  ;;  %2586 = vmatprep.mubr.f32.mxu1 %v5865_v0 }
 0x755   :  { %2474 = vmatmul.mubr.f32.gmra.mrb[20].mxu0 %v6345_v63  ;;  %2587 = vmatmul.mubr.f32.gmra.mrb[20].mxu1 %v6345_v63  ;;  %v2667_v63 = vld [vmem:[#allocation11 + $0x18] sm:$0xff] }
 0x756   :  { %2479 = vmatprep.mubr.f32.mxu0 %v5865_v0  ;;  %2592 = vmatprep.mubr.f32.mxu1 %v5865_v0 }
 0x759   :  { %2480 = vmatmul.mubr.f32.gmra.mrb[22].mxu0 %v6439_v54  ;;  %2593 = vmatmul.mubr.f32.gmra.mrb[22].mxu1 %v6439_v54  ;;  %v6601_v54 = vpack.c.bf16 %v2669_v8, %v2665_v19  ;;  %v2696_v19 = vld [vmem:[#allocation11 + $0x100] sm:$0xff] }
 0x75a   :  { %2485 = vmatprep.mubr.f32.mxu0 %v5865_v0  ;;  %2598 = vmatprep.mubr.f32.mxu1 %v5865_v0  ;;  %v2700_v8 = vld [vmem:[#allocation11 + $0x120] sm:$0xff] }
 0x75b   :  { %4949 = vmatprep.subr.bf16.mxu0 %v6601_v54 }
 0x75d   :  { %2486 = vmatmul.mubr.f32.gmra.mrb[24].mxu0 %v6485_v40  ;;  %2599 = vmatmul.mubr.f32.gmra.mrb[24].mxu1 %v6485_v40  ;;  %v2671_v40 = vld [vmem:[#allocation11 + $0x38] sm:$0xff] }
 0x75e   :  { %2491 = vmatprep.mubr.f32.mxu0 %v5865_v0  ;;  %2604 = vmatprep.mubr.f32.mxu1 %v5865_v0  ;;  %v6603_v53 = vpack.c.bf16 %v2671_v40, %v2667_v63  ;;  %v6651_v63 = vpack.c.bf16 %v2703_v32, %v2699_v49  ;;  %v6653_v40 = vpack.c.bf16 %v2700_v8, %v2696_v19  ;;  %v2727_v32 = vld [vmem:[#allocation11 + $0x1f8] sm:$0xff]  ;;  %v2720_v19 = vld [vmem:[#allocation11 + $0x1c0] sm:$0xff] }
 0x75f   :  { %v6685_v49 = vpack.c.bf16 %v2725_v56, %v2721_v57  ;;  %v2724_v8 = vld [vmem:[#allocation11 + $0x1e0] sm:$0xff] }
 0x760   :  { %4981 = vmatprep.subr.bf16.mxu1 %v6603_v53 }
 0x761   :  { %2492 = vmatmul.mubr.f32.gmra.mrb[26].mxu0 %v6529_v31  ;;  %2605 = vmatmul.mubr.f32.gmra.mrb[26].mxu1 %v6529_v31  ;;  %v2668_v31 = vld [vmem:[#allocation11 + $0x20] sm:$0xff] }
 0x762   :  { %2497 = vmatprep.mubr.f32.mxu0 %v5865_v0  ;;  %2610 = vmatprep.mubr.f32.mxu1 %v5865_v0  ;;  %v6605_v7 = vpack.c.bf16 %v2668_v31, %v2664_v44  ;;  %v2698_v44 = vld [vmem:[#allocation11 + $0x110] sm:$0xff] }
 0x763   :  { %v2702_v31 = vld [vmem:[#allocation11 + $0x130] sm:$0xff] }
 0x764   :  { %4951 = vmatpush1.bf16.msra.mxu0 %v6605_v7 }
 0x765   :  { %2498 = vmatmul.mubr.f32.gmra.mrb[28].mxu0 %v6567_v9  ;;  %2611 = vmatmul.mubr.f32.gmra.mrb[28].mxu1 %v6567_v9  ;;  %v6608_v9 = vpack.c.bf16 %v2670_v60, %v2666_v23  ;;  %v2705_v23 = vld [vmem:[#allocation11 + $0x148] sm:$0xff]  ;;  %v6656_v60 = vpack.c.bf16 %v2702_v31, %v2698_v44  ;;  %v6687_v44 = vpack.c.bf16 %v2727_v32, %v2723_v3 }
 0x766   :  { %2503 = vmatprep.mubr.f32.mxu0 %v5865_v0  ;;  %2616 = vmatprep.mubr.f32.mxu1 %v5865_v0  ;;  %v6660_v45 = vpack.c.bf16 %v2709_v36, %v2705_v23  ;;  %v6689_v31 = vpack.c.bf16 %v2724_v8, %v2720_v19  ;;  %v2722_v23 = vld [vmem:[#allocation11 + $0x1d0] sm:$0xff] }
 0x767   :  { %4983 = vmatpush1.bf16.msra.mxu1 %v6608_v9  ;;  %4953 = vmatprep.subr.bf16.mxu0 %v6613_v26  ;;  %v2726_v36 = vld [vmem:[#allocation11 + $0x1f0] sm:$0xff] }
 0x768   :  { %4985 = vmatprep.subr.bf16.mxu1 %v6615_v61  ;;  %4955 = vmatpush1.bf16.msra.mxu0 %v6617_v59  ;;  %v6692_v22 = vpack.c.bf16 %v2726_v36, %v2722_v23 }
 0x769   :  { %4957 = vmatprep.subr.bf16.mxu0 %v6625_v24 }
 0x76b   :  { %4987 = vmatpush1.bf16.msra.mxu1 %v6620_v39 }
 0x76c   :  { %4989 = vmatprep.subr.bf16.mxu1 %v6627_v51  ;;  %4959 = vmatpush1.bf16.msra.mxu0 %v6629_v62 }
 0x76d   :  { %4961 = vmatprep.subr.bf16.mxu0 %v6637_v13 }
 0x76f   :  { %4991 = vmatpush1.bf16.msra.mxu1 %v6632_v34 }
 0x770   :  { %4993 = vmatprep.subr.bf16.mxu1 %v6639_v55  ;;  %4963 = vmatpush1.bf16.msra.mxu0 %v6641_v6 }
 0x771   :  { %4965 = vmatprep.subr.bf16.mxu0 %v6649_v58 }
 0x773   :  { %4995 = vmatpush1.bf16.msra.mxu1 %v6644_v2 }
 0x774   :  { %4997 = vmatprep.subr.bf16.mxu1 %v6651_v63  ;;  %4967 = vmatpush1.bf16.msra.mxu0 %v6653_v40 }
 0x775   :  { %4969 = vmatprep.subr.bf16.mxu0 %v6660_v45 }
 0x777   :  { %4999 = vmatpush1.bf16.msra.mxu1 %v6656_v60 }
 0x778   :  { %5001 = vmatprep.subr.bf16.mxu1 %v6662_v52  ;;  %4971 = vmatpush1.bf16.msra.mxu0 %v6665_v38 }
 0x779   :  { %4973 = vmatprep.subr.bf16.mxu0 %v6671_v48 }
 0x77b   :  { %5003 = vmatpush1.bf16.msra.mxu1 %v6669_v46 }
 0x77c   :  { %5005 = vmatprep.subr.bf16.mxu1 %v6673_v5  ;;  %4975 = vmatpush1.bf16.msra.mxu0 %v6676_v43 }
 0x77d   :  { %4977 = vmatprep.subr.bf16.mxu0 %v6685_v49 }
 0x77f   :  { %5007 = vmatpush1.bf16.msra.mxu1 %v6680_v25 }
 0x780   :  { %5009 = vmatprep.subr.bf16.mxu1 %v6687_v44  ;;  %4979 = vmatpush1.bf16.msra.mxu0 %v6689_v31 }
 0x781   :  { %5013 = vmatprep.subr.bf16.mxu0 %v6601_v54 }
 0x783   :  { %5011 = vmatpush1.bf16.msra.mxu1 %v6692_v22 }
 0x784   :  { %5045 = vmatprep.subr.bf16.mxu1 %v6603_v53 }
 0x800   :  { %v2201_v35 = vpop.f32.mrb[14].mxu0  ;;  %v2272_v33 = vpop.f32.mrb[14].mxu1 }
 0x801   :  { %v5498_v12 = vadd.f32 %v2201_v35, %v6214_v15  ;;  %v2203_v29 = vpop.f32.mrb[15].mxu0  ;;  %v2274_v47 = vpop.f32.mrb[15].mxu1  ;;  %v5514_v57 = vadd.f32 %v2272_v33, %v6224_v21 }
 0x802   :  { %v5499_v4 = vadd.f32 %v2203_v29, %v6219_v18  ;;  %v5515_v56 = vadd.f32 %v2274_v47, %v6231_v41  ;;  %v2375_v41 = vld [vmem:[%s7131_s7] sm:$0xf] }
 0x803   :  { %v2281_v30 = vmul.f32 0.5, %v5498_v12  ;;  %v6760_v29 = vrot.slane %v2375_v41, %v111_v14  ;;  %v6771_v14 = vrot.slane %v2375_v41, %v119_v28 }
 0x804   :  { %v2285_v42 = vmul.f32 0.5, %v5499_v4  ;;  %v2290_v3 = vmul.f32 0.5, %v5515_v56 }
 0x805   :  { %5699 = vtanh.f32 %v2281_v30 }
 0x806   :  { %5701 = vtanh.f32 %v2285_v42  ;;  %v6765_v42 = vrot.slane %v2375_v41, %v115_v17 }
 0x807   :  { %5703 = vtanh.f32 %v5514_v57 }
 0x808   :  { %5705 = vtanh.f32 %v2290_v3 }
 0x80f   :  { %v5700_v32 = vpop.eup %5699 }
 0x810   :  { %v5702_v19 = vpop.eup %5701  ;;  %v2283_v8 = vmul.f32 0.5, %v5700_v32 }
 0x811   :  { %v2287_v23 = vmul.f32 0.5, %v5702_v19  ;;  %v5704_v36 = vpop.eup %5703 }
 0x812   :  { %v2284_v15 = vadd.f32 0.5, %v2283_v8  ;;  %v5706_v1 = vpop.eup %5705 }
 0x813   :  { %v2288_v37 = vadd.f32 0.5, %v2287_v23  ;;  %v2292_v21 = vmul.f32 0.5, %v5706_v1 }
 0x814   :  { %v2295_v20 = vmul.f32 %v5704_v36, %v2284_v15 }
 0x815   :  { %v2294_v18 = vmul.f32 %v2288_v37, %v6564_v50  ;;  %v2293_v35 = vadd.f32 0.5, %v2292_v21  ;;  %v6756_v50 = vrot.slane %v2375_v41, %v107_v11 }
 0x817   :  { %v2296_v16 = vadd.f32 %v2295_v20, %v2294_v18 }
 0x819   :  { %5707 = vtanh.f32 %v2296_v16 }
 0x823   :  { %v5708_v33 = vpop.eup %5707 }
 0x824   :  { %v2298_v12 = vmul.f32 %v5708_v33, %v2293_v35 }
 0x826   :  { %2504 = vmatmul.mubr.f32.gmra.mrb[30].mxu0 %v2298_v12  ;;  %2617 = vmatmul.mubr.f32.gmra.mrb[30].mxu1 %v2298_v12 }
 0x827   :  { %2792 = vmatprep.mubr.f32.mxu0 %v5865_v0  ;;  %2863 = vmatprep.mubr.f32.mxu1 %v5865_v0 }
 0x82a   :  { %2793 = vmatmul.mubr.f32.vlgmr.msra.gmra.mrb[16].mxu0 %v5865_v0  ;;  %2864 = vmatmul.mubr.f32.vlgmr.msra.gmra.mrb[16].mxu1 %v5865_v0 }
 0x82b   :  { %5015 = vmatpush1.bf16.msra.mxu0 %v6605_v7  ;;  %5047 = vmatpush1.bf16.msra.mxu1 %v6608_v9 }
 0x82c   :  { %5017 = vmatprep.subr.bf16.mxu0 %v6613_v26  ;;  %5049 = vmatprep.subr.bf16.mxu1 %v6615_v61 }
 0x82d   :  { %2971 = vmatprep.mubr.f32.mxu0 %v5865_v0  ;;  %3042 = vmatprep.mubr.f32.mxu1 %v5865_v0 }
 0x82f   :  { %5019 = vmatpush1.bf16.msra.mxu0 %v6617_v59  ;;  %5051 = vmatpush1.bf16.msra.mxu1 %v6620_v39 }
 0x830   :  { %5021 = vmatprep.subr.bf16.mxu0 %v6625_v24  ;;  %5053 = vmatprep.subr.bf16.mxu1 %v6627_v51 }
 0x833   :  { %5023 = vmatpush1.bf16.msra.mxu0 %v6629_v62  ;;  %5055 = vmatpush1.bf16.msra.mxu1 %v6632_v34 }
 0x834   :  { %5025 = vmatprep.subr.bf16.mxu0 %v6637_v13  ;;  %5057 = vmatprep.subr.bf16.mxu1 %v6639_v55 }
 0x837   :  { %5027 = vmatpush1.bf16.msra.mxu0 %v6641_v6  ;;  %5059 = vmatpush1.bf16.msra.mxu1 %v6644_v2 }
 0x838   :  { %5029 = vmatprep.subr.bf16.mxu0 %v6649_v58  ;;  %5061 = vmatprep.subr.bf16.mxu1 %v6651_v63 }
 0x83b   :  { %5031 = vmatpush1.bf16.msra.mxu0 %v6653_v40  ;;  %5063 = vmatpush1.bf16.msra.mxu1 %v6656_v60 }
 0x83c   :  { %5033 = vmatprep.subr.bf16.mxu0 %v6660_v45  ;;  %5065 = vmatprep.subr.bf16.mxu1 %v6662_v52 }
 0x83f   :  { %5035 = vmatpush1.bf16.msra.mxu0 %v6665_v38  ;;  %5067 = vmatpush1.bf16.msra.mxu1 %v6669_v46 }
 0x840   :  { %5037 = vmatprep.subr.bf16.mxu0 %v6671_v48  ;;  %5069 = vmatprep.subr.bf16.mxu1 %v6673_v5 }
 0x843   :  { %5039 = vmatpush1.bf16.msra.mxu0 %v6676_v43  ;;  %5071 = vmatpush1.bf16.msra.mxu1 %v6680_v25 }
 0x844   :  { %5041 = vmatprep.subr.bf16.mxu0 %v6685_v49  ;;  %5073 = vmatprep.subr.bf16.mxu1 %v6687_v44 }
 0x847   :  { %5043 = vmatpush1.bf16.msra.mxu0 %v6689_v31  ;;  %5075 = vmatpush1.bf16.msra.mxu1 %v6692_v22 }
 0x848   :  { %5077 = vmatprep.subr.bf16.mxu0 %v6601_v54  ;;  %5109 = vmatprep.subr.bf16.mxu1 %v6603_v53 }
 0x8fd   :  { %v2794_v47 = vpop.f32.mrb[16].mxu0  ;;  %v2865_v4 = vpop.f32.mrb[16].mxu1 }
 0x8fe   :  { %v5516_v30 = vadd.f32 %v2794_v47, %v6756_v50  ;;  %v2796_v57 = vpop.f32.mrb[17].mxu0  ;;  %v2867_v56 = vpop.f32.mrb[17].mxu1  ;;  %v5532_v11 = vadd.f32 %v2865_v4, %v6765_v42  ;;  %v4296_v47 = vsel %vm4295_vm6, 1.0, %v5865_v0 }
 0x8ff   :  { %v5517_v3 = vadd.f32 %v2796_v57, %v6760_v29  ;;  %v5533_v8 = vadd.f32 %v2867_v56, %v6771_v14  ;;  %3258 = vperm.xlu0 %5622, %v4296_v47   ;;  %v5625_v47 = vpop.permute.xlu0 %5624 }
 0x900   :  { %v2874_v32 = vmul.f32 0.5, %v5516_v30 }
 0x901   :  { %v2878_v19 = vmul.f32 0.5, %v5517_v3  ;;  %v2883_v23 = vmul.f32 0.5, %v5533_v8 }
 0x902   :  { %5709 = vtanh.f32 %v2874_v32 }
 0x903   :  { %5711 = vtanh.f32 %v2878_v19 }
 0x904   :  { %5713 = vtanh.f32 %v5532_v11 }
 0x905   :  { %5715 = vtanh.f32 %v2883_v23 }
 0x90c   :  { %v5710_v17 = vpop.eup %5709 }
 0x90d   :  { %v5712_v15 = vpop.eup %5711  ;;  %v2876_v36 = vmul.f32 0.5, %v5710_v17 }
 0x90e   :  { %v2880_v37 = vmul.f32 0.5, %v5712_v15  ;;  %v5714_v18 = vpop.eup %5713 }
 0x90f   :  { %v2877_v20 = vadd.f32 0.5, %v2876_v36  ;;  %v5716_v10 = vpop.eup %5715 }
 0x910   :  { %v2881_v16 = vadd.f32 0.5, %v2880_v37  ;;  %v2885_v28 = vmul.f32 0.5, %v5716_v10 }
 0x911   :  { %v2888_v1 = vmul.f32 %v5714_v18, %v2877_v20 }
 0x912   :  { %v2887_v21 = vmul.f32 0.0, %v2881_v16  ;;  %v2886_v33 = vadd.f32 0.5, %v2885_v28 }
 0x914   :  { %v6774_v35 = vadd.f32 %v2888_v1, %v2887_v21 }
 0x916   :  { %5717 = vtanh.f32 %v6774_v35 }
 0x920   :  { %v5718_v12 = vpop.eup %5717 }
 0x921   :  { %v6777_v41 = vmul.f32 %v5718_v12, %v2886_v33 }
 0x923   :  { %2972 = vmatmul.mubr.f32.vlgmr.msra.gmra.mrb[18].mxu0 %v6777_v41  ;;  %3043 = vmatmul.mubr.f32.vlgmr.msra.gmra.mrb[18].mxu1 %v6777_v41 }
 0x924   :  { %5079 = vmatpush1.bf16.msra.mxu0 %v6605_v7  ;;  %5111 = vmatpush1.bf16.msra.mxu1 %v6608_v9 }
 0x925   :  { %5081 = vmatprep.subr.bf16.mxu0 %v6613_v26  ;;  %5113 = vmatprep.subr.bf16.mxu1 %v6615_v61 }
 0x926   :  { %3151 = vmatprep.mubr.f32.mxu0 %v5865_v0  ;;  %3222 = vmatprep.mubr.f32.mxu1 %v5865_v0 }
 0x928   :  { %5083 = vmatpush1.bf16.msra.mxu0 %v6617_v59  ;;  %5115 = vmatpush1.bf16.msra.mxu1 %v6620_v39 }
 0x929   :  { %5085 = vmatprep.subr.bf16.mxu0 %v6625_v24  ;;  %5117 = vmatprep.subr.bf16.mxu1 %v6627_v51 }
 0x92c   :  { %5087 = vmatpush1.bf16.msra.mxu0 %v6629_v62  ;;  %5119 = vmatpush1.bf16.msra.mxu1 %v6632_v34 }
 0x92d   :  { %5089 = vmatprep.subr.bf16.mxu0 %v6637_v13  ;;  %5121 = vmatprep.subr.bf16.mxu1 %v6639_v55 }
 0x930   :  { %5091 = vmatpush1.bf16.msra.mxu0 %v6641_v6  ;;  %5123 = vmatpush1.bf16.msra.mxu1 %v6644_v2 }
 0x931   :  { %5093 = vmatprep.subr.bf16.mxu0 %v6649_v58  ;;  %5125 = vmatprep.subr.bf16.mxu1 %v6651_v63 }
 0x934   :  { %5095 = vmatpush1.bf16.msra.mxu0 %v6653_v40  ;;  %5127 = vmatpush1.bf16.msra.mxu1 %v6656_v60 }
 0x935   :  { %5097 = vmatprep.subr.bf16.mxu0 %v6660_v45  ;;  %5129 = vmatprep.subr.bf16.mxu1 %v6662_v52 }
 0x938   :  { %5099 = vmatpush1.bf16.msra.mxu0 %v6665_v38  ;;  %5131 = vmatpush1.bf16.msra.mxu1 %v6669_v46 }
 0x939   :  { %5101 = vmatprep.subr.bf16.mxu0 %v6671_v48  ;;  %5133 = vmatprep.subr.bf16.mxu1 %v6673_v5 }
 0x93c   :  { %5103 = vmatpush1.bf16.msra.mxu0 %v6676_v43  ;;  %5135 = vmatpush1.bf16.msra.mxu1 %v6680_v25 }
 0x93d   :  { %5105 = vmatprep.subr.bf16.mxu0 %v6685_v49  ;;  %5137 = vmatprep.subr.bf16.mxu1 %v6687_v44 }
 0x940   :  { %5107 = vmatpush1.bf16.msra.mxu0 %v6689_v31  ;;  %5139 = vmatpush1.bf16.msra.mxu1 %v6692_v22 }
 0x941   :  { %5141 = vmatprep.subr.bf16.mxu0 %v6601_v54  ;;  %5173 = vmatprep.subr.bf16.mxu1 %v6603_v53 }
 0x9f6   :  { %v2973_v4 = vpop.f32.mrb[18].mxu0  ;;  %v3044_v30 = vpop.f32.mrb[18].mxu1 }
 0x9f7   :  { %v5518_v57 = vadd.f32 %v2973_v4, %v6756_v50  ;;  %v2975_v56 = vpop.f32.mrb[19].mxu0  ;;  %v3046_v3 = vpop.f32.mrb[19].mxu1  ;;  %v5534_v8 = vadd.f32 %v3044_v30, %v6765_v42  ;;  %v5627_v4 = vunpack.i.h.bf16 %v5625_v47  ;;  %v5626_v30 = vunpack.i.l.bf16 %v5625_v47 }
 0x9f8   :  { %v5519_v32 = vadd.f32 %v2975_v56, %v6760_v29  ;;  %v5535_v23 = vadd.f32 %v3046_v3, %v6771_v14 }
 0x9f9   :  { %v3053_v19 = vmul.f32 0.5, %v5518_v57 }
 0x9fa   :  { %v3057_v11 = vmul.f32 0.5, %v5519_v32  ;;  %v3062_v17 = vmul.f32 0.5, %v5535_v23  ;;  %v2901_v32 = vmul.f32 %v5626_v30, %v6777_v41  ;;  %v4298_v41 = vsel %vm4297_vm7, 1.0, %v5865_v0 }
 0x9fb   :  { %5719 = vtanh.f32 %v3053_v19  ;;  %3438 = vperm.xlu1 %5628, %v4298_v41  }
 0x9fc   :  { %5721 = vtanh.f32 %v3057_v11 }
 0x9fd   :  { %5723 = vtanh.f32 %v5534_v8 }
 0x9fe   :  { %5725 = vtanh.f32 %v3062_v17 }
 0xa05   :  { %v5720_v15 = vpop.eup %5719 }
 0xa06   :  { %v5722_v36 = vpop.eup %5721  ;;  %v3055_v37 = vmul.f32 0.5, %v5720_v15 }
 0xa07   :  { %v3059_v20 = vmul.f32 0.5, %v5722_v36  ;;  %v5724_v16 = vpop.eup %5723 }
 0xa08   :  { %v3056_v18 = vadd.f32 0.5, %v3055_v37  ;;  %v5726_v33 = vpop.eup %5725 }
 0xa09   :  { %v3060_v1 = vadd.f32 0.5, %v3059_v20  ;;  %v3064_v12 = vmul.f32 0.5, %v5726_v33 }
 0xa0a   :  { %v3067_v21 = vmul.f32 %v5724_v16, %v3056_v18 }
 0xa0b   :  { %v3066_v10 = vmul.f32 %v3060_v1, %v6774_v35  ;;  %v3065_v57 = vadd.f32 0.5, %v3064_v12 }
 0xa0d   :  { %v6822_v28 = vadd.f32 %v3067_v21, %v3066_v10 }
 0xa0f   :  { %5727 = vtanh.f32 %v6822_v28 }
 0xa19   :  { %v5728_v56 = vpop.eup %5727 }
 0xa1a   :  { %v3070_v3 = vmul.f32 %v5728_v56, %v3065_v57 }
 0xa1c   :  { %3152 = vmatmul.mubr.f32.vlgmr.msra.gmra.mrb[20].mxu0 %v3070_v3  ;;  %3223 = vmatmul.mubr.f32.vlgmr.msra.gmra.mrb[20].mxu1 %v3070_v3  ;;  %v3081_v19 = vmul.f32 %v5627_v4, %v3070_v3 }
 0xa1d   :  { %5143 = vmatpush1.bf16.msra.mxu0 %v6605_v7  ;;  %5175 = vmatpush1.bf16.msra.mxu1 %v6608_v9 }
 0xa1e   :  { %5145 = vmatprep.subr.bf16.mxu0 %v6613_v26  ;;  %5177 = vmatprep.subr.bf16.mxu1 %v6615_v61  ;;  %v6830_v35 = vadd.f32 %v3081_v19, %v2901_v32 }
 0xa1f   :  { %3331 = vmatprep.mubr.f32.mxu0 %v5865_v0  ;;  %3402 = vmatprep.mubr.f32.mxu1 %v5865_v0 }
 0xa21   :  { %5147 = vmatpush1.bf16.msra.mxu0 %v6617_v59  ;;  %5179 = vmatpush1.bf16.msra.mxu1 %v6620_v39 }
 0xa22   :  { %5149 = vmatprep.subr.bf16.mxu0 %v6625_v24  ;;  %5181 = vmatprep.subr.bf16.mxu1 %v6627_v51 }
 0xa25   :  { %5151 = vmatpush1.bf16.msra.mxu0 %v6629_v62  ;;  %5183 = vmatpush1.bf16.msra.mxu1 %v6632_v34 }
 0xa26   :  { %5153 = vmatprep.subr.bf16.mxu0 %v6637_v13  ;;  %5185 = vmatprep.subr.bf16.mxu1 %v6639_v55 }
 0xa29   :  { %5155 = vmatpush1.bf16.msra.mxu0 %v6641_v6  ;;  %5187 = vmatpush1.bf16.msra.mxu1 %v6644_v2 }
 0xa2a   :  { %5157 = vmatprep.subr.bf16.mxu0 %v6649_v58  ;;  %5189 = vmatprep.subr.bf16.mxu1 %v6651_v63 }
 0xa2d   :  { %5159 = vmatpush1.bf16.msra.mxu0 %v6653_v40  ;;  %5191 = vmatpush1.bf16.msra.mxu1 %v6656_v60 }
 0xa2e   :  { %5161 = vmatprep.subr.bf16.mxu0 %v6660_v45  ;;  %5193 = vmatprep.subr.bf16.mxu1 %v6662_v52 }
 0xa31   :  { %5163 = vmatpush1.bf16.msra.mxu0 %v6665_v38  ;;  %5195 = vmatpush1.bf16.msra.mxu1 %v6669_v46 }
 0xa32   :  { %5165 = vmatprep.subr.bf16.mxu0 %v6671_v48  ;;  %5197 = vmatprep.subr.bf16.mxu1 %v6673_v5 }
 0xa35   :  { %5167 = vmatpush1.bf16.msra.mxu0 %v6676_v43  ;;  %5199 = vmatpush1.bf16.msra.mxu1 %v6680_v25 }
 0xa36   :  { %5169 = vmatprep.subr.bf16.mxu0 %v6685_v49  ;;  %5201 = vmatprep.subr.bf16.mxu1 %v6687_v44 }
 0xa39   :  { %5171 = vmatpush1.bf16.msra.mxu0 %v6689_v31  ;;  %5203 = vmatpush1.bf16.msra.mxu1 %v6692_v22 }
 0xa3a   :  { %5205 = vmatprep.subr.bf16.mxu0 %v6601_v54  ;;  %5237 = vmatprep.subr.bf16.mxu1 %v6603_v53 }
 0xaef   :  { %v3153_v11 = vpop.f32.mrb[20].mxu0  ;;  %v3224_v8 = vpop.f32.mrb[20].mxu1 }
 0xaf0   :  { %v5520_v23 = vadd.f32 %v3153_v11, %v6756_v50  ;;  %v3155_v17 = vpop.f32.mrb[21].mxu0  ;;  %v3226_v15 = vpop.f32.mrb[21].mxu1  ;;  %v5536_v18 = vadd.f32 %v3224_v8, %v6765_v42 }
 0xaf1   :  { %v5521_v36 = vadd.f32 %v3155_v17, %v6760_v29  ;;  %v5537_v16 = vadd.f32 %v3226_v15, %v6771_v14  ;;  %v3259_v8 = vpop.permute.xlu0 %3258 }
 0xaf2   :  { %v3233_v37 = vmul.f32 0.5, %v5520_v23 }
 0xaf3   :  { %v3237_v20 = vmul.f32 0.5, %v5521_v36  ;;  %v3242_v1 = vmul.f32 0.5, %v5537_v16 }
 0xaf4   :  { %5729 = vtanh.f32 %v3233_v37 }
 0xaf5   :  { %5731 = vtanh.f32 %v3237_v20 }
 0xaf6   :  { %5733 = vtanh.f32 %v5536_v18 }
 0xaf7   :  { %5735 = vtanh.f32 %v3242_v1 }
 0xafe   :  { %v5730_v21 = vpop.eup %5729 }
 0xaff   :  { %v5732_v10 = vpop.eup %5731  ;;  %v3235_v33 = vmul.f32 0.5, %v5730_v21 }
 0xb00   :  { %v3239_v12 = vmul.f32 0.5, %v5732_v10  ;;  %v5734_v4 = vpop.eup %5733 }
 0xb01   :  { %v3236_v47 = vadd.f32 0.5, %v3235_v33  ;;  %v5736_v32 = vpop.eup %5735 }
 0xb02   :  { %v3240_v30 = vadd.f32 0.5, %v3239_v12  ;;  %v3244_v19 = vmul.f32 0.5, %v5736_v32 }
 0xb03   :  { %v3247_v57 = vmul.f32 %v5734_v4, %v3236_v47 }
 0xb04   :  { %v3246_v56 = vmul.f32 %v3240_v30, %v6822_v28  ;;  %v3245_v41 = vadd.f32 0.5, %v3244_v19  ;;  %v4300_v28 = vsel %vm4299_vm8, 1.0, %v5865_v0 }
 0xb05   :  { %3618 = vperm.xlu1 %5628, %v4300_v28  }
 0xb06   :  { %v6869_v3 = vadd.f32 %v3247_v57, %v3246_v56 }
 0xb08   :  { %5737 = vtanh.f32 %v6869_v3 }
 0xb12   :  { %v5738_v11 = vpop.eup %5737 }
 0xb13   :  { %v3250_v23 = vmul.f32 %v5738_v11, %v3245_v41 }
 0xb15   :  { %v3261_v17 = vmul.f32 %v3259_v8, %v3250_v23  ;;  %3332 = vmatmul.mubr.f32.vlgmr.msra.gmra.mrb[22].mxu0 %v3250_v23  ;;  %3403 = vmatmul.mubr.f32.vlgmr.msra.gmra.mrb[22].mxu1 %v3250_v23 }
 0xb16   :  { %5207 = vmatpush1.bf16.msra.mxu0 %v6605_v7  ;;  %5239 = vmatpush1.bf16.msra.mxu1 %v6608_v9 }
 0xb17   :  { %v6875_v15 = vadd.f32 %v3261_v17, %v6830_v35  ;;  %5209 = vmatprep.subr.bf16.mxu0 %v6613_v26  ;;  %5241 = vmatprep.subr.bf16.mxu1 %v6615_v61 }
 0xb18   :  { %3511 = vmatprep.mubr.f32.mxu0 %v5865_v0  ;;  %3582 = vmatprep.mubr.f32.mxu1 %v5865_v0 }
 0xb1a   :  { %5211 = vmatpush1.bf16.msra.mxu0 %v6617_v59  ;;  %5243 = vmatpush1.bf16.msra.mxu1 %v6620_v39 }
 0xb1b   :  { %5213 = vmatprep.subr.bf16.mxu0 %v6625_v24  ;;  %5245 = vmatprep.subr.bf16.mxu1 %v6627_v51 }
 0xb1e   :  { %5215 = vmatpush1.bf16.msra.mxu0 %v6629_v62  ;;  %5247 = vmatpush1.bf16.msra.mxu1 %v6632_v34 }
 0xb1f   :  { %5217 = vmatprep.subr.bf16.mxu0 %v6637_v13  ;;  %5249 = vmatprep.subr.bf16.mxu1 %v6639_v55 }
 0xb22   :  { %5219 = vmatpush1.bf16.msra.mxu0 %v6641_v6  ;;  %5251 = vmatpush1.bf16.msra.mxu1 %v6644_v2 }
 0xb23   :  { %5221 = vmatprep.subr.bf16.mxu0 %v6649_v58  ;;  %5253 = vmatprep.subr.bf16.mxu1 %v6651_v63 }
 0xb26   :  { %5223 = vmatpush1.bf16.msra.mxu0 %v6653_v40  ;;  %5255 = vmatpush1.bf16.msra.mxu1 %v6656_v60 }
 0xb27   :  { %5225 = vmatprep.subr.bf16.mxu0 %v6660_v45  ;;  %5257 = vmatprep.subr.bf16.mxu1 %v6662_v52 }
 0xb2a   :  { %5227 = vmatpush1.bf16.msra.mxu0 %v6665_v38  ;;  %5259 = vmatpush1.bf16.msra.mxu1 %v6669_v46 }
 0xb2b   :  { %5229 = vmatprep.subr.bf16.mxu0 %v6671_v48  ;;  %5261 = vmatprep.subr.bf16.mxu1 %v6673_v5 }
 0xb2e   :  { %5231 = vmatpush1.bf16.msra.mxu0 %v6676_v43  ;;  %5263 = vmatpush1.bf16.msra.mxu1 %v6680_v25 }
 0xb2f   :  { %5233 = vmatprep.subr.bf16.mxu0 %v6685_v49  ;;  %5265 = vmatprep.subr.bf16.mxu1 %v6687_v44 }
 0xb32   :  { %5235 = vmatpush1.bf16.msra.mxu0 %v6689_v31  ;;  %5267 = vmatpush1.bf16.msra.mxu1 %v6692_v22 }
 0xb33   :  { %5269 = vmatprep.subr.bf16.mxu0 %v6601_v54  ;;  %5301 = vmatprep.subr.bf16.mxu1 %v6603_v53 }
 0xbe8   :  { %v3333_v35 = vpop.f32.mrb[22].mxu0  ;;  %v3404_v36 = vpop.f32.mrb[22].mxu1 }
 0xbe9   :  { %v5522_v37 = vadd.f32 %v3333_v35, %v6756_v50  ;;  %v3335_v20 = vpop.f32.mrb[23].mxu0  ;;  %v3406_v18 = vpop.f32.mrb[23].mxu1  ;;  %v5538_v10 = vadd.f32 %v3404_v36, %v6765_v42 }
 0xbea   :  { %v5523_v16 = vadd.f32 %v3335_v20, %v6760_v29  ;;  %v5539_v33 = vadd.f32 %v3406_v18, %v6771_v14  ;;  %v3439_v36 = vpop.permute.xlu1 %3438 }
 0xbeb   :  { %v3413_v1 = vmul.f32 0.5, %v5522_v37 }
 0xbec   :  { %v3417_v21 = vmul.f32 0.5, %v5523_v16  ;;  %v3422_v12 = vmul.f32 0.5, %v5539_v33 }
 0xbed   :  { %5739 = vtanh.f32 %v3413_v1 }
 0xbee   :  { %5741 = vtanh.f32 %v3417_v21 }
 0xbef   :  { %5743 = vtanh.f32 %v5538_v10 }
 0xbf0   :  { %5745 = vtanh.f32 %v3422_v12 }
 0xbf7   :  { %v5740_v47 = vpop.eup %5739 }
 0xbf8   :  { %v5742_v4 = vpop.eup %5741  ;;  %v3415_v30 = vmul.f32 0.5, %v5740_v47 }
 0xbf9   :  { %v3419_v57 = vmul.f32 0.5, %v5742_v4  ;;  %v5744_v32 = vpop.eup %5743 }
 0xbfa   :  { %v3416_v56 = vadd.f32 0.5, %v3415_v30  ;;  %v5746_v23 = vpop.eup %5745 }
 0xbfb   :  { %v3420_v19 = vadd.f32 0.5, %v3419_v57  ;;  %v3424_v17 = vmul.f32 0.5, %v5746_v23 }
 0xbfc   :  { %v3427_v41 = vmul.f32 %v5744_v32, %v3416_v56 }
 0xbfd   :  { %v3426_v11 = vmul.f32 %v3420_v19, %v6869_v3  ;;  %v3425_v28 = vadd.f32 0.5, %v3424_v17  ;;  %v4302_v3 = vsel %vm4301_vm9, 1.0, %v5865_v0 }
 0xbfe   :  { %3798 = vperm.xlu0 %5622, %v4302_v3  }
 0xbff   :  { %v6916_v8 = vadd.f32 %v3427_v41, %v3426_v11 }
 0xc01   :  { %5747 = vtanh.f32 %v6916_v8 }
 0xc0b   :  { %v5748_v35 = vpop.eup %5747 }
 0xc0c   :  { %v3430_v37 = vmul.f32 %v5748_v35, %v3425_v28 }
 0xc0e   :  { %v3441_v20 = vmul.f32 %v3439_v36, %v3430_v37  ;;  %3512 = vmatmul.mubr.f32.vlgmr.msra.gmra.mrb[24].mxu0 %v3430_v37  ;;  %3583 = vmatmul.mubr.f32.vlgmr.msra.gmra.mrb[24].mxu1 %v3430_v37 }
 0xc0f   :  { %5271 = vmatpush1.bf16.msra.mxu0 %v6605_v7  ;;  %5303 = vmatpush1.bf16.msra.mxu1 %v6608_v9 }
 0xc10   :  { %v6922_v18 = vadd.f32 %v3441_v20, %v6875_v15  ;;  %5273 = vmatprep.subr.bf16.mxu0 %v6613_v26  ;;  %5305 = vmatprep.subr.bf16.mxu1 %v6615_v61 }
 0xc11   :  { %3691 = vmatprep.mubr.f32.mxu0 %v5865_v0  ;;  %3762 = vmatprep.mubr.f32.mxu1 %v5865_v0 }
 0xc13   :  { %5275 = vmatpush1.bf16.msra.mxu0 %v6617_v59  ;;  %5307 = vmatpush1.bf16.msra.mxu1 %v6620_v39 }
 0xc14   :  { %5277 = vmatprep.subr.bf16.mxu0 %v6625_v24  ;;  %5309 = vmatprep.subr.bf16.mxu1 %v6627_v51 }
 0xc17   :  { %5279 = vmatpush1.bf16.msra.mxu0 %v6629_v62  ;;  %5311 = vmatpush1.bf16.msra.mxu1 %v6632_v34 }
 0xc18   :  { %5281 = vmatprep.subr.bf16.mxu0 %v6637_v13  ;;  %5313 = vmatprep.subr.bf16.mxu1 %v6639_v55 }
 0xc1b   :  { %5283 = vmatpush1.bf16.msra.mxu0 %v6641_v6  ;;  %5315 = vmatpush1.bf16.msra.mxu1 %v6644_v2 }
 0xc1c   :  { %5285 = vmatprep.subr.bf16.mxu0 %v6649_v58  ;;  %5317 = vmatprep.subr.bf16.mxu1 %v6651_v63 }
 0xc1f   :  { %5287 = vmatpush1.bf16.msra.mxu0 %v6653_v40  ;;  %5319 = vmatpush1.bf16.msra.mxu1 %v6656_v60 }
 0xc20   :  { %5289 = vmatprep.subr.bf16.mxu0 %v6660_v45  ;;  %5321 = vmatprep.subr.bf16.mxu1 %v6662_v52 }
 0xc23   :  { %5291 = vmatpush1.bf16.msra.mxu0 %v6665_v38  ;;  %5323 = vmatpush1.bf16.msra.mxu1 %v6669_v46 }
 0xc24   :  { %5293 = vmatprep.subr.bf16.mxu0 %v6671_v48  ;;  %5325 = vmatprep.subr.bf16.mxu1 %v6673_v5 }
 0xc27   :  { %5295 = vmatpush1.bf16.msra.mxu0 %v6676_v43  ;;  %5327 = vmatpush1.bf16.msra.mxu1 %v6680_v25 }
 0xc28   :  { %5297 = vmatprep.subr.bf16.mxu0 %v6685_v49  ;;  %5329 = vmatprep.subr.bf16.mxu1 %v6687_v44 }
 0xc2b   :  { %5299 = vmatpush1.bf16.msra.mxu0 %v6689_v31  ;;  %5331 = vmatpush1.bf16.msra.mxu1 %v6692_v22 }
 0xc2c   :  { %5333 = vmatprep.subr.bf16.mxu0 %v6601_v54  ;;  %5365 = vmatprep.subr.bf16.mxu1 %v6603_v53 }
 0xce1   :  { %v3513_v15 = vpop.f32.mrb[24].mxu0  ;;  %v3584_v16 = vpop.f32.mrb[24].mxu1 }
 0xce2   :  { %v5524_v1 = vadd.f32 %v3513_v15, %v6756_v50  ;;  %v3515_v21 = vpop.f32.mrb[25].mxu0  ;;  %v3586_v10 = vpop.f32.mrb[25].mxu1  ;;  %v5540_v4 = vadd.f32 %v3584_v16, %v6765_v42 }
 0xce3   :  { %v5525_v33 = vadd.f32 %v3515_v21, %v6760_v29  ;;  %v5541_v30 = vadd.f32 %v3586_v10, %v6771_v14  ;;  %v3619_v16 = vpop.permute.xlu1 %3618 }
 0xce4   :  { %v3593_v12 = vmul.f32 0.5, %v5524_v1 }
 0xce5   :  { %v3597_v47 = vmul.f32 0.5, %v5525_v33  ;;  %v3602_v57 = vmul.f32 0.5, %v5541_v30 }
 0xce6   :  { %5749 = vtanh.f32 %v3593_v12 }
 0xce7   :  { %5751 = vtanh.f32 %v3597_v47 }
 0xce8   :  { %5753 = vtanh.f32 %v5540_v4 }
 0xce9   :  { %5755 = vtanh.f32 %v3602_v57 }
 0xcf0   :  { %v5750_v56 = vpop.eup %5749 }
 0xcf1   :  { %v5752_v32 = vpop.eup %5751  ;;  %v3595_v19 = vmul.f32 0.5, %v5750_v56 }
 0xcf2   :  { %v3599_v41 = vmul.f32 0.5, %v5752_v32  ;;  %v5754_v23 = vpop.eup %5753 }
 0xcf3   :  { %v3596_v11 = vadd.f32 0.5, %v3595_v19  ;;  %v5756_v37 = vpop.eup %5755 }
 0xcf4   :  { %v3600_v17 = vadd.f32 0.5, %v3599_v41  ;;  %v3604_v20 = vmul.f32 0.5, %v5756_v37 }
 0xcf5   :  { %v3607_v28 = vmul.f32 %v5754_v23, %v3596_v11 }
 0xcf6   :  { %v3606_v35 = vmul.f32 %v3600_v17, %v6916_v8  ;;  %v3605_v3 = vadd.f32 0.5, %v3604_v20  ;;  %v4304_v8 = vsel %vm4303_vm10, 1.0, %v5865_v0 }
 0xcf7   :  { %3978 = vperm.xlu1 %5628, %v4304_v8  }
 0xcf8   :  { %v6963_v36 = vadd.f32 %v3607_v28, %v3606_v35 }
 0xcfa   :  { %5757 = vtanh.f32 %v6963_v36 }
 0xd04   :  { %v5758_v15 = vpop.eup %5757 }
 0xd05   :  { %v3610_v1 = vmul.f32 %v5758_v15, %v3605_v3 }
 0xd07   :  { %v3621_v21 = vmul.f32 %v3619_v16, %v3610_v1  ;;  %3692 = vmatmul.mubr.f32.vlgmr.msra.gmra.mrb[26].mxu0 %v3610_v1  ;;  %3763 = vmatmul.mubr.f32.vlgmr.msra.gmra.mrb[26].mxu1 %v3610_v1 }
 0xd08   :  { %5335 = vmatpush1.bf16.msra.mxu0 %v6605_v7  ;;  %5367 = vmatpush1.bf16.msra.mxu1 %v6608_v9 }
 0xd09   :  { %v6969_v10 = vadd.f32 %v3621_v21, %v6922_v18  ;;  %5337 = vmatprep.subr.bf16.mxu0 %v6613_v26  ;;  %5369 = vmatprep.subr.bf16.mxu1 %v6615_v61  ;;  %v3799_v21 = vpop.permute.xlu0 %3798 }
 0xd0a   :  { %3871 = vmatprep.mubr.f32.mxu0 %v5865_v0  ;;  %3942 = vmatprep.mubr.f32.mxu1 %v5865_v0 }
 0xd0c   :  { %5339 = vmatpush1.bf16.msra.mxu0 %v6617_v59  ;;  %5371 = vmatpush1.bf16.msra.mxu1 %v6620_v39 }
 0xd0d   :  { %5341 = vmatprep.subr.bf16.mxu0 %v6625_v24  ;;  %5373 = vmatprep.subr.bf16.mxu1 %v6627_v51 }
 0xd10   :  { %5343 = vmatpush1.bf16.msra.mxu0 %v6629_v62  ;;  %5375 = vmatpush1.bf16.msra.mxu1 %v6632_v34 }
 0xd11   :  { %5345 = vmatprep.subr.bf16.mxu0 %v6637_v13  ;;  %5377 = vmatprep.subr.bf16.mxu1 %v6639_v55 }
 0xd14   :  { %5347 = vmatpush1.bf16.msra.mxu0 %v6641_v6  ;;  %5379 = vmatpush1.bf16.msra.mxu1 %v6644_v2 }
 0xd15   :  { %5349 = vmatprep.subr.bf16.mxu0 %v6649_v58  ;;  %5381 = vmatprep.subr.bf16.mxu1 %v6651_v63 }
 0xd18   :  { %5351 = vmatpush1.bf16.msra.mxu0 %v6653_v40  ;;  %5383 = vmatpush1.bf16.msra.mxu1 %v6656_v60 }
 0xd19   :  { %5353 = vmatprep.subr.bf16.mxu0 %v6660_v45  ;;  %5385 = vmatprep.subr.bf16.mxu1 %v6662_v52 }
 0xd1c   :  { %5355 = vmatpush1.bf16.msra.mxu0 %v6665_v38  ;;  %5387 = vmatpush1.bf16.msra.mxu1 %v6669_v46 }
 0xd1d   :  { %5357 = vmatprep.subr.bf16.mxu0 %v6671_v48  ;;  %5389 = vmatprep.subr.bf16.mxu1 %v6673_v5 }
 0xd20   :  { %5359 = vmatpush1.bf16.msra.mxu0 %v6676_v43  ;;  %5391 = vmatpush1.bf16.msra.mxu1 %v6680_v25 }
 0xd21   :  { %5361 = vmatprep.subr.bf16.mxu0 %v6685_v49  ;;  %5393 = vmatprep.subr.bf16.mxu1 %v6687_v44 }
 0xd24   :  { %5363 = vmatpush1.bf16.msra.mxu0 %v6689_v31  ;;  %5395 = vmatpush1.bf16.msra.mxu1 %v6692_v22 }
 0xd25   :  { %5397 = vmatprep.subr.bf16.mxu0 %v6601_v54  ;;  %5429 = vmatprep.subr.bf16.mxu1 %v6603_v53 }
 0xdda   :  { %v3693_v18 = vpop.f32.mrb[26].mxu0  ;;  %v3764_v33 = vpop.f32.mrb[26].mxu1 }
 0xddb   :  { %v5526_v12 = vadd.f32 %v3693_v18, %v6756_v50  ;;  %v3695_v47 = vpop.f32.mrb[27].mxu0  ;;  %v3766_v4 = vpop.f32.mrb[27].mxu1  ;;  %v5542_v54 = vadd.f32 %v3764_v33, %v6765_v42 }
 0xddc   :  { %v5527_v30 = vadd.f32 %v3695_v47, %v6760_v29  ;;  %v5543_v53 = vadd.f32 %v3766_v4, %v6771_v14  ;;  %v5868_v4 = vmov 0.0|0.0  }
 0xddd   :  { %v3773_v57 = vmul.f32 0.5, %v5526_v12  ;;  %v4171_v12 = vld [vmem:[%s7132_s8 + $0x8] sm:$0xff] }
 0xdde   :  { %v3777_v56 = vmul.f32 0.5, %v5527_v30  ;;  %v3782_v27 = vmul.f32 0.5, %v5543_v53  ;;  %v4172_v30 = vld [vmem:[%s7132_s8 + $0x10] sm:$0xff]  ;;  %v4175_v53 = vld [vmem:[%s7132_s8 + $0x28] sm:$0xff] }
 0xddf   :  { %5759 = vtanh.f32 %v3773_v57  ;;  %v4173_v57 = vld [vmem:[%s7132_s8 + $0x18] sm:$0xff] }
 0xde0   :  { %5761 = vtanh.f32 %v3777_v56  ;;  %v5464_v56 = vpack.c.bf16 %v4173_v57, %v4172_v30 }
 0xde1   :  { %5763 = vtanh.f32 %v5542_v54  ;;  %v4174_v54 = vld [vmem:[%s7132_s8 + $0x20] sm:$0xff] }
 0xde2   :  { %5765 = vtanh.f32 %v3782_v27  ;;  %v5467_v27 = vpack.c.bf16 %v4175_v53, %v4174_v54 }
 0xde9   :  { %v5760_v32 = vpop.eup %5759 }
 0xdea   :  { %v5762_v19 = vpop.eup %5761  ;;  %v3775_v41 = vmul.f32 0.5, %v5760_v32  ;;  %v4176_v32 = vld [vmem:[%s7132_s8 + $0x30] sm:$0xff] }
 0xdeb   :  { %v3779_v11 = vmul.f32 0.5, %v5762_v19  ;;  %v5764_v17 = vpop.eup %5763  ;;  %v4177_v19 = vld [vmem:[%s7132_s8 + $0x38] sm:$0xff] }
 0xdec   :  { %v3776_v23 = vadd.f32 0.5, %v3775_v41  ;;  %v5766_v3 = vpop.eup %5765  ;;  %v5470_v41 = vpack.c.bf16 %v4177_v19, %v4176_v32 }
 0xded   :  { %v3780_v28 = vadd.f32 0.5, %v3779_v11  ;;  %v3784_v15 = vmul.f32 0.5, %v5766_v3  ;;  %v4178_v11 = vld [vmem:[%s7132_s8 + $0x40] sm:$0xff]  ;;  %v4183_v3 = vld [vmem:[%s7132_s8 + $0x68] sm:$0xff] }
 0xdee   :  { %v3787_v35 = vmul.f32 %v5764_v17, %v3776_v23  ;;  %v4179_v23 = vld [vmem:[%s7132_s8 + $0x48] sm:$0xff] }
 0xdef   :  { %v3786_v37 = vmul.f32 %v3780_v28, %v6963_v36  ;;  %v3785_v16 = vadd.f32 0.5, %v3784_v15  ;;  %v5473_v17 = vpack.c.bf16 %v4179_v23, %v4178_v11  ;;  %v4180_v28 = vld [vmem:[%s7132_s8 + $0x50] sm:$0xff] }
 0xdf1   :  { %v7010_v20 = vadd.f32 %v3787_v35, %v3786_v37  ;;  %v4181_v35 = vld [vmem:[%s7132_s8 + $0x58] sm:$0xff] }
 0xdf2   :  { %v5476_v37 = vpack.c.bf16 %v4181_v35, %v4180_v28 }
 0xdf3   :  { %5767 = vtanh.f32 %v7010_v20 }
 0xdfd   :  { %v5768_v1 = vpop.eup %5767 }
 0xdfe   :  { %v3790_v8 = vmul.f32 %v5768_v1, %v3785_v16  ;;  %v4184_v16 = vld [vmem:[%s7132_s8 + $0x70] sm:$0xff]  ;;  %v4185_v1 = vld [vmem:[%s7132_s8 + $0x78] sm:$0xff] }
 0xe00   :  { %v3801_v18 = vmul.f32 %v3799_v21, %v3790_v8  ;;  %3872 = vmatmul.mubr.f32.vlgmr.msra.gmra.mrb[28].mxu0 %v3790_v8  ;;  %3943 = vmatmul.mubr.f32.vlgmr.msra.gmra.mrb[28].mxu1 %v3790_v8  ;;  %v5482_v21 = vpack.c.bf16 %v4185_v1, %v4184_v16 }
 0xe01   :  { %5399 = vmatpush1.bf16.msra.mxu0 %v6605_v7  ;;  %5431 = vmatpush1.bf16.msra.mxu1 %v6608_v9  ;;  %v5789_v7 = vld [vmem:[%s7125_s1] sm:$0xff] }
 0xe02   :  { %v7016_v33 = vadd.f32 %v3801_v18, %v6969_v10  ;;  %5401 = vmatprep.subr.bf16.mxu0 %v6613_v26  ;;  %5433 = vmatprep.subr.bf16.mxu1 %v6615_v61  ;;  %vm4305_vm11 = vcmp.gt.s32.totalorder %v5789_v7, 7  ;;  %v4170_v10 = vld [vmem:[%s7132_s8] sm:$0xff] }
 0xe03   :  { %4051 = vmatprep.mubr.f32.mxu0 %v5865_v0  ;;  %4122 = vmatprep.mubr.f32.mxu1 %v5865_v0  ;;  %v4306_v9 = vsel %vm4305_vm11, 1.0, %v5865_v0  ;;  %v5461_v47 = vpack.c.bf16 %v4171_v12, %v4170_v10 }
 0xe04   :  { %4158 = vperm.xlu0 %5622, %v4306_v9  }
 0xe05   :  { %5403 = vmatpush1.bf16.msra.mxu0 %v6617_v59  ;;  %5435 = vmatpush1.bf16.msra.mxu1 %v6620_v39 }
 0xe06   :  { %5405 = vmatprep.subr.bf16.mxu0 %v6625_v24  ;;  %5437 = vmatprep.subr.bf16.mxu1 %v6627_v51 }
 0xe09   :  { %5407 = vmatpush1.bf16.msra.mxu0 %v6629_v62  ;;  %5439 = vmatpush1.bf16.msra.mxu1 %v6632_v34 }
 0xe0a   :  { %5409 = vmatprep.subr.bf16.mxu0 %v6637_v13  ;;  %5441 = vmatprep.subr.bf16.mxu1 %v6639_v55 }
 0xe0d   :  { %5411 = vmatpush1.bf16.msra.mxu0 %v6641_v6  ;;  %5443 = vmatpush1.bf16.msra.mxu1 %v6644_v2 }
 0xe0e   :  { %5413 = vmatprep.subr.bf16.mxu0 %v6649_v58  ;;  %5445 = vmatprep.subr.bf16.mxu1 %v6651_v63 }
 0xe11   :  { %5415 = vmatpush1.bf16.msra.mxu0 %v6653_v40  ;;  %5447 = vmatpush1.bf16.msra.mxu1 %v6656_v60 }
 0xe12   :  { %5417 = vmatprep.subr.bf16.mxu0 %v6660_v45  ;;  %5449 = vmatprep.subr.bf16.mxu1 %v6662_v52 }
 0xe15   :  { %5419 = vmatpush1.bf16.msra.mxu0 %v6665_v38  ;;  %5451 = vmatpush1.bf16.msra.mxu1 %v6669_v46 }
 0xe16   :  { %5421 = vmatprep.subr.bf16.mxu0 %v6671_v48  ;;  %5453 = vmatprep.subr.bf16.mxu1 %v6673_v5 }
 0xe19   :  { %5423 = vmatpush1.bf16.msra.mxu0 %v6676_v43  ;;  %5455 = vmatpush1.bf16.msra.mxu1 %v6680_v25 }
 0xe1a   :  { %5425 = vmatprep.subr.bf16.mxu0 %v6685_v49  ;;  %5457 = vmatprep.subr.bf16.mxu1 %v6687_v44  ;;  %v3979_v44 = vpop.permute.xlu1 %3978 }
 0xe1d   :  { %5427 = vmatpush1.bf16.msra.mxu0 %v6689_v31  ;;  %5459 = vmatpush1.bf16.msra.mxu1 %v6692_v22 }
 0xe1e   :  { %5460 = vmatprep.subr.bf16.mxu0 %v5868_v4 }
 0xed3   :  { %v3873_v26 = vpop.f32.mrb[28].mxu0  ;;  %v3944_v61 = vpop.f32.mrb[28].mxu1 }
 0xed4   :  { %v5528_v59 = vadd.f32 %v3873_v26, %v6756_v50  ;;  %v3875_v39 = vpop.f32.mrb[29].mxu0  ;;  %v3946_v24 = vpop.f32.mrb[29].mxu1  ;;  %v5544_v13 = vadd.f32 %v3944_v61, %v6765_v42 }
 0xed5   :  { %v5529_v51 = vadd.f32 %v3875_v39, %v6760_v29  ;;  %v5545_v55 = vadd.f32 %v3946_v24, %v6771_v14 }
 0xed6   :  { %v3953_v62 = vmul.f32 0.5, %v5528_v59 }
 0xed7   :  { %v3957_v34 = vmul.f32 0.5, %v5529_v51  ;;  %v3962_v6 = vmul.f32 0.5, %v5545_v55 }
 0xed8   :  { %5769 = vtanh.f32 %v3953_v62 }
 0xed9   :  { %5771 = vtanh.f32 %v3957_v34 }
 0xeda   :  { %5773 = vtanh.f32 %v5544_v13 }
 0xedb   :  { %5775 = vtanh.f32 %v3962_v6 }
 0xee2   :  { %v5770_v2 = vpop.eup %5769 }
 0xee3   :  { %v5772_v58 = vpop.eup %5771  ;;  %v3955_v63 = vmul.f32 0.5, %v5770_v2 }
 0xee4   :  { %v3959_v40 = vmul.f32 0.5, %v5772_v58  ;;  %v5774_v45 = vpop.eup %5773 }
 0xee5   :  { %v3956_v60 = vadd.f32 0.5, %v3955_v63  ;;  %v5776_v5 = vpop.eup %5775 }
 0xee6   :  { %v3960_v52 = vadd.f32 0.5, %v3959_v40  ;;  %v3964_v43 = vmul.f32 0.5, %v5776_v5 }
 0xee7   :  { %v3967_v38 = vmul.f32 %v5774_v45, %v3956_v60 }
 0xee8   :  { %v3966_v46 = vmul.f32 %v3960_v52, %v7010_v20  ;;  %v3965_v25 = vadd.f32 0.5, %v3964_v43  ;;  %v4182_v20 = vld [vmem:[%s7132_s8 + $0x60] sm:$0xff] }
 0xee9   :  { %v5479_v15 = vpack.c.bf16 %v4183_v3, %v4182_v20 }
 0xeea   :  { %v7057_v48 = vadd.f32 %v3967_v38, %v3966_v46  ;;  %v4307_v46 = vld [vmem:[%s7133_s9] ss:$0 sm:$0xff] }
 0xeec   :  { %5777 = vtanh.f32 %v7057_v48 }
 0xef6   :  { %v5778_v49 = vpop.eup %5777 }
 0xef7   :  { %v3970_v31 = vmul.f32 %v5778_v49, %v3965_v25 }
 0xef9   :  { %v3981_v22 = vmul.f32 %v3979_v44, %v3970_v31  ;;  %4052 = vmatmul.mubr.f32.vlgmr.msra.gmra.mrb[30].mxu0 %v3970_v31  ;;  %4123 = vmatmul.mubr.f32.vlgmr.msra.gmra.mrb[30].mxu1 %v3970_v31 }
 0xefa   :  { %5462 = vmatpush3.bf16.msra.mxu0 %v5461_v47  ;;  %4357 = vmatprep.mubr.msk.f32.mxu0 %vm5869_vm12, %v5865_v0 }
 0xefb   :  { %v7061_v36 = vadd.f32 %v3981_v22, %v7016_v33  ;;  %5463 = vmatprep.subr.bf16.mxu0 %v5868_v4 }
 0xefe   :  { %5465 = vmatpush3.bf16.msra.mxu0 %v5464_v56 }
 0xeff   :  { %5466 = vmatprep.subr.bf16.mxu0 %v5868_v4 }
 0xf02   :  { %5468 = vmatpush3.bf16.msra.mxu0 %v5467_v27 }
 0xf03   :  { %5469 = vmatprep.subr.bf16.mxu0 %v5868_v4 }
 0xf06   :  { %5471 = vmatpush3.bf16.msra.mxu0 %v5470_v41 }
 0xf07   :  { %5472 = vmatprep.subr.bf16.mxu0 %v5868_v4 }
 0xf0a   :  { %5474 = vmatpush3.bf16.msra.mxu0 %v5473_v17 }
 0xf0b   :  { %5475 = vmatprep.subr.bf16.mxu0 %v5868_v4 }
 0xf0e   :  { %5477 = vmatpush3.bf16.msra.mxu0 %v5476_v37 }
 0xf0f   :  { %5478 = vmatprep.subr.bf16.mxu0 %v5868_v4 }
 0xf12   :  { %5480 = vmatpush3.bf16.msra.mxu0 %v5479_v15 }
 0xf13   :  { %5481 = vmatprep.subr.bf16.mxu0 %v5868_v4 }
 0xf16   :  { %5483 = vmatpush3.bf16.msra.mxu0 %v5482_v21 }
 0xfcc   :  { %v4053_v8 = vpop.f32.mrb[30].mxu0  ;;  %v4124_v18 = vpop.f32.mrb[30].mxu1 }
 0xfcd   :  { %v5530_v33 = vadd.f32 %v4053_v8, %v6756_v50  ;;  %v4055_v7 = vpop.f32.mrb[31].mxu0  ;;  %v4126_v9 = vpop.f32.mrb[31].mxu1  ;;  %v5546_v39 = vadd.f32 %v4124_v18, %v6765_v42 }
 0xfce   :  { %v5531_v26 = vadd.f32 %v4055_v7, %v6760_v29  ;;  %v5547_v24 = vadd.f32 %v4126_v9, %v6771_v14  ;;  %v4159_v14 = vpop.permute.xlu0 %4158 }
 0xfcf   :  { %v4133_v61 = vmul.f32 0.5, %v5530_v33 }
 0xfd0   :  { %v4137_v59 = vmul.f32 0.5, %v5531_v26  ;;  %v4142_v51 = vmul.f32 0.5, %v5547_v24 }
 0xfd1   :  { %5779 = vtanh.f32 %v4133_v61 }
 0xfd2   :  { %5781 = vtanh.f32 %v4137_v59 }
 0xfd3   :  { %5783 = vtanh.f32 %v5546_v39 }
 0xfd4   :  { %5785 = vtanh.f32 %v4142_v51 }
 0xfdb   :  { %v5780_v62 = vpop.eup %5779 }
 0xfdc   :  { %v5782_v0 = vpop.eup %5781  ;;  %v4135_v34 = vmul.f32 0.5, %v5780_v62 }
 0xfdd   :  { %v4139_v13 = vmul.f32 0.5, %v5782_v0  ;;  %v5784_v55 = vpop.eup %5783 }
 0xfde   :  { %v4136_v50 = vadd.f32 0.5, %v4135_v34  ;;  %v5786_v63 = vpop.eup %5785 }
 0xfdf   :  { %v4140_v6 = vadd.f32 0.5, %v4139_v13  ;;  %v4144_v42 = vmul.f32 0.5, %v5786_v63 }
 0xfe0   :  { %v4147_v2 = vmul.f32 %v5784_v55, %v4136_v50 }
 0xfe1   :  { %v4146_v29 = vmul.f32 %v4140_v6, %v7057_v48  ;;  %v4145_v40 = vadd.f32 0.5, %v4144_v42 }
 0xfe3   :  { %v4148_v58 = vadd.f32 %v4147_v2, %v4146_v29 }
 0xfe5   :  { %5787 = vtanh.f32 %v4148_v58 }
 0xfef   :  { %v5788_v60 = vpop.eup %5787 }
 0xff0   :  { %v4150_v45 = vmul.f32 %v5788_v60, %v4145_v40 }
 0xff2   :  { %v4161_v52 = vmul.f32 %v4159_v14, %v4150_v45 }
 0xff4   :  { %v4162_v38 = vadd.f32 %v4161_v52, %v7061_v36 }
 0xff6   :  { %4358 = vmatmul.mubr.f32.vlgmr.msra.gmra.mrb[32].mxu0 %v4162_v38 }
0x10c9   :  { %v4259_v5 = vpop.f32.mrb[32].mxu0 }
0x10ca   :  { %v4260_v43 = vadd.f32 %v4307_v46, %v4259_v5  ;;  %v4359_v48 = vpop.f32.mrb[33].mxu0 }
0x10cc   :  { %4264 = vst.msk [vmem:[%s7134_s10] sm:$0xff] %vm4263_vm13, %v4260_v43 }
0x10cd   :  { %4269 = vsyncpa [#allocation8], 1 }
0x10ce   :  { %4270 = vsyncpa [#allocation10], 1 }

</bundles_post_ra>
